<compile_context>
chip_gen: v6e
topology: v6e:2x2x1
jax: 0.10.0
libtpu: 0.0.40
codegen_flags: <defaults>
</compile_context>

<pallas_src>
import math

import jax
import jax.numpy as jnp
from jax.experimental import pallas as pl
from jax.experimental.pallas import tpu as pltpu


# ---------------------------------------------------------------------------
# Kernels
# ---------------------------------------------------------------------------
def _make_dense_kernel(stride: int, w: int, k: int):
    """Assemble the whole (rblk, k*s*s*W) output block in registers and write it
    with a single full-width, unmasked, lane-dense store."""
    kw = k * w                       # input super-row width (lanes)
    ws = w * stride                  # one nearest-neighbour expanded image row
    out_w = k * stride * stride * w

    def kernel(x_ref, o_ref):
        x = x_ref[...]                                       # (R, k*W), lane-dense
        r = x.shape[0]
        # 1) expand along W: per-lane repeat by `stride`.
        wexp = jnp.broadcast_to(x.reshape(r, kw, 1),
                                (r, kw, stride)).reshape(r, kw * stride)
        # 2) replicate every expanded row `stride` times (H replication); the
        #    copies are contiguous per input row in the flattened output, so the
        #    whole block is stored with one unmasked full-width store.
        #    (If profiles show this relayout not hiding under the output DMA, it
        #    could be replaced by an MXU matmul against a constant 0/1
        #    replication matrix -- the MXU is idle in this kernel.)
        grp = wexp.reshape(r, k, 1, ws)
        full = jnp.broadcast_to(grp, (r, k, stride, ws)).reshape(r, out_w)
        o_ref[...] = full

    return kernel


def _make_sliced_kernel(stride: int, w: int, k: int):
    """Fallback: identical lane-dense blocks / DMAs, but the output block is
    filled with per-chunk slice stores (uses only reshape patterns that are
    guaranteed to lower on every Mosaic toolchain)."""
    ws = w * stride

    def kernel(x_ref, o_ref):
        for j in range(k):
            xj = x_ref[:, j * w:(j + 1) * w]                 # (R, W)
            r = xj.shape[0]
            wexp = jnp.broadcast_to(xj.reshape(r, w, 1),
                                    (r, w, stride)).reshape(r, ws)
            for rep in range(stride):
                off = (j * stride + rep) * ws
                o_ref[:, off:off + ws] = wexp

    return kernel


# ---------------------------------------------------------------------------
# Tiling heuristics
# ---------------------------------------------------------------------------
def _vmem_capacity_bytes() -> int:
    try:
        return int(pltpu.get_tpu_info().vmem_capacity_bytes)
    except Exception:
        return 64 * 1024 * 1024          # conservative fallback (v7x per-core VMEM)


def _choose_group(total_rows: int, w: int) -> int:
    """Number of consecutive flattened rows folded into the lane axis."""
    k_min = 128 // math.gcd(w, 128)      # smallest k with (k*w) % 128 == 0
    if total_rows % k_min == 0:
        return k_min
    # smallest divisor of total_rows whose super-row is still lane-aligned
    for d in range(2, min(total_rows, 512) + 1):
        if (d * w) % 128 == 0 and total_rows % d == 0:
            return d
    # no lane-aligned divisor: at least widen the rows (better vreg occupancy and
    # DMA granules; the width dim is never tiled, so any divisor stays legal)
    best = 1
    for d in range(2, min(total_rows, 256) + 1):
        if total_rows % d == 0 and d * w <= 1024:
            best = d
    return best


def _choose_row_block(n_rows, in_row_bytes, out_row_bytes, itemsize, budget):
    pack = max(8, 32 // max(itemsize, 1))    # sublane packing: f32=8 bf16=16 int8=32
    if n_rows <= pack:
        return n_rows
    row_bytes = in_row_bytes + out_row_bytes
    # double-buffered (in + out) blocks must fit the per-generation VMEM budget
    max_by_vmem = max(pack, budget // (2 * row_bytes))
    # ~8 MiB of output per grid step: per-step overhead (~0.35 us) is negligible
    # without blowing up the fully unrolled kernel body.
    target = max(pack, (8 << 20) // max(out_row_bytes, 1))
    rblk = max(pack, min(n_rows, max_by_vmem, target))
    rblk = (rblk // pack) * pack
    # Prefer an exact split with an even number of steps (v7x shards the
    # 'parallel' axis across 2 TensorCores; a runt block serializes on one),
    # but never shrink below half of the bandwidth-optimal block size.
    best_exact = best_even = None
    cand = rblk
    while cand >= max(pack, rblk // 2):
        if n_rows % cand == 0:
            steps = n_rows // cand
            if best_exact is None:
                best_exact = cand
            if steps == 1 or steps % 2 == 0:
                best_even = cand
                break
        cand -= pack
    return min(best_even or best_exact or rblk, n_rows)


def _build_upsample_call(kernel, n_rows, in_w, out_w, rblk, dtype, vmem_limit):
    grid = pl.cdiv(n_rows, rblk)
    return pl.pallas_call(
        kernel,
        out_shape=jax.ShapeDtypeStruct((n_rows, out_w), dtype),
        grid_spec=pl.GridSpec(
            grid=(grid,),
            in_specs=[pl.BlockSpec((rblk, in_w), lambda i: (i, 0))],
            out_specs=pl.BlockSpec((rblk, out_w), lambda i: (i, 0)),
        ),
        compiler_params=pltpu.CompilerParams(
            dimension_semantics=("parallel",),
            vmem_limit_bytes=vmem_limit,
        ),
    )


# caches which kernel variant lowered cleanly for a given problem signature
_IMPL_CACHE = {}


def upsample(x: jax.Array, stride: int = 2) -> jax.Array:
    """Pallas TPU forward pass of the darknet Upsample layer (NCHW, nearest)."""
    assert x.ndim == 4, "expected NCHW input"
    assert isinstance(stride, int) and stride >= 1
    B, C, H, W = x.shape
    if stride == 1:
        return x

    total_rows = B * C * H
    k = _choose_group(total_rows, W)
    n_rows = total_rows // k
    in_w = k * W
    out_w = k * stride * stride * W
    itemsize = jnp.dtype(x.dtype).itemsize

    vmem_cap = _vmem_capacity_bytes()
    budget = min(vmem_cap // 2, 40 << 20)        # stays safe on v7x (64 MiB / core)
    rblk = _choose_row_block(n_rows, in_w * itemsize, out_w * itemsize,
                             itemsize, budget)
    block_bytes = rblk * (in_w + out_w) * itemsize
    vmem_limit = int(min(vmem_cap, 48 << 20,
                         max(2 * block_bytes + (8 << 20), 32 << 20)))

    # Lane-dense flattened views (contiguous NCHW reshapes, zero-cost plumbing).
    x2 = x.reshape(n_rows, in_w)
    out_shape4 = (B, C, H * stride, W * stride)

    cache_key = (x.shape, str(x.dtype), stride)
    impl = _IMPL_CACHE.get(cache_key, "dense")
    if impl == "dense":
        try:
            kern = _make_dense_kernel(stride, W, k)
            y2 = _build_upsample_call(kern, n_rows, in_w, out_w, rblk,
                                      x.dtype, vmem_limit)(x2)
            _IMPL_CACHE[cache_key] = "dense"
            return y2.reshape(out_shape4)
        except Exception:
            # Mosaic could not lower the merged-lane relayout on this toolchain;
            # fall back to the slice-store kernel (same blocks / DMAs).
            _IMPL_CACHE[cache_key] = "sliced"
    kern = _make_sliced_kernel(stride, W, k)
    y2 = _build_upsample_call(kern, n_rows, in_w, out_w, rblk,
                              x.dtype, vmem_limit)(x2)
    return y2.reshape(out_shape4)


# ---------------------------------------------------------------------------
# Reference + self-check
# ---------------------------------------------------------------------------
def _ref_upsample(x, stride):
    B, C, H, W = x.shape
    return jnp.broadcast_to(
        x.reshape(B, C, H, 1, W, 1), (B, C, H, stride, W, stride)
    ).reshape(B, C, H * stride, W * stride)


if __name__ == "__main__":
    key = jax.random.PRNGKey(0)
    B, C, H, W = 2, 4, 16, 16
    stride = 2
    x = jax.random.normal(key, (B, C, H, W), dtype=jnp.float32)

    y = jax.block_until_ready(upsample(x, stride=stride))
    assert y.shape == (B, C, H * stride, W * stride)
    assert y.dtype == x.dtype
    assert jnp.array_equal(y, _ref_upsample(x, stride))

    # Secondary check: odd stride, non-square spatial dims, W not lane-aligned
    # (exercises the fallback row-grouping path).
    x3 = jax.random.normal(jax.random.PRNGKey(1), (1, 3, 8, 10), dtype=jnp.float32)
    y3 = jax.block_until_ready(upsample(x3, stride=3))
    assert jnp.array_equal(y3, _ref_upsample(x3, 3))

    print("KERNEL_OK")
</pallas_src>

<mosaic_0001>
module attributes {stable_mosaic.version = 11 : i64} {
  func.func @kernel(%arg0: i32, %arg1: memref<16x128xf32, #tpu.memory_space<vmem>>, %arg2: memref<16x512xf32, #tpu.memory_space<vmem>>) attributes {dimension_semantics = [#tpu.dimension_semantics<parallel>], iteration_bounds = array<i64: 1>, scalar_prefetch = 0 : i64, scratch_operands = 0 : i64, tpu.core_type = #tpu.core_type<tc>, window_params = [{transform_indices = @transform_0, window_bounds = array<i64: 16, 128>}, {transform_indices = @transform_1, window_bounds = array<i64: 16, 512>}]} {
    %c0 = arith.constant 0 : index
    %c0_0 = arith.constant 0 : index
    %0 = vector.load %arg1[%c0, %c0_0] : memref<16x128xf32, #tpu.memory_space<vmem>>, vector<16x128xf32>
    %1 = vector.shape_cast %0 : vector<16x128xf32> to vector<16x128x1xf32>
    %2 = vector.shape_cast %1 : vector<16x128x1xf32> to vector<16x128x1xf32>
    %3 = vector.broadcast %2 : vector<16x128x1xf32> to vector<16x128x2xf32>
    %4 = vector.shape_cast %3 : vector<16x128x2xf32> to vector<16x256xf32>
    %5 = vector.shape_cast %4 : vector<16x256xf32> to vector<16x8x1x32xf32>
    %6 = vector.shape_cast %5 : vector<16x8x1x32xf32> to vector<16x8x1x32xf32>
    %7 = vector.broadcast %6 : vector<16x8x1x32xf32> to vector<16x8x2x32xf32>
    %8 = vector.shape_cast %7 : vector<16x8x2x32xf32> to vector<16x512xf32>
    %c0_1 = arith.constant 0 : index
    %c0_2 = arith.constant 0 : index
    %9 = vector.load %arg2[%c0_1, %c0_2] : memref<16x512xf32, #tpu.memory_space<vmem>>, vector<16x512xf32>
    tpu.vector_store %arg2[%c0_1, %c0_2], %8 {strides = array<i32>} : memref<16x512xf32, #tpu.memory_space<vmem>>, vector<16x512xf32>,
    return
  }
  func.func @transform_0(%arg0: i32) -> (i32, i32) {
    %c0_i32 = arith.constant 0 : i32
    %c0_i32_0 = arith.constant 0 : i32
    return %arg0, %c0_i32 : i32, i32
  }
  func.func @transform_1(%arg0: i32) -> (i32, i32) {
    %c0_i32 = arith.constant 0 : i32
    %c0_i32_0 = arith.constant 0 : i32
    return %arg0, %c0_i32 : i32, i32
  }
}

module attributes {stable_mosaic.version = 11 : i64} {
  func.func @kernel(%arg0: i32, %arg1: memref<16x128xf32, #tpu.memory_space<vmem>>, %arg2: memref<16x512xf32, #tpu.memory_space<vmem>>) attributes {dimension_semantics = [#tpu.dimension_semantics<parallel>], iteration_bounds = array<i64: 1>, scalar_prefetch = 0 : i64, scratch_operands = 0 : i64, tpu.core_type = #tpu.core_type<tc>, window_params = [{transform_indices = @transform_0, window_bounds = array<i64: 16, 128>}, {transform_indices = @transform_1, window_bounds = array<i64: 16, 512>}]} {
    %c0 = arith.constant 0 : index
    %c0_0 = arith.constant 0 : index
    %0 = vector.load %arg1[%c0, %c0_0] : memref<16x128xf32, #tpu.memory_space<vmem>>, vector<16x16xf32>
    %1 = vector.shape_cast %0 : vector<16x16xf32> to vector<16x16x1xf32>
    %2 = vector.shape_cast %1 : vector<16x16x1xf32> to vector<16x16x1xf32>
    %3 = vector.broadcast %2 : vector<16x16x1xf32> to vector<16x16x2xf32>
    %4 = vector.shape_cast %3 : vector<16x16x2xf32> to vector<16x32xf32>
    %c0_1 = arith.constant 0 : index
    %c0_2 = arith.constant 0 : index
    %5 = vector.load %arg2[%c0_1, %c0_2] : memref<16x512xf32, #tpu.memory_space<vmem>>, vector<16x32xf32>
    tpu.vector_store %arg2[%c0_1, %c0_2], %4 {strides = array<i32>} : memref<16x512xf32, #tpu.memory_space<vmem>>, vector<16x32xf32>,
    %c0_3 = arith.constant 0 : index
    %c32 = arith.constant 32 : index
    %6 = vector.load %arg2[%c0_3, %c32] : memref<16x512xf32, #tpu.memory_space<vmem>>, vector<16x32xf32>
    tpu.vector_store %arg2[%c0_3, %c32], %4 {strides = array<i32>} : memref<16x512xf32, #tpu.memory_space<vmem>>, vector<16x32xf32>,
    %c0_4 = arith.constant 0 : index
    %c16 = arith.constant 16 : index
    %7 = vector.load %arg1[%c0_4, %c16] : memref<16x128xf32, #tpu.memory_space<vmem>>, vector<16x16xf32>
    %8 = vector.shape_cast %7 : vector<16x16xf32> to vector<16x16x1xf32>
    %9 = vector.shape_cast %8 : vector<16x16x1xf32> to vector<16x16x1xf32>
    %10 = vector.broadcast %9 : vector<16x16x1xf32> to vector<16x16x2xf32>
    %11 = vector.shape_cast %10 : vector<16x16x2xf32> to vector<16x32xf32>
    %c0_5 = arith.constant 0 : index
    %c64 = arith.constant 64 : index
    %12 = vector.load %arg2[%c0_5, %c64] : memref<16x512xf32, #tpu.memory_space<vmem>>, vector<16x32xf32>
    tpu.vector_store %arg2[%c0_5, %c64], %11 {strides = array<i32>} : memref<16x512xf32, #tpu.memory_space<vmem>>, vector<16x32xf32>,
    %c0_6 = arith.constant 0 : index
    %c96 = arith.constant 96 : index
    %13 = vector.load %arg2[%c0_6, %c96] : memref<16x512xf32, #tpu.memory_space<vmem>>, vector<16x32xf32>
    tpu.vector_store %arg2[%c0_6, %c96], %11 {strides = array<i32>} : memref<16x512xf32, #tpu.memory_space<vmem>>, vector<16x32xf32>,
    %c0_7 = arith.constant 0 : index
    %c32_8 = arith.constant 32 : index
    %14 = vector.load %arg1[%c0_7, %c32_8] : memref<16x128xf32, #tpu.memory_space<vmem>>, vector<16x16xf32>
    %15 = vector.shape_cast %14 : vector<16x16xf32> to vector<16x16x1xf32>
    %16 = vector.shape_cast %15 : vector<16x16x1xf32> to vector<16x16x1xf32>
    %17 = vector.broadcast %16 : vector<16x16x1xf32> to vector<16x16x2xf32>
    %18 = vector.shape_cast %17 : vector<16x16x2xf32> to vector<16x32xf32>
    %c0_9 = arith.constant 0 : index
    %c128 = arith.constant 128 : index
    %19 = vector.load %arg2[%c0_9, %c128] : memref<16x512xf32, #tpu.memory_space<vmem>>, vector<16x32xf32>
    tpu.vector_store %arg2[%c0_9, %c128], %18 {strides = array<i32>} : memref<16x512xf32, #tpu.memory_space<vmem>>, vector<16x32xf32>,
    %c0_10 = arith.constant 0 : index
    %c160 = arith.constant 160 : index
    %20 = vector.load %arg2[%c0_10, %c160] : memref<16x512xf32, #tpu.memory_space<vmem>>, vector<16x32xf32>
    tpu.vector_store %arg2[%c0_10, %c160], %18 {strides = array<i32>} : memref<16x512xf32, #tpu.memory_space<vmem>>, vector<16x32xf32>,
    %c0_11 = arith.constant 0 : index
    %c48 = arith.constant 48 : index
    %21 = vector.load %arg1[%c0_11, %c48] : memref<16x128xf32, #tpu.memory_space<vmem>>, vector<16x16xf32>
    %22 = vector.shape_cast %21 : vector<16x16xf32> to vector<16x16x1xf32>
    %23 = vector.shape_cast %22 : vector<16x16x1xf32> to vector<16x16x1xf32>
    %24 = vector.broadcast %23 : vector<16x16x1xf32> to vector<16x16x2xf32>
    %25 = vector.shape_cast %24 : vector<16x16x2xf32> to vector<16x32xf32>
    %c0_12 = arith.constant 0 : index
    %c192 = arith.constant 192 : index
    %26 = vector.load %arg2[%c0_12, %c192] : memref<16x512xf32, #tpu.memory_space<vmem>>, vector<16x32xf32>
    tpu.vector_store %arg2[%c0_12, %c192], %25 {strides = array<i32>} : memref<16x512xf32, #tpu.memory_space<vmem>>, vector<16x32xf32>,
    %c0_13 = arith.constant 0 : index
    %c224 = arith.constant 224 : index
    %27 = vector.load %arg2[%c0_13, %c224] : memref<16x512xf32, #tpu.memory_space<vmem>>, vector<16x32xf32>
    tpu.vector_store %arg2[%c0_13, %c224], %25 {strides = array<i32>} : memref<16x512xf32, #tpu.memory_space<vmem>>, vector<16x32xf32>,
    %c0_14 = arith.constant 0 : index
    %c64_15 = arith.constant 64 : index
    %28 = vector.load %arg1[%c0_14, %c64_15] : memref<16x128xf32, #tpu.memory_space<vmem>>, vector<16x16xf32>
    %29 = vector.shape_cast %28 : vector<16x16xf32> to vector<16x16x1xf32>
    %30 = vector.shape_cast %29 : vector<16x16x1xf32> to vector<16x16x1xf32>
    %31 = vector.broadcast %30 : vector<16x16x1xf32> to vector<16x16x2xf32>
    %32 = vector.shape_cast %31 : vector<16x16x2xf32> to vector<16x32xf32>
    %c0_16 = arith.constant 0 : index
    %c256 = arith.constant 256 : index
    %33 = vector.load %arg2[%c0_16, %c256] : memref<16x512xf32, #tpu.memory_space<vmem>>, vector<16x32xf32>
    tpu.vector_store %arg2[%c0_16, %c256], %32 {strides = array<i32>} : memref<16x512xf32, #tpu.memory_space<vmem>>, vector<16x32xf32>,
    %c0_17 = arith.constant 0 : index
    %c288 = arith.constant 288 : index
    %34 = vector.load %arg2[%c0_17, %c288] : memref<16x512xf32, #tpu.memory_space<vmem>>, vector<16x32xf32>
    tpu.vector_store %arg2[%c0_17, %c288], %32 {strides = array<i32>} : memref<16x512xf32, #tpu.memory_space<vmem>>, vector<16x32xf32>,
    %c0_18 = arith.constant 0 : index
    %c80 = arith.constant 80 : index
    %35 = vector.load %arg1[%c0_18, %c80] : memref<16x128xf32, #tpu.memory_space<vmem>>, vector<16x16xf32>
    %36 = vector.shape_cast %35 : vector<16x16xf32> to vector<16x16x1xf32>
    %37 = vector.shape_cast %36 : vector<16x16x1xf32> to vector<16x16x1xf32>
    %38 = vector.broadcast %37 : vector<16x16x1xf32> to vector<16x16x2xf32>
    %39 = vector.shape_cast %38 : vector<16x16x2xf32> to vector<16x32xf32>
    %c0_19 = arith.constant 0 : index
    %c320 = arith.constant 320 : index
    %40 = vector.load %arg2[%c0_19, %c320] : memref<16x512xf32, #tpu.memory_space<vmem>>, vector<16x32xf32>
    tpu.vector_store %arg2[%c0_19, %c320], %39 {strides = array<i32>} : memref<16x512xf32, #tpu.memory_space<vmem>>, vector<16x32xf32>,
    %c0_20 = arith.constant 0 : index
    %c352 = arith.constant 352 : index
    %41 = vector.load %arg2[%c0_20, %c352] : memref<16x512xf32, #tpu.memory_space<vmem>>, vector<16x32xf32>
    tpu.vector_store %arg2[%c0_20, %c352], %39 {strides = array<i32>} : memref<16x512xf32, #tpu.memory_space<vmem>>, vector<16x32xf32>,
    %c0_21 = arith.constant 0 : index
    %c96_22 = arith.constant 96 : index
    %42 = vector.load %arg1[%c0_21, %c96_22] : memref<16x128xf32, #tpu.memory_space<vmem>>, vector<16x16xf32>
    %43 = vector.shape_cast %42 : vector<16x16xf32> to vector<16x16x1xf32>
    %44 = vector.shape_cast %43 : vector<16x16x1xf32> to vector<16x16x1xf32>
    %45 = vector.broadcast %44 : vector<16x16x1xf32> to vector<16x16x2xf32>
    %46 = vector.shape_cast %45 : vector<16x16x2xf32> to vector<16x32xf32>
    %c0_23 = arith.constant 0 : index
    %c384 = arith.constant 384 : index
    %47 = vector.load %arg2[%c0_23, %c384] : memref<16x512xf32, #tpu.memory_space<vmem>>, vector<16x32xf32>
    tpu.vector_store %arg2[%c0_23, %c384], %46 {strides = array<i32>} : memref<16x512xf32, #tpu.memory_space<vmem>>, vector<16x32xf32>,
    %c0_24 = arith.constant 0 : index
    %c416 = arith.constant 416 : index
    %48 = vector.load %arg2[%c0_24, %c416] : memref<16x512xf32, #tpu.memory_space<vmem>>, vector<16x32xf32>
    tpu.vector_store %arg2[%c0_24, %c416], %46 {strides = array<i32>} : memref<16x512xf32, #tpu.memory_space<vmem>>, vector<16x32xf32>,
    %c0_25 = arith.constant 0 : index
    %c112 = arith.constant 112 : index
    %49 = vector.load %arg1[%c0_25, %c112] : memref<16x128xf32, #tpu.memory_space<vmem>>, vector<16x16xf32>
    %50 = vector.shape_cast %49 : vector<16x16xf32> to vector<16x16x1xf32>
    %51 = vector.shape_cast %50 : vector<16x16x1xf32> to vector<16x16x1xf32>
    %52 = vector.broadcast %51 : vector<16x16x1xf32> to vector<16x16x2xf32>
    %53 = vector.shape_cast %52 : vector<16x16x2xf32> to vector<16x32xf32>
    %c0_26 = arith.constant 0 : index
    %c448 = arith.constant 448 : index
    %54 = vector.load %arg2[%c0_26, %c448] : memref<16x512xf32, #tpu.memory_space<vmem>>, vector<16x32xf32>
    tpu.vector_store %arg2[%c0_26, %c448], %53 {strides = array<i32>} : memref<16x512xf32, #tpu.memory_space<vmem>>, vector<16x32xf32>,
    %c0_27 = arith.constant 0 : index
    %c480 = arith.constant 480 : index
    %55 = vector.load %arg2[%c0_27, %c480] : memref<16x512xf32, #tpu.memory_space<vmem>>, vector<16x32xf32>
    tpu.vector_store %arg2[%c0_27, %c480], %53 {strides = array<i32>} : memref<16x512xf32, #tpu.memory_space<vmem>>, vector<16x32xf32>,
    return
  }
  func.func @transform_0(%arg0: i32) -> (i32, i32) {
    %c0_i32 = arith.constant 0 : i32
    %c0_i32_0 = arith.constant 0 : i32
    return %arg0, %c0_i32 : i32, i32
  }
  func.func @transform_1(%arg0: i32) -> (i32, i32) {
    %c0_i32 = arith.constant 0 : i32
    %c0_i32_0 = arith.constant 0 : i32
    return %arg0, %c0_i32 : i32, i32
  }
}

</mosaic_0001>

<bundles_post_ra>
// kernel: tpu_custom_call.1
= control target key start
LH: loop header
LB: loop body
LE: loop exit
PB: predicated region body
PF: predicated region fallthrough
CT: control target
= control target key end

     0   :  { %6 = vsyncpa [#allocation3], 0  ;;  %s9912_s0 = inlined_call_operand.hbm [shape: f32[16,128], index: 0, kind: input, shape index: {}]   ;;  %s9913_s1 = inlined_call_operand.hbm [shape: f32[16,512], index: 1, kind: output, shape index: {}]  }
   0x1   :  { %7 = vsyncpa [#allocation4], 0  ;;  %s7335_s6 = smov [#allocation2]  }
   0x2   :  { %s13_s7 = sshll.u32 %s7335_s6, 4  ;;  %s14_s7 = int_to_ptr.vmem [resolvable:$true] %s13_s7 }
   0x3   :  { %s7299_s8 = scalar_lea.vmem %s14_s7, 256  ;;  %p7304_p1 = scmp.lt.s32.totalorder %s14_s7, %s14_s7 }
   0x4   :  { %p7300_p0 = scmp.ne.s32.totalorder %s14_s7, %s7299_s8  ;;  %p7305_p2 = scmp.lt.s32.totalorder %s7299_s8, %s7299_s8 }
   0x6   :  { %p7306_p3 = por %p7305_p2, %p7304_p1 }
   0x8   :  { %p7307_p4 = pnand %p7306_p3, %p7300_p0 }
   0xa   :  { %7310 = shalt.err (!%p7307_p4)
}
   0xb   :  { %s7336_s9 = smov 128   ;;  %s7337_s10 = smov 8  }
   0xc   :  { %19 = dma.hbm_to_vmem [thread:$0]  %s9912_s0, 256, %s14_s7, [#allocation3], %s7336_s9, %s7336_s9, %s7337_s10  }
   0xd   :  { %7331 = dma.done.wait [#allocation3], 256  }
   0xe   :  { %7332 = vsyncadd [#allocation3], 4294967040  ;;  %v25_v0 = vlaneseq  ;;  %v23_v4 = vld [vmem:[#allocation2] sm:$0xff]  ;;  %v24_v19 = vld [vmem:[#allocation2 + $0x8] sm:$0xff]  ;;  %v7338_v38 = vmov 1983009808  }
   0xf   :  { %v204_v39 = vunpack.c.l.s4 %v7338_v38  ;;  %v7339_v43 = vmov 1934713408   ;;  %s7340_s0 = smov 2   ;;  %s7341_s13 = smov 4   ;;  %vm865_vm0 = vcmask 15360   ;;  %vm868_vm1 = vcmask 31744  }
  0x10   :  { %v7373_v1 = vshrl.u32 %v25_v0, 7  ;;  %v268_v44 = vunpack.c.l.s4 %v7339_v43  ;;  %s7342_s14 = smov 6   ;;  %s7343_s15 = smov 10   ;;  %vm871_vm2 = vcmask 48128   ;;  %vm874_vm3 = vcmask 64512  }
  0x11   :  { %v205_v42 = vunpack.c.0.s8 %v204_v39  ;;  %s7344_s16 = smov 12   ;;  %s7345_s17 = smov 14   ;;  %vm877_vm4 = vcmask 80896   ;;  %vm880_vm5 = vcmask 97280   ;;  %vm883_vm6 = vcmask 113664  }
  0x12   :  { %v7376_v2 = vsub.s32 1, %v7373_v1  ;;  %v7379_v3 = vsub.s32 0, %v7373_v1  ;;  %v7384_v7 = vsub.s32 2, %v7373_v1  ;;  %v7388_v9 = vsub.s32 3, %v7373_v1  ;;  %s7346_s18 = smov 16   ;;  %s7347_s19 = smov 18  }
  0x13   :  { %v7394_v11 = vsub.s32 4, %v7373_v1  ;;  %v7402_v13 = vsub.s32 5, %v7373_v1  ;;  %v7410_v15 = vsub.s32 6, %v7373_v1  ;;  %v7418_v17 = vsub.s32 7, %v7373_v1  ;;  %s7348_s20 = smov 20   ;;  %s7349_s21 = smov 22  }
  0x14   :  { %v39_v5 = vrot.slane %v23_v4, %v7376_v2  ;;  %v28_v6 = vrot.slane %v23_v4, %v7379_v3  ;;  %v50_v8 = vrot.slane %v23_v4, %v7384_v7  ;;  %9948 = vst [vmem:[#allocation8_spill] sm:$0xff] %v7388_v9  ;;  %v7391_v10 = vrot.slane %v23_v4, %v7388_v9  ;;  %s7350_s22 = smov 24   ;;  %s7351_s23 = smov 26  }
  0x15   :  { %9949 = vst [vmem:[#allocation9_spill] sm:$0xff] %v7394_v11  ;;  %v7399_v12 = vrot.slane %v23_v4, %v7394_v11  ;;  %9950 = vst [vmem:[#allocation10_spill] sm:$0xff] %v7402_v13  ;;  %v7407_v14 = vrot.slane %v23_v4, %v7402_v13  ;;  %v7415_v16 = vrot.slane %v23_v4, %v7410_v15  ;;  %v269_v50 = vunpack.c.0.s8 %v268_v44  ;;  %s7352_s24 = smov 28   ;;  %s7353_s25 = smov 30  }
  0x16   :  { %41 = vbcast.lane.b32.xlu1 %v39_v5, 256  ;;  %30 = vbcast.lane.b32.xlu0 %v28_v6, 256  ;;  %9951 = vst [vmem:[#allocation11_spill] sm:$0xff] %v7410_v15  ;;  %9952 = vst [vmem:[#allocation12_spill] sm:$0xff] %v7418_v17  ;;  %v7423_v18 = vrot.slane %v23_v4, %v7418_v17  ;;  %v7428_v20 = vrot.slane %v24_v19, %v7379_v3  ;;  %vm886_vm7 = vcmask 130048   ;;  %vm889_vm8 = vcmask 146432  }
  0x17   :  { %v7433_v21 = vrot.slane %v24_v19, %v7376_v2  ;;  %v7438_v22 = vrot.slane %v24_v19, %v7384_v7  ;;  %v7443_v23 = vrot.slane %v24_v19, %v7388_v9  ;;  %v7448_v24 = vrot.slane %v24_v19, %v7394_v11  ;;  %s7354_s26 = smov 32   ;;  %s7355_s27 = smov 64  }
  0x18   :  { %v7453_v25 = vrot.slane %v24_v19, %v7402_v13  ;;  %v7458_v26 = vrot.slane %v24_v19, %v7410_v15  ;;  %v7463_v27 = vrot.slane %v24_v19, %v7418_v17  ;;  %v7482_v48 = vsub.s32 %v205_v42, %v7373_v1  ;;  %s7356_s28 = smov 96   ;;  %s7357_s29 = smov [#allocation5]  }
  0x19   :  { %v7490_v58 = vsub.s32 %v269_v50, %v7373_v1  ;;  %vm892_vm9 = vcmask 162816   ;;  %vm895_vm10 = vcmask 179200   ;;  %vm898_vm11 = vcmask 195584   ;;  %s7255_s30 = sshll.u32 %s7357_s29, 4  ;;  %s7256_s30 = int_to_ptr.vmem [resolvable:$true] %s7255_s30 }
  0x1a   :  { %45 = vbcast.lane.b32.xlu1 %v39_v5, 264  ;;  %34 = vbcast.lane.b32.xlu0 %v28_v6, 264  ;;  %vm901_vm12 = vcmask 211968   ;;  %vm9932_vm13 = vcmask 228352   ;;  %vm9926_vm14 = vcmask 244736   ;;  %vm9924_vm15 = vcmask 261120   ;;  %p7316_p6 = scmp.lt.s32.totalorder %s7256_s30, %s7256_s30 }
  0x1b   :  { %s7311_s2 = scalar_lea.vmem %s7256_s30, 1024 }
  0x1c   :  { %p7312_p5 = scmp.ne.s32.totalorder %s7256_s30, %s7311_s2  ;;  %p7317_p7 = scmp.lt.s32.totalorder %s7311_s2, %s7311_s2 }
  0x1e   :  { %56 = vbcast.lane.b32.xlu1 %v50_v8, 264  ;;  %52 = vbcast.lane.b32.xlu0 %v50_v8, 256  ;;  %p7318_p8 = por %p7317_p7, %p7316_p6 }
  0x20   :  { %p7319_p9 = pnand %p7318_p8, %p7312_p5 }
  0x22   :  { %67 = vbcast.lane.b32.xlu1 %v7391_v10, 264  ;;  %63 = vbcast.lane.b32.xlu0 %v7391_v10, 256 }
  0x26   :  { %78 = vbcast.lane.b32.xlu1 %v7399_v12, 264  ;;  %74 = vbcast.lane.b32.xlu0 %v7399_v12, 256 }
  0x2a   :  { %89 = vbcast.lane.b32.xlu1 %v7407_v14, 264  ;;  %85 = vbcast.lane.b32.xlu0 %v7407_v14, 256 }
  0x2e   :  { %100 = vbcast.lane.b32.xlu1 %v7415_v16, 264  ;;  %96 = vbcast.lane.b32.xlu0 %v7415_v16, 256 }
  0x32   :  { %111 = vbcast.lane.b32.xlu1 %v7423_v18, 264  ;;  %107 = vbcast.lane.b32.xlu0 %v7423_v18, 256 }
  0x36   :  { %122 = vbcast.lane.b32.xlu1 %v7428_v20, 264  ;;  %118 = vbcast.lane.b32.xlu0 %v7428_v20, 256 }
  0x3a   :  { %133 = vbcast.lane.b32.xlu1 %v7433_v21, 264  ;;  %129 = vbcast.lane.b32.xlu0 %v7433_v21, 256 }
  0x3e   :  { %144 = vbcast.lane.b32.xlu1 %v7438_v22, 264  ;;  %140 = vbcast.lane.b32.xlu0 %v7438_v22, 256 }
  0x42   :  { %155 = vbcast.lane.b32.xlu1 %v7443_v23, 264  ;;  %151 = vbcast.lane.b32.xlu0 %v7443_v23, 256 }
  0x46   :  { %166 = vbcast.lane.b32.xlu1 %v7448_v24, 264  ;;  %162 = vbcast.lane.b32.xlu0 %v7448_v24, 256 }
  0x4a   :  { %177 = vbcast.lane.b32.xlu1 %v7453_v25, 264  ;;  %173 = vbcast.lane.b32.xlu0 %v7453_v25, 256 }
  0x4e   :  { %188 = vbcast.lane.b32.xlu1 %v7458_v26, 264  ;;  %184 = vbcast.lane.b32.xlu0 %v7458_v26, 256 }
  0x52   :  { %199 = vbcast.lane.b32.xlu1 %v7463_v27, 264  ;;  %195 = vbcast.lane.b32.xlu0 %v7463_v27, 256 }
  0x56   :  { %932 = vbcast.lane.b32.xlu0 %v28_v6, 272  ;;  %936 = vbcast.lane.b32.xlu1 %v28_v6, 280 }
  0x5a   :  { %944 = vbcast.lane.b32.xlu0 %v39_v5, 272  ;;  %948 = vbcast.lane.b32.xlu1 %v39_v5, 280 }
  0x5e   :  { %956 = vbcast.lane.b32.xlu0 %v50_v8, 272  ;;  %960 = vbcast.lane.b32.xlu1 %v50_v8, 280 }
  0x88   :  { %v42_v28 = vpop.permute.xlu1 %41  ;;  %v31_v29 = vpop.permute.xlu0 %30 }
  0x8c   :  { %v7467_v30 = vpop.permute.xlu1 %45  ;;  %v7469_v31 = vpop.permute.xlu0 %34 }
  0x90   :  { %v7471_v32 = vpop.permute.xlu1 %56  ;;  %v53_v33 = vpop.permute.xlu0 %52 }
  0x91   :  { %v201_v49 = vcombine.low %v31_v29, %v53_v33  ;;  %v202_v39 = vcombine.high %v31_v29, %v53_v33 }
  0x93   :  { %v209_v55 = vrot.slane %v201_v49, %v7482_v48  ;;  %v216_v33 = vrot.slane %v202_v39, %v7482_v48 }
  0x94   :  { %v7473_v34 = vpop.permute.xlu1 %67  ;;  %v64_v35 = vpop.permute.xlu0 %63 }
  0x95   :  { %v217_v45 = vcombine.low %v42_v28, %v64_v35  ;;  %v218_v4 = vcombine.high %v42_v28, %v64_v35 }
  0x97   :  { %v225_v51 = vrot.slane %v217_v45, %v7482_v48  ;;  %v232_v35 = vrot.slane %v218_v4, %v7482_v48 }
  0x98   :  { %v7475_v36 = vpop.permute.xlu1 %78  ;;  %v75_v37 = vpop.permute.xlu0 %74 }
  0x99   :  { %v265_v59 = vcombine.low %v209_v55, %v225_v51  ;;  %v266_v5 = vcombine.high %v209_v55, %v225_v51  ;;  %v281_v51 = vcombine.low %v216_v33, %v232_v35  ;;  %v282_v4 = vcombine.high %v216_v33, %v232_v35 }
  0x9b   :  { %v7498_v19 = vrot.slane %v265_v59, %v7490_v58  ;;  %v280_v44 = vrot.slane %v266_v5, %v7490_v58  ;;  %v289_v55 = vrot.slane %v281_v51, %v7490_v58  ;;  %v296_v33 = vrot.slane %v282_v4, %v7490_v58 }
  0x9c   :  { %v7477_v40 = vpop.permute.xlu1 %89  ;;  %v86_v41 = vpop.permute.xlu0 %85 }
  0xa0   :  { %v97_v46 = vpop.permute.xlu0 %96  ;;  %v7479_v47 = vpop.permute.xlu1 %100 }
  0xa1   :  { %v233_v52 = vcombine.low %v75_v37, %v97_v46  ;;  %v234_v6 = vcombine.high %v75_v37, %v97_v46  ;;  %v505_v59 = vcombine.low %v7475_v36, %v7479_v47 }
  0xa3   :  { %v241_v60 = vrot.slane %v233_v52, %v7482_v48  ;;  %v248_v37 = vrot.slane %v234_v6, %v7482_v48  ;;  %v473_v6 = vcombine.low %v7469_v31, %v7471_v32  ;;  %v513_v39 = vrot.slane %v505_v59, %v7482_v48 }
  0xa4   :  { %v108_v53 = vpop.permute.xlu0 %107  ;;  %v7486_v56 = vpop.permute.xlu1 %111 }
  0xa5   :  { %v249_v54 = vcombine.low %v86_v41, %v108_v53  ;;  %v250_v62 = vcombine.high %v86_v41, %v108_v53  ;;  %v522_v13 = vcombine.high %v7477_v40, %v7486_v56 }
  0xa7   :  { %v257_v57 = vrot.slane %v249_v54, %v7482_v48  ;;  %v264_v42 = vrot.slane %v250_v62, %v7482_v48 }
  0xa8   :  { %v7493_v61 = vpop.permute.xlu0 %118  ;;  %v7503_v1 = vpop.permute.xlu1 %122 }
  0xa9   :  { %v297_v63 = vcombine.low %v241_v60, %v257_v57  ;;  %v298_v0 = vcombine.high %v241_v60, %v257_v57  ;;  %v313_v46 = vcombine.low %v248_v37, %v264_v42  ;;  %v521_v60 = vcombine.low %v7477_v40, %v7486_v56 }
  0xaa   :  { %v314_v62 = vcombine.high %v248_v37, %v264_v42 }
  0xab   :  { %v7501_v38 = vrot.slane %v297_v63, %v7490_v58  ;;  %v312_v28 = vrot.slane %v298_v0, %v7490_v58  ;;  %v321_v53 = vrot.slane %v313_v46, %v7490_v58  ;;  %v489_v0 = vcombine.low %v7467_v30, %v7473_v34 }
  0xac   :  { %v7495_v8 = vpop.permute.xlu0 %129  ;;  %v7518_v49 = vpop.permute.xlu1 %133  ;;  %v481_v46 = vrot.slane %v473_v6, %v7482_v48 }
  0xad   :  { %v330_v41 = vcombine.high %v7498_v19, %v7501_v38  ;;  %v331_v45 = vcombine.low %v280_v44, %v312_v28  ;;  %v332_v52 = vcombine.high %v280_v44, %v312_v28  ;;  %v333_v63 = vcombine.low %v289_v55, %v321_v53 }
  0xae   :  { %v334_v28 = vcombine.high %v289_v55, %v321_v53  ;;  %v328_v44 = vrot.slane %v314_v62, %v7490_v58  ;;  %v497_v42 = vrot.slane %v489_v0, %v7482_v48 }
  0xaf   :  { %747 = vrot.lane.b32.xlu0 %v330_v41, %s7340_s0  ;;  %v529_v41 = vrot.slane %v521_v60, %v7482_v48 }
  0xb0   :  { %v7512_v43 = vpop.permute.xlu0 %140  ;;  %v7528_v57 = vpop.permute.xlu1 %144  ;;  %v335_v53 = vcombine.low %v296_v33, %v328_v44  ;;  %v537_v55 = vcombine.low %v481_v46, %v497_v42  ;;  %v336_v6 = vcombine.high %v296_v33, %v328_v44 }
  0xb1   :  { %v569_v51 = vcombine.low %v513_v39, %v529_v41  ;;  %v338_v56 = vcombine.high %v7493_v61, %v7512_v43 }
  0xb3   :  { %755 = vrot.lane.b32.xlu0 %v331_v45, %s7341_s13 }
  0xb4   :  { %v7521_v50 = vpop.permute.xlu0 %151  ;;  %v7542_v45 = vpop.permute.xlu1 %155 }
  0xb5   :  { %v353_v35 = vcombine.low %v7495_v8, %v7521_v50 }
  0xb7   :  { %763 = vrot.lane.b32.xlu0 %v332_v52, %s7342_s14  ;;  %v337_v52 = vcombine.low %v7493_v61, %v7512_v43  ;;  %v361_v59 = vrot.slane %v353_v35, %v7482_v48  ;;  %v545_v35 = vrot.slane %v537_v55, %v7490_v58  ;;  %v354_v55 = vcombine.high %v7495_v8, %v7521_v50 }
  0xb8   :  { %v7525_v54 = vpop.permute.xlu0 %162 }
  0xb9   :  { %v345_v4 = vrot.slane %v337_v52, %v7482_v48  ;;  %v570_v52 = vcombine.high %v513_v39, %v529_v41 }
  0xbb   :  { %771 = vrot.lane.b32.xlu0 %v333_v63, %s7337_s10  ;;  %v7555_v63 = vpop.permute.xlu1 %166  ;;  %v401_v17 = vcombine.low %v345_v4, %v361_v59 }
  0xbc   :  { %v174_v5 = vpop.permute.xlu0 %173 }
  0xbf   :  { %779 = vrot.lane.b32.xlu0 %v334_v28, %s7343_s15  ;;  %v577_v28 = vrot.slane %v569_v51, %v7490_v58  ;;  %v7573_v9 = vpop.permute.xlu1 %177 }
  0xc0   :  { %v185_v37 = vpop.permute.xlu0 %184 }
  0xc1   :  { %v369_v60 = vcombine.low %v7525_v54, %v185_v37  ;;  %v601_v11 = vcombine.low %v545_v35, %v577_v28  ;;  %v370_v40 = vcombine.high %v7525_v54, %v185_v37  ;;  %v368_v54 = vrot.slane %v354_v55, %v7482_v48 }
  0xc3   :  { %787 = vrot.lane.b32.xlu0 %v335_v53, %s7344_s16  ;;  %v377_v15 = vrot.slane %v369_v60, %v7482_v48  ;;  %v506_v53 = vcombine.high %v7475_v36, %v7479_v47  ;;  %v490_v60 = vcombine.high %v7467_v30, %v7473_v34  ;;  %v402_v36 = vcombine.high %v345_v4, %v361_v59  ;;  %v7600_v39 = vpop.permute.xlu1 %188 }
  0xc4   :  { %v196_v62 = vpop.permute.xlu0 %195  ;;  %v602_v34 = vcombine.high %v545_v35, %v577_v28  ;;  %v584_v47 = vrot.slane %v570_v52, %v7490_v58 }
  0xc5   :  { %v385_v0 = vcombine.low %v174_v5, %v196_v62  ;;  %v386_v44 = vcombine.high %v174_v5, %v196_v62  ;;  %v520_v30 = vrot.slane %v506_v53, %v7482_v48  ;;  %v416_v61 = vrot.slane %v402_v36, %v7490_v58 }
  0xc6   :  { %v641_v36 = vcombine.low %v7555_v63, %v7600_v39 }
  0xc7   :  { %v393_v29 = vrot.slane %v385_v0, %v7482_v48  ;;  %795 = vrot.lane.b32.xlu0 %v336_v6, %s7345_s17  ;;  %v474_v0 = vcombine.high %v7469_v31, %v7471_v32  ;;  %v538_v6 = vcombine.high %v481_v46, %v497_v42  ;;  %v536_v32 = vrot.slane %v522_v13, %v7482_v48 }
  0xc8   :  { %v400_v8 = vrot.slane %v386_v44, %v7482_v48  ;;  %v384_v13 = vrot.slane %v370_v40, %v7482_v48  ;;  %v352_v42 = vrot.slane %v338_v56, %v7482_v48  ;;  %v200_v44 = vpop.permute.xlu1 %199 }
  0xc9   :  { %v433_v33 = vcombine.low %v377_v15, %v393_v29  ;;  %v434_v51 = vcombine.high %v377_v15, %v393_v29  ;;  %v7578_v15 = vrot.slane %v401_v17, %v7490_v58  ;;  %v504_v29 = vrot.slane %v490_v60, %v7482_v48 }
  0xca   :  { %v552_v50 = vrot.slane %v538_v6, %v7490_v58  ;;  %v488_v43 = vrot.slane %v474_v0, %v7482_v48  ;;  %v585_v5 = vcombine.low %v520_v30, %v536_v32  ;;  %v449_v46 = vcombine.low %v384_v13, %v400_v8 }
  0xcb   :  { %803 = vrot.lane.b32.xlu0 %v601_v11, %s7346_s18  ;;  %v7581_v31 = vrot.slane %v433_v33, %v7490_v58  ;;  %v448_v17 = vrot.slane %v434_v51, %v7490_v58  ;;  %v417_v4 = vcombine.low %v352_v42, %v368_v54  ;;  %v586_v0 = vcombine.high %v520_v30, %v536_v32 }
  0xcc   :  { %v603_v41 = vcombine.low %v552_v50, %v584_v47  ;;  %v553_v62 = vcombine.low %v488_v43, %v504_v29  ;;  %v593_v28 = vrot.slane %v585_v5, %v7490_v58  ;;  %v604_v35 = vcombine.high %v552_v50, %v584_v47 }
  0xcd   :  { %v466_v11 = vcombine.high %v7578_v15, %v7581_v31  ;;  %v467_v37 = vcombine.low %v416_v61, %v448_v17  ;;  %v465_v59 = vcombine.low %v7578_v15, %v7581_v31  ;;  %v468_v53 = vcombine.high %v416_v61, %v448_v17 }
  0xce   :  { %v457_v52 = vrot.slane %v449_v46, %v7490_v58  ;;  %v561_v33 = vrot.slane %v553_v62, %v7490_v58  ;;  %v425_v51 = vrot.slane %v417_v4, %v7490_v58  ;;  %v609_v60 = vcombine.low %v7503_v1, %v7528_v57 }
  0xcf   :  { %811 = vrot.lane.b32.xlu0 %v602_v34, %s7347_s19  ;;  %749 = vrot.lane.b32.xlu1 %v466_v11, %s7340_s0  ;;  %v625_v6 = vcombine.low %v7518_v49, %v7542_v45  ;;  %v657_v40 = vcombine.low %v7573_v9, %v200_v44  ;;  %v450_v34 = vcombine.high %v384_v13, %v400_v8 }
  0xd0   :  { %v605_v55 = vcombine.low %v561_v33, %v593_v28  ;;  %v469_v47 = vcombine.low %v425_v51, %v457_v52  ;;  %v554_v56 = vcombine.high %v488_v43, %v504_v29  ;;  %v418_v11 = vcombine.high %v352_v42, %v368_v54 }
  0xd1   :  { %v617_v30 = vrot.slane %v609_v60, %v7482_v48  ;;  %v633_v32 = vrot.slane %v625_v6, %v7482_v48  ;;  %v606_v17 = vcombine.high %v561_v33, %v593_v28  ;;  %v600_v50 = vrot.slane %v586_v0, %v7490_v58 }
  0xd2   :  { %v649_v61 = vrot.slane %v641_v36, %v7482_v48  ;;  %v665_v5 = vrot.slane %v657_v40, %v7482_v48  ;;  %v470_v8 = vcombine.high %v425_v51, %v457_v52  ;;  %v464_v29 = vrot.slane %v450_v34, %v7490_v58 }
  0xd3   :  { %819 = vrot.lane.b32.xlu0 %v603_v41, %s7348_s20  ;;  %757 = vrot.lane.b32.xlu1 %v467_v37, %s7341_s13  ;;  %v568_v54 = vrot.slane %v554_v56, %v7490_v58  ;;  %v432_v13 = vrot.slane %v418_v11, %v7490_v58  ;;  %v673_v43 = vcombine.low %v617_v30, %v633_v32 }
  0xd4   :  { %v705_v41 = vcombine.low %v649_v61, %v665_v5  ;;  %v674_v52 = vcombine.high %v617_v30, %v633_v32  ;;  %v642_v33 = vcombine.high %v7555_v63, %v7600_v39  ;;  %v658_v51 = vcombine.high %v7573_v9, %v200_v44 }
  0xd5   :  { %v607_v42 = vcombine.low %v568_v54, %v600_v50  ;;  %v471_v37 = vcombine.low %v432_v13, %v464_v29  ;;  %v608_v46 = vcombine.high %v568_v54, %v600_v50  ;;  %v472_v62 = vcombine.high %v432_v13, %v464_v29 }
  0xd6   :  { %v681_v4 = vrot.slane %v673_v43, %v7490_v58  ;;  %v713_v28 = vrot.slane %v705_v41, %v7490_v58  ;;  %v706_v0 = vcombine.high %v649_v61, %v665_v5  ;;  %v7675_v5 = vpop.permute.xlu0 %932 }
  0xd7   :  { %827 = vrot.lane.b32.xlu0 %v604_v35, %s7349_s21  ;;  %765 = vrot.lane.b32.xlu1 %v468_v53, %s7342_s14  ;;  %v610_v35 = vcombine.high %v7503_v1, %v7528_v57  ;;  %v626_v53 = vcombine.high %v7518_v49, %v7542_v45  ;;  %v688_v1 = vrot.slane %v674_v52, %v7490_v58 }
  0xd8   :  { %v737_v60 = vcombine.low %v681_v4, %v713_v28  ;;  %v656_v49 = vrot.slane %v642_v33, %v7482_v48  ;;  %v672_v57 = vrot.slane %v658_v51, %v7482_v48  ;;  %v738_v45 = vcombine.high %v681_v4, %v713_v28 }
  0xd9   :  { %v624_v6 = vrot.slane %v610_v35, %v7482_v48  ;;  %v720_v63 = vrot.slane %v706_v0, %v7490_v58 }
  0xda   :  { %v721_v39 = vcombine.low %v656_v49, %v672_v57  ;;  %v722_v56 = vcombine.high %v656_v49, %v672_v57 }
  0xdb   :  { %835 = vrot.lane.b32.xlu0 %v605_v55, %s7350_s22  ;;  %773 = vrot.lane.b32.xlu1 %v469_v47, %s7337_s10  ;;  %v640_v55 = vrot.slane %v626_v53, %v7482_v48  ;;  %v739_v44 = vcombine.low %v688_v1, %v720_v63  ;;  %v740_v36 = vcombine.high %v688_v1, %v720_v63 }
  0xdc   :  { %v729_v34 = vrot.slane %v721_v39, %v7490_v58 }
  0xdd   :  { %v689_v9 = vcombine.low %v624_v6, %v640_v55  ;;  %v690_v47 = vcombine.high %v624_v6, %v640_v55 }
  0xdf   :  { %843 = vrot.lane.b32.xlu0 %v606_v17, %s7351_s23  ;;  %781 = vrot.lane.b32.xlu1 %v470_v8, %s7343_s15  ;;  %v697_v40 = vrot.slane %v689_v9, %v7490_v58  ;;  %v704_v32 = vrot.slane %v690_v47, %v7490_v58  ;;  %v736_v17 = vrot.slane %v722_v56, %v7490_v58  ;;  %v7679_v8 = vpop.permute.xlu0 %944 }
  0xe1   :  { %v741_v11 = vcombine.low %v697_v40, %v729_v34  ;;  %v742_v30 = vcombine.high %v697_v40, %v729_v34  ;;  %v743_v50 = vcombine.low %v704_v32, %v736_v17  ;;  %v744_v61 = vcombine.high %v704_v32, %v736_v17 }
  0xe3   :  { %851 = vrot.lane.b32.xlu0 %v607_v42, %s7352_s24  ;;  %789 = vrot.lane.b32.xlu1 %v471_v37, %s7344_s16 }
  0xe7   :  { %859 = vrot.lane.b32.xlu0 %v608_v46, %s7353_s25  ;;  %797 = vrot.lane.b32.xlu1 %v472_v62, %s7345_s17 }
  0xeb   :  { %968 = vbcast.lane.b32.xlu0 %v7391_v10, 272  ;;  %805 = vrot.lane.b32.xlu1 %v737_v60, %s7346_s18 }
  0xef   :  { %980 = vbcast.lane.b32.xlu0 %v7399_v12, 272  ;;  %813 = vrot.lane.b32.xlu1 %v738_v45, %s7347_s19 }
  0xf3   :  { %992 = vbcast.lane.b32.xlu0 %v7407_v14, 272  ;;  %821 = vrot.lane.b32.xlu1 %v739_v44, %s7348_s20 }
  0xf7   :  { %1004 = vbcast.lane.b32.xlu0 %v7415_v16, 272  ;;  %829 = vrot.lane.b32.xlu1 %v740_v36, %s7349_s21 }
  0xfb   :  { %1016 = vbcast.lane.b32.xlu0 %v7423_v18, 272  ;;  %837 = vrot.lane.b32.xlu1 %v741_v11, %s7350_s22 }
  0xff   :  { %1028 = vbcast.lane.b32.xlu0 %v7428_v20, 272  ;;  %845 = vrot.lane.b32.xlu1 %v742_v30, %s7351_s23 }
 0x103   :  { %1040 = vbcast.lane.b32.xlu0 %v7433_v21, 272  ;;  %853 = vrot.lane.b32.xlu1 %v743_v50, %s7352_s24 }
 0x107   :  { %1052 = vbcast.lane.b32.xlu0 %v7438_v22, 272  ;;  %861 = vrot.lane.b32.xlu1 %v744_v61, %s7353_s25 }
 0x10b   :  { %1064 = vbcast.lane.b32.xlu0 %v7443_v23, 272  ;;  %972 = vbcast.lane.b32.xlu1 %v7391_v10, 280  ;;  %v7685_v10 = vpop.permute.xlu0 %956 }
 0x10c   :  { %v1118_v17 = vcombine.low %v7675_v5, %v7685_v10 }
 0x10f   :  { %1076 = vbcast.lane.b32.xlu0 %v7448_v24, 272  ;;  %984 = vbcast.lane.b32.xlu1 %v7399_v12, 280 }
 0x113   :  { %1088 = vbcast.lane.b32.xlu0 %v7453_v25, 272  ;;  %996 = vbcast.lane.b32.xlu1 %v7407_v14, 280 }
 0x117   :  { %1100 = vbcast.lane.b32.xlu0 %v7458_v26, 272  ;;  %1008 = vbcast.lane.b32.xlu1 %v7415_v16, 280  ;;  %v7692_v16 = vpop.permute.xlu1 %936 }
 0x11b   :  { %1112 = vbcast.lane.b32.xlu0 %v7463_v27, 272  ;;  %1020 = vbcast.lane.b32.xlu1 %v7423_v18, 280  ;;  %v7695_v43 = vpop.permute.xlu1 %948 }
 0x11f   :  { %1032 = vbcast.lane.b32.xlu1 %v7428_v20, 280 }
 0x121   :  { %v748_v12 = vpop.permute.xlu0 %747 }
 0x123   :  { %1044 = vbcast.lane.b32.xlu1 %v7433_v21, 280  ;;  %v7699_v21 = vpop.permute.xlu1 %960 }
 0x125   :  { %v756_v29 = vpop.permute.xlu0 %755 }
 0x127   :  { %1056 = vbcast.lane.b32.xlu1 %v7438_v22, 280 }
 0x129   :  { %v764_v14 = vpop.permute.xlu0 %763 }
 0x12b   :  { %1068 = vbcast.lane.b32.xlu1 %v7443_v23, 280 }
 0x12d   :  { %v772_v54 = vpop.permute.xlu0 %771 }
 0x12f   :  { %1080 = vbcast.lane.b32.xlu1 %v7448_v24, 280 }
 0x131   :  { %v780_v13 = vpop.permute.xlu0 %779 }
 0x133   :  { %1092 = vbcast.lane.b32.xlu1 %v7453_v25, 280  ;;  %v9953_v25 = vcombine.low %v7498_v19, %v7501_v38 }
 0x135   :  { %v788_v18 = vpop.permute.xlu0 %787 }
 0x137   :  { %1104 = vbcast.lane.b32.xlu1 %v7458_v26, 280  ;;  %v866_v26 = vsel %vm865_vm0, %v9953_v25, %v748_v12 }
 0x139   :  { %v796_v20 = vpop.permute.xlu0 %795 }
 0x13b   :  { %1116 = vbcast.lane.b32.xlu1 %v7463_v27, 280  ;;  %v869_v27 = vsel %vm868_vm1, %v866_v26, %v756_v29 }
 0x13c   :  { %v872_v28 = vsel %vm871_vm2, %v869_v27, %v764_v14 }
 0x13d   :  { %v804_v22 = vpop.permute.xlu0 %803  ;;  %v875_v35 = vsel %vm874_vm3, %v872_v28, %v772_v54 }
 0x13e   :  { %v878_v53 = vsel %vm877_vm4, %v875_v35, %v780_v13  ;;  %v1126_v13 = vrot.slane %v1118_v17, %v7482_v48 }
 0x13f   :  { %v881_v52 = vsel %vm880_vm5, %v878_v53, %v788_v18 }
 0x140   :  { %v884_v33 = vsel %vm883_vm6, %v881_v52, %v796_v20 }
 0x141   :  { %v750_v23 = vpop.permute.xlu1 %749  ;;  %v812_v41 = vpop.permute.xlu0 %811  ;;  %v887_v51 = vsel %vm886_vm7, %v884_v33, %v804_v22 }
 0x142   :  { %v890_v0 = vsel %vm889_vm8, %v887_v51, %v812_v41  ;;  %v867_v50 = vsel %vm865_vm0, %v465_v59, %v750_v23 }
 0x145   :  { %v758_v42 = vpop.permute.xlu1 %757  ;;  %v820_v24 = vpop.permute.xlu0 %819 }
 0x146   :  { %v893_v60 = vsel %vm892_vm9, %v890_v0, %v820_v24  ;;  %v870_v29 = vsel %vm868_vm1, %v867_v50, %v758_v42 }
 0x149   :  { %v766_v37 = vpop.permute.xlu1 %765  ;;  %v828_v46 = vpop.permute.xlu0 %827 }
 0x14a   :  { %v896_v1 = vsel %vm895_vm10, %v893_v60, %v828_v46  ;;  %v873_v18 = vsel %vm871_vm2, %v870_v29, %v766_v37 }
 0x14d   :  { %v774_v62 = vpop.permute.xlu1 %773  ;;  %v836_v4 = vpop.permute.xlu0 %835 }
 0x14e   :  { %v899_v49 = vsel %vm898_vm11, %v896_v1, %v836_v4  ;;  %v876_v22 = vsel %vm874_vm3, %v873_v18, %v774_v62 }
 0x151   :  { %v782_v19 = vpop.permute.xlu1 %781  ;;  %v844_v38 = vpop.permute.xlu0 %843 }
 0x152   :  { %v902_v57 = vsel %vm901_vm12, %v899_v49, %v844_v38  ;;  %v879_v41 = vsel %vm877_vm4, %v876_v22, %v782_v19  ;;  %v1119_v19 = vcombine.high %v7675_v5, %v7685_v10 }
 0x155   :  { %v790_v6 = vpop.permute.xlu1 %789  ;;  %v852_v55 = vpop.permute.xlu0 %851 }
 0x156   :  { %v905_v45 = vsel %vm9932_vm13, %v902_v57, %v852_v55  ;;  %v882_v59 = vsel %vm880_vm5, %v879_v41, %v790_v6 }
 0x159   :  { %v798_v63 = vpop.permute.xlu1 %797  ;;  %v860_v9 = vpop.permute.xlu0 %859 }
 0x15a   :  { %v7719_v39 = vsel %vm9926_vm14, %v905_v45, %v860_v9  ;;  %v885_v46 = vsel %vm883_vm6, %v882_v59, %v798_v63  ;;  %v1390_v59 = vcombine.low %v7692_v16, %v7699_v21 }
 0x15b   :  { %911 = vst.msk [vmem:[#allocation5] sm:$0xff] %vm9924_vm15, %v7719_v39 }
 0x15d   :  { %v806_v44 = vpop.permute.xlu1 %805  ;;  %v969_v36 = vpop.permute.xlu0 %968 }
 0x15e   :  { %v1134_v11 = vcombine.low %v7679_v8, %v969_v36  ;;  %v888_v27 = vsel %vm886_vm7, %v885_v46, %v806_v44  ;;  %v1135_v62 = vcombine.high %v7679_v8, %v969_v36  ;;  %v1133_v44 = vrot.slane %v1119_v19, %v7482_v48 }
 0x160   :  { %v1142_v61 = vrot.slane %v1134_v11, %v7482_v48  ;;  %v1149_v55 = vrot.slane %v1135_v62, %v7482_v48 }
 0x161   :  { %v814_v40 = vpop.permute.xlu1 %813  ;;  %v981_v34 = vpop.permute.xlu0 %980 }
 0x162   :  { %v1182_v24 = vcombine.low %v1126_v13, %v1142_v61  ;;  %v1183_v4 = vcombine.high %v1126_v13, %v1142_v61  ;;  %v891_v28 = vsel %vm889_vm8, %v888_v27, %v814_v40 }
 0x164   :  { %v7746_v53 = vrot.slane %v1182_v24, %v7490_v58  ;;  %v1197_v49 = vrot.slane %v1183_v4, %v7490_v58 }
 0x165   :  { %v822_v47 = vpop.permute.xlu1 %821  ;;  %v993_v56 = vpop.permute.xlu0 %992 }
 0x166   :  { %v894_v38 = vsel %vm892_vm9, %v891_v28, %v822_v47  ;;  %v1198_v47 = vcombine.low %v1133_v44, %v1149_v55  ;;  %v1398_v28 = vrot.slane %v1390_v59, %v7482_v48 }
 0x168   :  { %v1206_v17 = vrot.slane %v1198_v47, %v7490_v58 }
 0x169   :  { %v830_v30 = vpop.permute.xlu1 %829  ;;  %v1005_v32 = vpop.permute.xlu0 %1004 }
 0x16a   :  { %v1150_v12 = vcombine.low %v981_v34, %v1005_v32  ;;  %v1151_v35 = vcombine.high %v981_v34, %v1005_v32  ;;  %v897_v8 = vsel %vm895_vm10, %v894_v38, %v830_v30 }
 0x16c   :  { %v1158_v15 = vrot.slane %v1150_v12, %v7482_v48  ;;  %v1165_v5 = vrot.slane %v1151_v35, %v7482_v48 }
 0x16d   :  { %v838_v14 = vpop.permute.xlu1 %837  ;;  %v1017_v54 = vpop.permute.xlu0 %1016 }
 0x16e   :  { %v1166_v20 = vcombine.low %v993_v56, %v1017_v54  ;;  %v1167_v25 = vcombine.high %v993_v56, %v1017_v54  ;;  %v900_v1 = vsel %vm898_vm11, %v897_v8, %v838_v14  ;;  %v1199_v14 = vcombine.high %v1133_v44, %v1149_v55 }
 0x170   :  { %v1174_v31 = vrot.slane %v1166_v20, %v7482_v48  ;;  %v1181_v0 = vrot.slane %v1167_v25, %v7482_v48  ;;  %v1213_v41 = vrot.slane %v1199_v14, %v7490_v58 }
 0x171   :  { %v846_v23 = vpop.permute.xlu1 %845  ;;  %v7739_v42 = vpop.permute.xlu0 %1028 }
 0x172   :  { %v1214_v26 = vcombine.low %v1158_v15, %v1174_v31  ;;  %v1215_v37 = vcombine.high %v1158_v15, %v1174_v31  ;;  %v903_v10 = vsel %vm901_vm12, %v900_v1, %v846_v23  ;;  %v1230_v36 = vcombine.low %v1165_v5, %v1181_v0 }
 0x173   :  { %v1231_v12 = vcombine.high %v1165_v5, %v1181_v0 }
 0x174   :  { %v7749_v52 = vrot.slane %v1214_v26, %v7490_v58  ;;  %v1229_v6 = vrot.slane %v1215_v37, %v7490_v58  ;;  %v1238_v32 = vrot.slane %v1230_v36, %v7490_v58 }
 0x175   :  { %v854_v33 = vpop.permute.xlu1 %853  ;;  %v7754_v51 = vpop.permute.xlu0 %1040  ;;  %v1245_v20 = vrot.slane %v1231_v12, %v7490_v58 }
 0x176   :  { %v1247_v60 = vcombine.high %v7746_v53, %v7749_v52  ;;  %v1246_v57 = vcombine.low %v7746_v53, %v7749_v52  ;;  %v906_v45 = vsel %vm9932_vm13, %v903_v10, %v854_v33  ;;  %v1248_v34 = vcombine.low %v1197_v49, %v1229_v6 }
 0x177   :  { %v1249_v30 = vcombine.high %v1197_v49, %v1229_v6  ;;  %v1250_v29 = vcombine.low %v1206_v17, %v1238_v32  ;;  %v1251_v18 = vcombine.high %v1206_v17, %v1238_v32  ;;  %v1252_v23 = vcombine.low %v1213_v41, %v1245_v20 }
 0x178   :  { %1664 = vrot.lane.b32.xlu0 %v1247_v60, %s7340_s0  ;;  %v1253_v38 = vcombine.high %v1213_v41, %v1245_v20 }
 0x179   :  { %v862_v63 = vpop.permute.xlu1 %861  ;;  %v7770_v9 = vpop.permute.xlu0 %1052 }
 0x17a   :  { %v7774_v40 = vsel %vm9926_vm14, %v906_v45, %v862_v63  ;;  %v1254_v46 = vcombine.low %v7739_v42, %v7770_v9 }
 0x17b   :  { %912 = vst.msk [vmem:[#allocation5 + $0x20] sm:$0xff] %vm9924_vm15, %v7774_v40  ;;  %vm9925_vm15 = vcmask 523520  }
 0x17c   :  { %1672 = vrot.lane.b32.xlu0 %v1248_v34, %s7341_s13  ;;  %v1262_v33 = vrot.slane %v1254_v46, %v7482_v48 }
 0x17d   :  { %v7779_v56 = vpop.permute.xlu1 %972  ;;  %v7781_v11 = vpop.permute.xlu0 %1064 }
 0x17e   :  { %v1406_v22 = vcombine.low %v7695_v43, %v7779_v56  ;;  %v1270_v24 = vcombine.low %v7754_v51, %v7781_v11  ;;  %v1271_v44 = vcombine.high %v7754_v51, %v7781_v11  ;;  %v1255_v51 = vcombine.high %v7739_v42, %v7770_v9 }
 0x17f   :  { %v1407_v20 = vcombine.high %v7695_v43, %v7779_v56  ;;  %v1391_v43 = vcombine.high %v7692_v16, %v7699_v21 }
 0x180   :  { %1680 = vrot.lane.b32.xlu0 %v1249_v30, %s7342_s14  ;;  %v1414_v25 = vrot.slane %v1406_v22, %v7482_v48  ;;  %v1278_v37 = vrot.slane %v1270_v24, %v7482_v48  ;;  %v1269_v59 = vrot.slane %v1255_v51, %v7482_v48 }
 0x181   :  { %v7786_v50 = vpop.permute.xlu1 %984  ;;  %v7788_v61 = vpop.permute.xlu0 %1076  ;;  %v1405_v21 = vrot.slane %v1391_v43, %v7482_v48 }
 0x182   :  { %v1454_v8 = vcombine.low %v1398_v28, %v1414_v25  ;;  %v1318_v55 = vcombine.low %v1262_v33, %v1278_v37  ;;  %v1319_v47 = vcombine.high %v1262_v33, %v1278_v37  ;;  %v1455_v22 = vcombine.high %v1398_v28, %v1414_v25 }
 0x183   :  { %v1421_v25 = vrot.slane %v1407_v20, %v7482_v48 }
 0x184   :  { %1688 = vrot.lane.b32.xlu0 %v1250_v29, %s7337_s10  ;;  %v1462_v36 = vrot.slane %v1454_v8, %v7490_v58  ;;  %v7830_v17 = vrot.slane %v1318_v55, %v7490_v58  ;;  %v1333_v24 = vrot.slane %v1319_v47, %v7490_v58  ;;  %v1469_v37 = vrot.slane %v1455_v22, %v7490_v58 }
 0x185   :  { %v7791_v54 = vpop.permute.xlu1 %996  ;;  %v1089_v13 = vpop.permute.xlu0 %1088 }
 0x188   :  { %1696 = vrot.lane.b32.xlu0 %v1251_v18, %s7343_s15 }
 0x189   :  { %v7800_v15 = vpop.permute.xlu1 %1008  ;;  %v1101_v31 = vpop.permute.xlu0 %1100 }
 0x18a   :  { %v1422_v26 = vcombine.low %v7786_v50, %v7800_v15  ;;  %v1286_v27 = vcombine.low %v7788_v61, %v1101_v31  ;;  %v1287_v30 = vcombine.high %v7788_v61, %v1101_v31  ;;  %v1423_v41 = vcombine.high %v7786_v50, %v7800_v15 }
 0x18c   :  { %1704 = vrot.lane.b32.xlu0 %v1252_v23, %s7344_s16  ;;  %v1430_v0 = vrot.slane %v1422_v26, %v7482_v48  ;;  %v1294_v1 = vrot.slane %v1286_v27, %v7482_v48  ;;  %v1301_v42 = vrot.slane %v1287_v30, %v7482_v48  ;;  %v1437_v26 = vrot.slane %v1423_v41, %v7482_v48 }
 0x18d   :  { %v1021_v62 = vpop.permute.xlu1 %1020  ;;  %v1113_v4 = vpop.permute.xlu0 %1112 }
 0x18e   :  { %v1438_v35 = vcombine.low %v7791_v54, %v1021_v62  ;;  %v1302_v19 = vcombine.low %v1089_v13, %v1113_v4  ;;  %v1303_v49 = vcombine.high %v1089_v13, %v1113_v4  ;;  %v1439_v29 = vcombine.high %v7791_v54, %v1021_v62 }
 0x18f   :  { %v1285_v54 = vrot.slane %v1271_v44, %v7482_v48 }
 0x190   :  { %v1446_v60 = vrot.slane %v1438_v35, %v7482_v48  ;;  %v1310_v6 = vrot.slane %v1302_v19, %v7482_v48  ;;  %1712 = vrot.lane.b32.xlu0 %v1253_v38, %s7345_s17  ;;  %v1317_v11 = vrot.slane %v1303_v49, %v7482_v48  ;;  %v1453_v56 = vrot.slane %v1439_v29, %v7482_v48 }
 0x191   :  { %v7820_v5 = vpop.permute.xlu1 %1032  ;;  %v1334_v27 = vcombine.low %v1269_v59, %v1285_v54  ;;  %v1470_v19 = vcombine.low %v1405_v21, %v1421_v25 }
 0x192   :  { %v1486_v10 = vcombine.low %v1430_v0, %v1446_v60  ;;  %v1350_v45 = vcombine.low %v1294_v1, %v1310_v6  ;;  %v1351_v63 = vcombine.high %v1294_v1, %v1310_v6  ;;  %v1487_v14 = vcombine.high %v1430_v0, %v1446_v60 }
 0x193   :  { %v1366_v23 = vcombine.low %v1301_v42, %v1317_v11  ;;  %v1502_v62 = vcombine.low %v1437_v26, %v1453_v56  ;;  %v1342_v33 = vrot.slane %v1334_v27, %v7490_v58  ;;  %v1367_v60 = vcombine.high %v1301_v42, %v1317_v11 }
 0x194   :  { %v1494_v34 = vrot.slane %v1486_v10, %v7490_v58  ;;  %v7833_v12 = vrot.slane %v1350_v45, %v7490_v58  ;;  %v1365_v18 = vrot.slane %v1351_v63, %v7490_v58  ;;  %v1501_v15 = vrot.slane %v1487_v14, %v7490_v58 }
 0x195   :  { %v7827_v32 = vpop.permute.xlu1 %1044  ;;  %v1374_v35 = vrot.slane %v1366_v23, %v7490_v58  ;;  %v1510_v0 = vrot.slane %v1502_v62, %v7490_v58  ;;  %v1478_v55 = vrot.slane %v1470_v19, %v7490_v58  ;;  %v1335_v1 = vcombine.high %v1269_v59, %v1285_v54 }
 0x196   :  { %v1518_v13 = vcombine.low %v1462_v36, %v1494_v34  ;;  %v1383_v61 = vcombine.high %v7830_v17, %v7833_v12  ;;  %v1382_v31 = vcombine.low %v7830_v17, %v7833_v12  ;;  %v1519_v50 = vcombine.high %v1462_v36, %v1494_v34 }
 0x197   :  { %v1384_v46 = vcombine.low %v1333_v24, %v1365_v18  ;;  %v1520_v4 = vcombine.low %v1469_v37, %v1501_v15  ;;  %v1385_v28 = vcombine.high %v1333_v24, %v1365_v18  ;;  %v1521_v8 = vcombine.high %v1469_v37, %v1501_v15 }
 0x198   :  { %1720 = vrot.lane.b32.xlu0 %v1518_v13, %s7346_s18  ;;  %1666 = vrot.lane.b32.xlu1 %v1383_v61, %s7340_s0  ;;  %v1386_v6 = vcombine.low %v1342_v33, %v1374_v35  ;;  %v1503_v49 = vcombine.high %v1437_v26, %v1453_v56  ;;  %v1522_v45 = vcombine.low %v1478_v55, %v1510_v0 }
 0x199   :  { %v7850_v9 = vpop.permute.xlu1 %1056  ;;  %v1387_v63 = vcombine.high %v1342_v33, %v1374_v35  ;;  %v1381_v44 = vrot.slane %v1367_v60, %v7490_v58  ;;  %v1471_v36 = vcombine.high %v1405_v21, %v1421_v25  ;;  %v1349_v30 = vrot.slane %v1335_v1, %v7490_v58 }
 0x19a   :  { %v1526_v29 = vcombine.low %v7820_v5, %v7850_v9  ;;  %v1523_v14 = vcombine.high %v1478_v55, %v1510_v0  ;;  %v1517_v13 = vrot.slane %v1503_v49, %v7490_v58  ;;  %v1527_v35 = vcombine.high %v7820_v5, %v7850_v9 }
 0x19b   :  { %v1388_v51 = vcombine.low %v1349_v30, %v1381_v44  ;;  %v1485_v18 = vrot.slane %v1471_v36, %v7490_v58  ;;  %v1389_v42 = vcombine.high %v1349_v30, %v1381_v44 }
 0x19c   :  { %1728 = vrot.lane.b32.xlu0 %v1519_v50, %s7347_s19  ;;  %1674 = vrot.lane.b32.xlu1 %v1384_v46, %s7341_s13  ;;  %v1534_v22 = vrot.slane %v1526_v29, %v7482_v48  ;;  %v7894_v50 = vld [vmem:[#allocation2] sm:$0xff] }
 0x19d   :  { %v7865_v16 = vpop.permute.xlu1 %1068  ;;  %v1524_v54 = vcombine.low %v1485_v18, %v1517_v13  ;;  %v1525_v59 = vcombine.high %v1485_v18, %v1517_v13  ;;  %v7899_v23 = vrot.slane %v7894_v50, %v7379_v3  ;;  %v7905_v21 = vrot.slane %v7894_v50, %v7376_v2 }
 0x19e   :  { %v1542_v34 = vcombine.low %v7827_v32, %v7865_v16  ;;  %v1543_v62 = vcombine.high %v7827_v32, %v7865_v16  ;;  %v1541_v16 = vrot.slane %v1527_v35, %v7482_v48 }
 0x1a0   :  { %1736 = vrot.lane.b32.xlu0 %v1520_v4, %s7348_s20  ;;  %1682 = vrot.lane.b32.xlu1 %v1385_v28, %s7342_s14  ;;  %v1550_v11 = vrot.slane %v1542_v34, %v7482_v48  ;;  %v1557_v0 = vrot.slane %v1543_v62, %v7482_v48 }
 0x1a1   :  { %v1081_v38 = vpop.permute.xlu1 %1080 }
 0x1a2   :  { %v1590_v24 = vcombine.low %v1534_v22, %v1550_v11  ;;  %v1591_v4 = vcombine.high %v1534_v22, %v1550_v11  ;;  %v1606_v5 = vcombine.low %v1541_v16, %v1557_v0 }
 0x1a4   :  { %1744 = vrot.lane.b32.xlu0 %v1521_v8, %s7349_s21  ;;  %1690 = vrot.lane.b32.xlu1 %v1386_v6, %s7337_s10  ;;  %v1598_v46 = vrot.slane %v1590_v24, %v7490_v58  ;;  %v1605_v32 = vrot.slane %v1591_v4, %v7490_v58  ;;  %v1614_v1 = vrot.slane %v1606_v5, %v7490_v58 }
 0x1a5   :  { %v1093_v10 = vpop.permute.xlu1 %1092 }
 0x1a8   :  { %1752 = vrot.lane.b32.xlu0 %v1522_v45, %s7350_s22  ;;  %1698 = vrot.lane.b32.xlu1 %v1387_v63, %s7343_s15  ;;  %v1607_v45 = vcombine.high %v1541_v16, %v1557_v0 }
 0x1a9   :  { %v1105_v47 = vpop.permute.xlu1 %1104 }
 0x1aa   :  { %v1558_v61 = vcombine.low %v1081_v38, %v1105_v47  ;;  %v1559_v28 = vcombine.high %v1081_v38, %v1105_v47 }
 0x1ac   :  { %1760 = vrot.lane.b32.xlu0 %v1523_v14, %s7351_s23  ;;  %1706 = vrot.lane.b32.xlu1 %v1388_v51, %s7344_s16  ;;  %v1566_v43 = vrot.slane %v1558_v61, %v7482_v48  ;;  %v1573_v60 = vrot.slane %v1559_v28, %v7482_v48 }
 0x1ad   :  { %v1117_v20 = vpop.permute.xlu1 %1116 }
 0x1ae   :  { %v1574_v41 = vcombine.low %v1093_v10, %v1117_v20  ;;  %v1575_v26 = vcombine.high %v1093_v10, %v1117_v20 }
 0x1b0   :  { %v1582_v56 = vrot.slane %v1574_v41, %v7482_v48  ;;  %1768 = vrot.lane.b32.xlu0 %v1524_v54, %s7352_s24  ;;  %1714 = vrot.lane.b32.xlu1 %v1389_v42, %s7345_s17  ;;  %v1589_v19 = vrot.slane %v1575_v26, %v7482_v48 }
 0x1b2   :  { %v1622_v15 = vcombine.low %v1566_v43, %v1582_v56  ;;  %v1623_v37 = vcombine.high %v1566_v43, %v1582_v56  ;;  %v1638_v38 = vcombine.low %v1573_v60, %v1589_v19  ;;  %v1639_v10 = vcombine.high %v1573_v60, %v1589_v19 }
 0x1b4   :  { %1776 = vrot.lane.b32.xlu0 %v1525_v59, %s7353_s25  ;;  %v1630_v25 = vrot.slane %v1622_v15, %v7490_v58  ;;  %v1637_v8 = vrot.slane %v1623_v37, %v7490_v58  ;;  %v1646_v55 = vrot.slane %v1638_v38, %v7490_v58  ;;  %v1653_v44 = vrot.slane %v1639_v10, %v7490_v58 }
 0x1b5   :  { %v7961_v38 = vrot.slane %v7894_v50, %v7384_v7 }
 0x1b6   :  { %v1654_v27 = vcombine.low %v1598_v46, %v1630_v25  ;;  %v1655_v33 = vcombine.high %v1598_v46, %v1630_v25  ;;  %v1656_v6 = vcombine.low %v1605_v32, %v1637_v8  ;;  %v1657_v9 = vcombine.high %v1605_v32, %v1637_v8 }
 0x1b7   :  { %v1658_v49 = vcombine.low %v1614_v1, %v1646_v55  ;;  %v1659_v63 = vcombine.high %v1614_v1, %v1646_v55 }
 0x1b8   :  { %1840 = vbcast.lane.b32.xlu0 %v7899_v23, 288  ;;  %1722 = vrot.lane.b32.xlu1 %v1654_v27, %s7346_s18 }
 0x1bc   :  { %1852 = vbcast.lane.b32.xlu0 %v7905_v21, 288  ;;  %1730 = vrot.lane.b32.xlu1 %v1655_v33, %s7347_s19 }
 0x1c0   :  { %915 = vrot.lane.b32.xlu0 %v7719_v39, %s7354_s26  ;;  %1738 = vrot.lane.b32.xlu1 %v1656_v6, %s7348_s20  ;;  %v1621_v39 = vrot.slane %v1607_v45, %v7490_v58 }
 0x1c2   :  { %v1660_v36 = vcombine.low %v1621_v39, %v1653_v44  ;;  %v1661_v34 = vcombine.high %v1621_v39, %v1653_v44  ;;  %v9956_v44 = vld [vmem:[#allocation10_spill] sm:$0xff] }
 0x1c3   :  { %v7979_v39 = vrot.slane %v7894_v50, %v9956_v44 }
 0x1c4   :  { %1746 = vrot.lane.b32.xlu1 %v1657_v9, %s7349_s21  ;;  %v9954_v9 = vld [vmem:[#allocation8_spill] sm:$0xff] }
 0x1c5   :  { %v7968_v55 = vrot.slane %v7894_v50, %v9954_v9 }
 0x1c8   :  { %1754 = vrot.lane.b32.xlu1 %v1658_v49, %s7350_s22  ;;  %v9955_v49 = vld [vmem:[#allocation9_spill] sm:$0xff] }
 0x1c9   :  { %v7974_v45 = vrot.slane %v7894_v50, %v9955_v49 }
 0x1cc   :  { %1762 = vrot.lane.b32.xlu1 %v1659_v63, %s7351_s23 }
 0x1d0   :  { %1770 = vrot.lane.b32.xlu1 %v1660_v36, %s7352_s24 }
 0x1d4   :  { %1778 = vrot.lane.b32.xlu1 %v1661_v34, %s7353_s25 }
 0x1d8   :  { %1844 = vbcast.lane.b32.xlu1 %v7899_v23, 296 }
 0x1dc   :  { %1856 = vbcast.lane.b32.xlu1 %v7905_v21, 296 }
 0x1e0   :  { %917 = vrot.lane.b32.xlu1 %v7774_v40, %s7354_s26 }
 0x1ea   :  { %v1665_v47 = vpop.permute.xlu0 %1664 }
 0x1eb   :  { %v1782_v40 = vsel %vm865_vm0, %v1246_v57, %v1665_v47 }
 0x1ee   :  { %v1673_v30 = vpop.permute.xlu0 %1672 }
 0x1ef   :  { %v1784_v43 = vsel %vm868_vm1, %v1782_v40, %v1673_v30 }
 0x1f2   :  { %v1681_v29 = vpop.permute.xlu0 %1680 }
 0x1f3   :  { %v1786_v15 = vsel %vm871_vm2, %v1784_v43, %v1681_v29 }
 0x1f6   :  { %v1689_v14 = vpop.permute.xlu0 %1688 }
 0x1f7   :  { %v1788_v46 = vsel %vm874_vm3, %v1786_v15, %v1689_v14  ;;  %v9957_v14 = vld [vmem:[#allocation11_spill] sm:$0xff] }
 0x1fa   :  { %v1697_v13 = vpop.permute.xlu0 %1696 }
 0x1fb   :  { %v1790_v25 = vsel %vm877_vm4, %v1788_v46, %v1697_v13  ;;  %v7991_v13 = vrot.slane %v7894_v50, %v9957_v14 }
 0x1fe   :  { %v1705_v51 = vpop.permute.xlu0 %1704 }
 0x1ff   :  { %v1792_v26 = vsel %vm880_vm5, %v1790_v25, %v1705_v51 }
 0x202   :  { %v1713_v11 = vpop.permute.xlu0 %1712 }
 0x203   :  { %v1794_v27 = vsel %vm883_vm6, %v1792_v26, %v1713_v11 }
 0x20a   :  { %v1721_v61 = vpop.permute.xlu0 %1720  ;;  %v1667_v18 = vpop.permute.xlu1 %1666 }
 0x20b   :  { %v1796_v62 = vsel %vm886_vm7, %v1794_v27, %v1721_v61  ;;  %v1783_v36 = vsel %vm865_vm0, %v1382_v31, %v1667_v18  ;;  %v9958_v61 = vld [vmem:[#allocation12_spill] sm:$0xff] }
 0x20c   :  { %v8000_v18 = vrot.slane %v7894_v50, %v9958_v61 }
 0x20e   :  { %v1729_v20 = vpop.permute.xlu0 %1728  ;;  %v1675_v22 = vpop.permute.xlu1 %1674 }
 0x20f   :  { %v1798_v52 = vsel %vm889_vm8, %v1796_v62, %v1729_v20  ;;  %v1785_v34 = vsel %vm868_vm1, %v1783_v36, %v1675_v22  ;;  %v1833_v22 = vld [vmem:[#allocation2 + $0x8] sm:$0xff] }
 0x210   :  { %v8008_v40 = vrot.slane %v1833_v22, %v7379_v3  ;;  %v8023_v25 = vrot.slane %v1833_v22, %v7384_v7  ;;  %v8036_v62 = vrot.slane %v1833_v22, %v9955_v49 }
 0x212   :  { %v1737_v41 = vpop.permute.xlu0 %1736  ;;  %v1683_v54 = vpop.permute.xlu1 %1682 }
 0x213   :  { %v1800_v57 = vsel %vm892_vm9, %v1798_v52, %v1737_v41  ;;  %v1787_v30 = vsel %vm871_vm2, %v1785_v34, %v1683_v54  ;;  %v8046_v52 = vrot.slane %v1833_v22, %v9957_v14 }
 0x216   :  { %v1745_v42 = vpop.permute.xlu0 %1744  ;;  %v1691_v24 = vpop.permute.xlu1 %1690 }
 0x217   :  { %v1802_v28 = vsel %vm895_vm10, %v1800_v57, %v1745_v42  ;;  %v1789_v29 = vsel %vm874_vm3, %v1787_v30, %v1691_v24  ;;  %v8051_v57 = vrot.slane %v1833_v22, %v9958_v61 }
 0x21a   :  { %v1753_v56 = vpop.permute.xlu0 %1752  ;;  %v1699_v59 = vpop.permute.xlu1 %1698 }
 0x21b   :  { %v1804_v35 = vsel %vm898_vm11, %v1802_v28, %v1753_v56  ;;  %v1791_v51 = vsel %vm877_vm4, %v1789_v29, %v1699_v59  ;;  %v8016_v59 = vrot.slane %v1833_v22, %v7376_v2 }
 0x21e   :  { %v1761_v37 = vpop.permute.xlu0 %1760  ;;  %v1707_v53 = vpop.permute.xlu1 %1706 }
 0x21f   :  { %v1806_v19 = vsel %vm901_vm12, %v1804_v35, %v1761_v37  ;;  %v1793_v11 = vsel %vm880_vm5, %v1791_v51, %v1707_v53  ;;  %v8030_v37 = vrot.slane %v1833_v22, %v9954_v9  ;;  %v8041_v53 = vrot.slane %v1833_v22, %v9956_v44 }
 0x222   :  { %v1769_v4 = vpop.permute.xlu0 %1768  ;;  %v1715_v33 = vpop.permute.xlu1 %1714 }
 0x223   :  { %v1808_v8 = vsel %vm9932_vm13, %v1806_v19, %v1769_v4  ;;  %v1795_v12 = vsel %vm883_vm6, %v1793_v11, %v1715_v33 }
 0x226   :  { %v1777_v0 = vpop.permute.xlu0 %1776 }
 0x227   :  { %v1810_v60 = vsel %vm9926_vm14, %v1808_v8, %v1777_v0 }
 0x228   :  { %1814 = vrot.lane.b32.xlu0 %v1810_v60, %s7355_s27 }
 0x22a   :  { %v1723_v32 = vpop.permute.xlu1 %1722  ;;  %v7956_v16 = vpop.permute.xlu0 %1840 }
 0x22b   :  { %v1797_v31 = vsel %vm886_vm7, %v1795_v12, %v1723_v32 }
 0x22c   :  { %1823 = vrot.lane.b32.xlu0 %v1810_v60, %s7356_s28 }
 0x22e   :  { %v1731_v6 = vpop.permute.xlu1 %1730  ;;  %v7963_v5 = vpop.permute.xlu0 %1852 }
 0x22f   :  { %v1799_v20 = vsel %vm889_vm8, %v1797_v31, %v1731_v6 }
 0x230   :  { %1864 = vbcast.lane.b32.xlu0 %v7961_v38, 288 }
 0x232   :  { %v1739_v1 = vpop.permute.xlu1 %1738  ;;  %v916_v10 = vpop.permute.xlu0 %915 }
 0x233   :  { %922 = vst.msk [vmem:[#allocation5] sm:$0xff] %vm9925_vm15, %v916_v10  ;;  %v1801_v41 = vsel %vm892_vm9, %v1799_v20, %v1739_v1 }
 0x234   :  { %1876 = vbcast.lane.b32.xlu0 %v7968_v55, 288 }
 0x236   :  { %v1747_v63 = vpop.permute.xlu1 %1746 }
 0x237   :  { %v1803_v42 = vsel %vm895_vm10, %v1801_v41, %v1747_v63 }
 0x238   :  { %1888 = vbcast.lane.b32.xlu0 %v7974_v45, 288 }
 0x23a   :  { %v1755_v47 = vpop.permute.xlu1 %1754 }
 0x23b   :  { %v1805_v24 = vsel %vm898_vm11, %v1803_v42, %v1755_v47 }
 0x23c   :  { %1900 = vbcast.lane.b32.xlu0 %v7979_v39, 288 }
 0x23e   :  { %v1763_v17 = vpop.permute.xlu1 %1762 }
 0x23f   :  { %v1807_v43 = vsel %vm901_vm12, %v1805_v24, %v1763_v17 }
 0x240   :  { %1912 = vbcast.lane.b32.xlu0 %v7991_v13, 288 }
 0x242   :  { %v1771_v54 = vpop.permute.xlu1 %1770 }
 0x243   :  { %v1809_v50 = vsel %vm9932_vm13, %v1807_v43, %v1771_v54 }
 0x244   :  { %1924 = vbcast.lane.b32.xlu0 %v8000_v18, 288 }
 0x246   :  { %v1779_v56 = vpop.permute.xlu1 %1778 }
 0x247   :  { %v1811_v15 = vsel %vm9926_vm14, %v1809_v50, %v1779_v56  ;;  %vm9930_vm14 = vcmask 1048320  }
 0x248   :  { %1816 = vrot.lane.b32.xlu1 %v1811_v15, %s7355_s27  ;;  %1936 = vbcast.lane.b32.xlu0 %v8008_v40, 288 }
 0x24a   :  { %v8018_v46 = vpop.permute.xlu1 %1844 }
 0x24c   :  { %1825 = vrot.lane.b32.xlu1 %v1811_v15, %s7356_s28  ;;  %1948 = vbcast.lane.b32.xlu0 %v8016_v59, 288 }
 0x24e   :  { %v8025_v26 = vpop.permute.xlu1 %1856 }
 0x250   :  { %1868 = vbcast.lane.b32.xlu1 %v7961_v38, 296  ;;  %1960 = vbcast.lane.b32.xlu0 %v8023_v25, 288 }
 0x252   :  { %v918_v27 = vpop.permute.xlu1 %917 }
 0x253   :  { %923 = vst.msk [vmem:[#allocation5 + $0x20] sm:$0xff] %vm9925_vm15, %v918_v27  ;;  %vm9931_vm15 = vcmask 785920  }
 0x254   :  { %1880 = vbcast.lane.b32.xlu1 %v7968_v55, 296  ;;  %1972 = vbcast.lane.b32.xlu0 %v8030_v37, 288 }
 0x258   :  { %1892 = vbcast.lane.b32.xlu1 %v7974_v45, 296  ;;  %1984 = vbcast.lane.b32.xlu0 %v8036_v62, 288 }
 0x25c   :  { %1904 = vbcast.lane.b32.xlu1 %v7979_v39, 296  ;;  %1996 = vbcast.lane.b32.xlu0 %v8041_v53, 288 }
 0x260   :  { %1916 = vbcast.lane.b32.xlu1 %v7991_v13, 296  ;;  %2008 = vbcast.lane.b32.xlu0 %v8046_v52, 288 }
 0x264   :  { %1928 = vbcast.lane.b32.xlu1 %v8000_v18, 296  ;;  %2020 = vbcast.lane.b32.xlu0 %v8051_v57, 288 }
 0x268   :  { %1940 = vbcast.lane.b32.xlu1 %v8008_v40, 296 }
 0x26c   :  { %1952 = vbcast.lane.b32.xlu1 %v8016_v59, 296 }
 0x270   :  { %1964 = vbcast.lane.b32.xlu1 %v8023_v25, 296 }
 0x274   :  { %1976 = vbcast.lane.b32.xlu1 %v8030_v37, 296 }
 0x278   :  { %1988 = vbcast.lane.b32.xlu1 %v8036_v62, 296 }
 0x27c   :  { %2000 = vbcast.lane.b32.xlu1 %v8041_v53, 296 }
 0x280   :  { %2012 = vbcast.lane.b32.xlu1 %v8046_v52, 296 }
 0x284   :  { %2024 = vbcast.lane.b32.xlu1 %v8051_v57, 296 }
 0x29a   :  { %v1815_v4 = vpop.permute.xlu0 %1814 }
 0x29b   :  { %1821 = vst.msk [vmem:[#allocation5] sm:$0xff] %vm9931_vm15, %v1815_v4 }
 0x29e   :  { %v1824_v28 = vpop.permute.xlu0 %1823 }
 0x29f   :  { %1830 = vst.msk [vmem:[#allocation5] sm:$0xff] %vm9930_vm14, %v1824_v28 }
 0x2a2   :  { %v1865_v35 = vpop.permute.xlu0 %1864 }
 0x2a3   :  { %v2026_v32 = vcombine.low %v7956_v16, %v1865_v35  ;;  %v2027_v43 = vcombine.high %v7956_v16, %v1865_v35 }
 0x2a5   :  { %v2034_v63 = vrot.slane %v2026_v32, %v7482_v48 }
 0x2a6   :  { %v1877_v19 = vpop.permute.xlu0 %1876 }
 0x2a7   :  { %v2042_v0 = vcombine.low %v7963_v5, %v1877_v19  ;;  %v2043_v31 = vcombine.high %v7963_v5, %v1877_v19  ;;  %v2041_v19 = vrot.slane %v2027_v43, %v7482_v48 }
 0x2a9   :  { %v2050_v6 = vrot.slane %v2042_v0, %v7482_v48  ;;  %v2057_v27 = vrot.slane %v2043_v31, %v7482_v48 }
 0x2aa   :  { %v1889_v33 = vpop.permute.xlu0 %1888 }
 0x2ab   :  { %v2090_v34 = vcombine.low %v2034_v63, %v2050_v6  ;;  %v2091_v20 = vcombine.high %v2034_v63, %v2050_v6  ;;  %v2106_v0 = vcombine.low %v2041_v19, %v2057_v27 }
 0x2ad   :  { %v8076_v41 = vrot.slane %v2090_v34, %v7490_v58  ;;  %v2105_v16 = vrot.slane %v2091_v20, %v7490_v58 }
 0x2ae   :  { %v1901_v8 = vpop.permute.xlu0 %1900 }
 0x2b2   :  { %v1913_v60 = vpop.permute.xlu0 %1912 }
 0x2b3   :  { %v2058_v1 = vcombine.low %v1889_v33, %v1913_v60  ;;  %v2059_v22 = vcombine.high %v1889_v33, %v1913_v60 }
 0x2b5   :  { %v2066_v47 = vrot.slane %v2058_v1, %v7482_v48  ;;  %v2073_v4 = vrot.slane %v2059_v22, %v7482_v48 }
 0x2b6   :  { %v1925_v10 = vpop.permute.xlu0 %1924 }
 0x2b7   :  { %v2074_v36 = vcombine.low %v1901_v8, %v1925_v10  ;;  %v2075_v11 = vcombine.high %v1901_v8, %v1925_v10  ;;  %v2114_v10 = vrot.slane %v2106_v0, %v7490_v58 }
 0x2b9   :  { %v2082_v30 = vrot.slane %v2074_v36, %v7482_v48  ;;  %v2089_v50 = vrot.slane %v2075_v11, %v7482_v48 }
 0x2ba   :  { %v1817_v29 = vpop.permute.xlu1 %1816  ;;  %v8071_v51 = vpop.permute.xlu0 %1936 }
 0x2bb   :  { %v2122_v17 = vcombine.low %v2066_v47, %v2082_v30  ;;  %v2123_v12 = vcombine.high %v2066_v47, %v2082_v30  ;;  %1822 = vst.msk [vmem:[#allocation5 + $0x20] sm:$0xff] %vm9931_vm15, %v1817_v29  ;;  %v2138_v33 = vcombine.low %v2073_v4, %v2089_v50  ;;  %v2139_v34 = vcombine.high %v2073_v4, %v2089_v50 }
 0x2bc   :  { %v2107_v30 = vcombine.high %v2041_v19, %v2057_v27  ;;  %vm9961_vm15 = vcmask 261120  }
 0x2bd   :  { %v8079_v54 = vrot.slane %v2122_v17, %v7490_v58  ;;  %v2137_v56 = vrot.slane %v2123_v12, %v7490_v58  ;;  %v2146_v1 = vrot.slane %v2138_v33, %v7490_v58  ;;  %v2153_v12 = vrot.slane %v2139_v34, %v7490_v58 }
 0x2be   :  { %v1826_v42 = vpop.permute.xlu1 %1825  ;;  %v8081_v24 = vpop.permute.xlu0 %1948  ;;  %v2121_v20 = vrot.slane %v2107_v30, %v7490_v58 }
 0x2bf   :  { %1831 = vst.msk [vmem:[#allocation5 + $0x20] sm:$0xff] %vm9930_vm14, %v1826_v42  ;;  %v2155_v5 = vcombine.high %v8076_v41, %v8079_v54  ;;  %v2156_v8 = vcombine.low %v2105_v16, %v2137_v56  ;;  %v2157_v6 = vcombine.high %v2105_v16, %v2137_v56  ;;  %v2158_v47 = vcombine.low %v2114_v10, %v2146_v1 }
 0x2c0   :  { %v2159_v17 = vcombine.high %v2114_v10, %v2146_v1  ;;  %v2161_v10 = vcombine.high %v2121_v20, %v2153_v12  ;;  %vm9960_vm14 = vcmask 244736  }
 0x2c1   :  { %2572 = vrot.lane.b32.xlu0 %v2155_v5, %s7340_s0  ;;  %v2160_v5 = vcombine.low %v2121_v20, %v2153_v12 }
 0x2c2   :  { %v8095_v28 = vpop.permute.xlu1 %1868  ;;  %v8097_v35 = vpop.permute.xlu0 %1960 }
 0x2c3   :  { %v2298_v50 = vcombine.low %v8018_v46, %v8095_v28  ;;  %v2162_v56 = vcombine.low %v8071_v51, %v8097_v35 }
 0x2c5   :  { %2580 = vrot.lane.b32.xlu0 %v2156_v8, %s7341_s13  ;;  %v2306_v0 = vrot.slane %v2298_v50, %v7482_v48  ;;  %v2170_v34 = vrot.slane %v2162_v56, %v7482_v48 }
 0x2c6   :  { %v8101_v60 = vpop.permute.xlu1 %1880  ;;  %v8103_v32 = vpop.permute.xlu0 %1972 }
 0x2c7   :  { %v2314_v31 = vcombine.low %v8025_v26, %v8101_v60  ;;  %v2178_v22 = vcombine.low %v8081_v24, %v8103_v32  ;;  %v2179_v20 = vcombine.high %v8081_v24, %v8103_v32  ;;  %v2163_v24 = vcombine.high %v8071_v51, %v8097_v35 }
 0x2c9   :  { %2588 = vrot.lane.b32.xlu0 %v2157_v6, %s7342_s14  ;;  %v2322_v27 = vrot.slane %v2314_v31, %v7482_v48  ;;  %v2186_v16 = vrot.slane %v2178_v22, %v7482_v48 }
 0x2ca   :  { %v8108_v63 = vpop.permute.xlu1 %1892  ;;  %v8110_v36 = vpop.permute.xlu0 %1984 }
 0x2cb   :  { %v2226_v22 = vcombine.low %v2170_v34, %v2186_v16 }
 0x2cd   :  { %2596 = vrot.lane.b32.xlu0 %v2158_v47, %s7337_s10  ;;  %v2362_v47 = vcombine.low %v2306_v0, %v2322_v27 }
 0x2ce   :  { %v8113_v29 = vpop.permute.xlu1 %1904  ;;  %v1997_v11 = vpop.permute.xlu0 %1996 }
 0x2cf   :  { %v2370_v56 = vrot.slane %v2362_v47, %v7490_v58 }
 0x2d1   :  { %2604 = vrot.lane.b32.xlu0 %v2159_v17, %s7343_s15 }
 0x2d2   :  { %v8122_v42 = vpop.permute.xlu1 %1916  ;;  %v2009_v43 = vpop.permute.xlu0 %2008 }
 0x2d3   :  { %v2330_v4 = vcombine.low %v8108_v63, %v8122_v42  ;;  %v2194_v19 = vcombine.low %v8110_v36, %v2009_v43 }
 0x2d5   :  { %2612 = vrot.lane.b32.xlu0 %v2160_v5, %s7344_s16  ;;  %v2338_v30 = vrot.slane %v2330_v4, %v7482_v48  ;;  %v2202_v5 = vrot.slane %v2194_v19, %v7482_v48  ;;  %v8152_v19 = vrot.slane %v2226_v22, %v7490_v58 }
 0x2d6   :  { %v1929_v33 = vpop.permute.xlu1 %1928  ;;  %v2021_v8 = vpop.permute.xlu0 %2020 }
 0x2d7   :  { %v2346_v6 = vcombine.low %v8113_v29, %v1929_v33  ;;  %v2210_v1 = vcombine.low %v1997_v11, %v2021_v8  ;;  %v2211_v61 = vcombine.high %v1997_v11, %v2021_v8  ;;  %v2347_v11 = vcombine.high %v8113_v29, %v1929_v33 }
 0x2d8   :  { %v2193_v29 = vrot.slane %v2179_v20, %v7482_v48 }
 0x2d9   :  { %v2354_v17 = vrot.slane %v2346_v6, %v7482_v48  ;;  %v2218_v31 = vrot.slane %v2210_v1, %v7482_v48  ;;  %2620 = vrot.lane.b32.xlu0 %v2161_v10, %s7345_s17  ;;  %v2227_v6 = vcombine.high %v2170_v34, %v2186_v16  ;;  %v2195_v1 = vcombine.high %v8110_v36, %v2009_v43 }
 0x2da   :  { %v8142_v15 = vpop.permute.xlu1 %1940  ;;  %v2225_v32 = vrot.slane %v2211_v61, %v7482_v48  ;;  %v2315_v16 = vcombine.high %v8025_v26, %v8101_v60  ;;  %v2363_v34 = vcombine.high %v2306_v0, %v2322_v27  ;;  %v2299_v26 = vcombine.high %v8018_v46, %v8095_v28 }
 0x2db   :  { %v2394_v50 = vcombine.low %v2338_v30, %v2354_v17  ;;  %v2258_v14 = vcombine.low %v2202_v5, %v2218_v31  ;;  %v2259_v12 = vcombine.high %v2202_v5, %v2218_v31  ;;  %v2395_v8 = vcombine.high %v2338_v30, %v2354_v17 }
 0x2dc   :  { %v2209_v51 = vrot.slane %v2195_v1, %v7482_v48  ;;  %v2241_v35 = vrot.slane %v2227_v6, %v7490_v58  ;;  %v2361_v60 = vrot.slane %v2347_v11, %v7482_v48  ;;  %v2177_v27 = vrot.slane %v2163_v24, %v7482_v48 }
 0x2dd   :  { %v2402_v4 = vrot.slane %v2394_v50, %v7490_v58  ;;  %v8155_v44 = vrot.slane %v2258_v14, %v7490_v58  ;;  %v2273_v43 = vrot.slane %v2259_v12, %v7490_v58  ;;  %v2331_v14 = vcombine.high %v8108_v63, %v8122_v42 }
 0x2de   :  { %v8149_v10 = vpop.permute.xlu1 %1952  ;;  %v2409_v42 = vrot.slane %v2395_v8, %v7490_v58  ;;  %v2274_v0 = vcombine.low %v2209_v51, %v2225_v32  ;;  %v2329_v30 = vrot.slane %v2315_v16, %v7482_v48  ;;  %v2377_v22 = vrot.slane %v2363_v34, %v7490_v58 }
 0x2df   :  { %v2426_v31 = vcombine.low %v2370_v56, %v2402_v4  ;;  %v2291_v36 = vcombine.high %v8152_v19, %v8155_v44  ;;  %v2290_v33 = vcombine.low %v8152_v19, %v8155_v44  ;;  %v2427_v63 = vcombine.high %v2370_v56, %v2402_v4 }
 0x2e0   :  { %v2292_v47 = vcombine.low %v2241_v35, %v2273_v43  ;;  %v2345_v17 = vrot.slane %v2331_v14, %v7482_v48  ;;  %v2242_v5 = vcombine.low %v2177_v27, %v2193_v29  ;;  %v2313_v28 = vrot.slane %v2299_v26, %v7482_v48 }
 0x2e1   :  { %2628 = vrot.lane.b32.xlu0 %v2426_v31, %s7346_s18  ;;  %2574 = vrot.lane.b32.xlu1 %v2291_v36, %s7340_s0  ;;  %v2428_v12 = vcombine.low %v2377_v22, %v2409_v42  ;;  %v2293_v20 = vcombine.high %v2241_v35, %v2273_v43  ;;  %v2282_v56 = vrot.slane %v2274_v0, %v7490_v58 }
 0x2e2   :  { %v8172_v61 = vpop.permute.xlu1 %1964  ;;  %v2410_v50 = vcombine.low %v2345_v17, %v2361_v60  ;;  %v2378_v4 = vcombine.low %v2313_v28, %v2329_v30  ;;  %v2250_v1 = vrot.slane %v2242_v5, %v7490_v58  ;;  %v2429_v11 = vcombine.high %v2377_v22, %v2409_v42 }
 0x2e3   :  { %v2275_v31 = vcombine.high %v2209_v51, %v2225_v32  ;;  %v2243_v43 = vcombine.high %v2177_v27, %v2193_v29  ;;  %v2411_v34 = vcombine.high %v2345_v17, %v2361_v60  ;;  %v2434_v29 = vcombine.low %v8142_v15, %v8172_v61 }
 0x2e4   :  { %v2418_v8 = vrot.slane %v2410_v50, %v7490_v58  ;;  %v2294_v24 = vcombine.low %v2250_v1, %v2282_v56  ;;  %v2386_v36 = vrot.slane %v2378_v4, %v7490_v58  ;;  %v2295_v35 = vcombine.high %v2250_v1, %v2282_v56 }
 0x2e5   :  { %2636 = vrot.lane.b32.xlu0 %v2427_v63, %s7347_s19  ;;  %2582 = vrot.lane.b32.xlu1 %v2292_v47, %s7341_s13  ;;  %v2289_v26 = vrot.slane %v2275_v31, %v7490_v58  ;;  %v2379_v63 = vcombine.high %v2313_v28, %v2329_v30  ;;  %v2257_v51 = vrot.slane %v2243_v43, %v7490_v58 }
 0x2e6   :  { %v8187_v46 = vpop.permute.xlu1 %1976  ;;  %v2430_v14 = vcombine.low %v2386_v36, %v2418_v8  ;;  %v2431_v27 = vcombine.high %v2386_v36, %v2418_v8  ;;  %v2425_v60 = vrot.slane %v2411_v34, %v7490_v58  ;;  %v2442_v5 = vrot.slane %v2434_v29, %v7482_v48 }
 0x2e7   :  { %v2450_v42 = vcombine.low %v8149_v10, %v8187_v46  ;;  %v2296_v0 = vcombine.low %v2257_v51, %v2289_v26  ;;  %v2393_v17 = vrot.slane %v2379_v63, %v7490_v58  ;;  %v2451_v34 = vcombine.high %v8149_v10, %v8187_v46 }
 0x2e9   :  { %2644 = vrot.lane.b32.xlu0 %v2428_v12, %s7348_s20  ;;  %2590 = vrot.lane.b32.xlu1 %v2293_v20, %s7342_s14  ;;  %v2458_v47 = vrot.slane %v2450_v42, %v7482_v48  ;;  %v2432_v50 = vcombine.low %v2393_v17, %v2425_v60  ;;  %v2297_v12 = vcombine.high %v2257_v51, %v2289_v26 }
 0x2ea   :  { %v1989_v6 = vpop.permute.xlu1 %1988  ;;  %v2435_v26 = vcombine.high %v8142_v15, %v8172_v61  ;;  %v2465_v29 = vrot.slane %v2451_v34, %v7482_v48 }
 0x2eb   :  { %v2498_v20 = vcombine.low %v2442_v5, %v2458_v47 }
 0x2ec   :  { %v2449_v46 = vrot.slane %v2435_v26, %v7482_v48 }
 0x2ed   :  { %2652 = vrot.lane.b32.xlu0 %v2429_v11, %s7349_s21  ;;  %2598 = vrot.lane.b32.xlu1 %v2294_v24, %s7337_s10  ;;  %v2433_v11 = vcombine.high %v2393_v17, %v2425_v60  ;;  %v2506_v8 = vrot.slane %v2498_v20, %v7490_v58 }
 0x2ee   :  { %v2001_v16 = vpop.permute.xlu1 %2000 }
 0x2f1   :  { %2660 = vrot.lane.b32.xlu0 %v2430_v14, %s7350_s22  ;;  %2606 = vrot.lane.b32.xlu1 %v2295_v35, %s7343_s15  ;;  %v2499_v14 = vcombine.high %v2442_v5, %v2458_v47 }
 0x2f2   :  { %v2013_v32 = vpop.permute.xlu1 %2012 }
 0x2f3   :  { %v2466_v30 = vcombine.low %v1989_v6, %v2013_v32  ;;  %v2467_v35 = vcombine.high %v1989_v6, %v2013_v32  ;;  %v2513_v10 = vrot.slane %v2499_v14, %v7490_v58 }
 0x2f5   :  { %2668 = vrot.lane.b32.xlu0 %v2431_v27, %s7351_s23  ;;  %2614 = vrot.lane.b32.xlu1 %v2296_v0, %s7344_s16  ;;  %v2474_v56 = vrot.slane %v2466_v30, %v7482_v48  ;;  %v2514_v27 = vcombine.low %v2449_v46, %v2465_v29  ;;  %v2515_v30 = vcombine.high %v2449_v46, %v2465_v29 }
 0x2f6   :  { %v2025_v22 = vpop.permute.xlu1 %2024 }
 0x2f7   :  { %v2482_v28 = vcombine.low %v2001_v16, %v2025_v22  ;;  %v2483_v24 = vcombine.high %v2001_v16, %v2025_v22  ;;  %v2481_v16 = vrot.slane %v2467_v35, %v7482_v48  ;;  %v2522_v60 = vrot.slane %v2514_v27, %v7490_v58 }
 0x2f8   :  { %v2529_v5 = vrot.slane %v2515_v30, %v7490_v58 }
 0x2f9   :  { %v2490_v4 = vrot.slane %v2482_v28, %v7482_v48  ;;  %2676 = vrot.lane.b32.xlu0 %v2432_v50, %s7352_s24  ;;  %2622 = vrot.lane.b32.xlu1 %v2297_v12, %s7345_s17  ;;  %v2497_v63 = vrot.slane %v2483_v24, %v7482_v48 }
 0x2fb   :  { %v2530_v1 = vcombine.low %v2474_v56, %v2490_v4  ;;  %v2531_v36 = vcombine.high %v2474_v56, %v2490_v4  ;;  %v2546_v6 = vcombine.low %v2481_v16, %v2497_v63  ;;  %v2547_v0 = vcombine.high %v2481_v16, %v2497_v63 }
 0x2fc   :  { %v9959_v63 = vcombine.low %v8076_v41, %v8079_v54 }
 0x2fd   :  { %2684 = vrot.lane.b32.xlu0 %v2433_v11, %s7353_s25  ;;  %v2538_v31 = vrot.slane %v2530_v1, %v7490_v58  ;;  %v2545_v51 = vrot.slane %v2531_v36, %v7490_v58  ;;  %v2554_v61 = vrot.slane %v2546_v6, %v7490_v58  ;;  %v2561_v22 = vrot.slane %v2547_v0, %v7490_v58 }
 0x2ff   :  { %v2562_v43 = vcombine.low %v2506_v8, %v2538_v31  ;;  %v2563_v42 = vcombine.high %v2506_v8, %v2538_v31  ;;  %v2564_v32 = vcombine.low %v2513_v10, %v2545_v51  ;;  %v2565_v15 = vcombine.high %v2513_v10, %v2545_v51 }
 0x300   :  { %v2566_v47 = vcombine.low %v2522_v60, %v2554_v61  ;;  %v2567_v17 = vcombine.high %v2522_v60, %v2554_v61  ;;  %v2568_v28 = vcombine.low %v2529_v5, %v2561_v22  ;;  %v2569_v50 = vcombine.high %v2529_v5, %v2561_v22 }
 0x301   :  { %2630 = vrot.lane.b32.xlu1 %v2562_v43, %s7346_s18 }
 0x305   :  { %2638 = vrot.lane.b32.xlu1 %v2563_v42, %s7347_s19 }
 0x309   :  { %2646 = vrot.lane.b32.xlu1 %v2564_v32, %s7348_s20 }
 0x30d   :  { %2654 = vrot.lane.b32.xlu1 %v2565_v15, %s7349_s21 }
 0x311   :  { %2662 = vrot.lane.b32.xlu1 %v2566_v47, %s7350_s22 }
 0x315   :  { %2670 = vrot.lane.b32.xlu1 %v2567_v17, %s7351_s23 }
 0x319   :  { %2678 = vrot.lane.b32.xlu1 %v2568_v28, %s7352_s24 }
 0x31d   :  { %2686 = vrot.lane.b32.xlu1 %v2569_v50, %s7353_s25 }
 0x333   :  { %v2573_v12 = vpop.permute.xlu0 %2572 }
 0x334   :  { %v2690_v42 = vsel %vm865_vm0, %v9959_v63, %v2573_v12 }
 0x337   :  { %v2581_v20 = vpop.permute.xlu0 %2580 }
 0x338   :  { %v2692_v51 = vsel %vm868_vm1, %v2690_v42, %v2581_v20 }
 0x33b   :  { %v2589_v56 = vpop.permute.xlu0 %2588 }
 0x33c   :  { %v2694_v16 = vsel %vm871_vm2, %v2692_v51, %v2589_v56 }
 0x33f   :  { %v2597_v4 = vpop.permute.xlu0 %2596 }
 0x340   :  { %v2696_v46 = vsel %vm874_vm3, %v2694_v16, %v2597_v4 }
 0x343   :  { %v2605_v1 = vpop.permute.xlu0 %2604 }
 0x344   :  { %v2698_v6 = vsel %vm877_vm4, %v2696_v46, %v2605_v1 }
 0x347   :  { %v2613_v11 = vpop.permute.xlu0 %2612 }
 0x348   :  { %v2700_v32 = vsel %vm880_vm5, %v2698_v6, %v2613_v11 }
 0x34b   :  { %v2621_v8 = vpop.permute.xlu0 %2620 }
 0x34c   :  { %v2702_v15 = vsel %vm883_vm6, %v2700_v32, %v2621_v8 }
 0x353   :  { %v2629_v31 = vpop.permute.xlu0 %2628  ;;  %v2575_v24 = vpop.permute.xlu1 %2574 }
 0x354   :  { %v2704_v61 = vsel %vm886_vm7, %v2702_v15, %v2629_v31  ;;  %v2691_v1 = vsel %vm865_vm0, %v2290_v33, %v2575_v24 }
 0x357   :  { %v2637_v36 = vpop.permute.xlu0 %2636  ;;  %v2583_v43 = vpop.permute.xlu1 %2582 }
 0x358   :  { %v2706_v54 = vsel %vm889_vm8, %v2704_v61, %v2637_v36  ;;  %v2693_v11 = vsel %vm868_vm1, %v2691_v1, %v2583_v43 }
 0x35b   :  { %v2645_v34 = vpop.permute.xlu0 %2644  ;;  %v2591_v14 = vpop.permute.xlu1 %2590 }
 0x35c   :  { %v2708_v60 = vsel %vm892_vm9, %v2706_v54, %v2645_v34  ;;  %v2695_v31 = vsel %vm871_vm2, %v2693_v11, %v2591_v14 }
 0x35f   :  { %v2653_v35 = vpop.permute.xlu0 %2652  ;;  %v2599_v26 = vpop.permute.xlu1 %2598 }
 0x360   :  { %v2710_v47 = vsel %vm895_vm10, %v2708_v60, %v2653_v35  ;;  %v2697_v36 = vsel %vm874_vm3, %v2695_v31, %v2599_v26 }
 0x363   :  { %v2661_v29 = vpop.permute.xlu0 %2660  ;;  %v2607_v10 = vpop.permute.xlu1 %2606 }
 0x364   :  { %v2712_v30 = vsel %vm898_vm11, %v2710_v47, %v2661_v29  ;;  %v2699_v34 = vsel %vm877_vm4, %v2697_v36, %v2607_v10 }
 0x367   :  { %v2669_v27 = vpop.permute.xlu0 %2668  ;;  %v2615_v41 = vpop.permute.xlu1 %2614 }
 0x368   :  { %v2714_v17 = vsel %vm901_vm12, %v2712_v30, %v2669_v27  ;;  %v2701_v35 = vsel %vm880_vm5, %v2699_v34, %v2615_v41 }
 0x36b   :  { %v2677_v0 = vpop.permute.xlu0 %2676  ;;  %v2623_v22 = vpop.permute.xlu1 %2622 }
 0x36c   :  { %v2716_v5 = vsel %vm9932_vm13, %v2714_v17, %v2677_v0  ;;  %v2703_v42 = vsel %vm883_vm6, %v2701_v35, %v2623_v22 }
 0x36f   :  { %v2685_v28 = vpop.permute.xlu0 %2684 }
 0x370   :  { %v2718_v50 = vsel %vm9960_vm14, %v2716_v5, %v2685_v28 }
 0x371   :  { %2720 = vst.msk [vmem:[#allocation5 + $0x8] sm:$0xff] %vm9961_vm15, %v2718_v50  ;;  %2724 = vrot.lane.b32.xlu0 %v2718_v50, %s7354_s26 }
 0x373   :  { %v2631_v12 = vpop.permute.xlu1 %2630 }
 0x374   :  { %v2705_v44 = vsel %vm886_vm7, %v2703_v42, %v2631_v12 }
 0x375   :  { %2740 = vbcast.lane.b32.xlu0 %v7899_v23, 304 }
 0x377   :  { %v2639_v20 = vpop.permute.xlu1 %2638 }
 0x378   :  { %v2707_v19 = vsel %vm889_vm8, %v2705_v44, %v2639_v20 }
 0x379   :  { %2752 = vbcast.lane.b32.xlu0 %v7905_v21, 304 }
 0x37b   :  { %v2647_v56 = vpop.permute.xlu1 %2646 }
 0x37c   :  { %v2709_v33 = vsel %vm892_vm9, %v2707_v19, %v2647_v56 }
 0x37d   :  { %2764 = vbcast.lane.b32.xlu0 %v7961_v38, 304 }
 0x37f   :  { %v2655_v4 = vpop.permute.xlu1 %2654 }
 0x380   :  { %v2711_v43 = vsel %vm895_vm10, %v2709_v33, %v2655_v4 }
 0x381   :  { %2776 = vbcast.lane.b32.xlu0 %v7968_v55, 304 }
 0x383   :  { %v2663_v8 = vpop.permute.xlu1 %2662 }
 0x384   :  { %v2713_v14 = vsel %vm898_vm11, %v2711_v43, %v2663_v8 }
 0x385   :  { %2788 = vbcast.lane.b32.xlu0 %v7974_v45, 304 }
 0x387   :  { %v2671_v63 = vpop.permute.xlu1 %2670 }
 0x388   :  { %v2715_v26 = vsel %vm901_vm12, %v2713_v14, %v2671_v63 }
 0x389   :  { %2800 = vbcast.lane.b32.xlu0 %v7979_v39, 304 }
 0x38b   :  { %v2679_v24 = vpop.permute.xlu1 %2678 }
 0x38c   :  { %v2717_v51 = vsel %vm9932_vm13, %v2715_v26, %v2679_v24 }
 0x38d   :  { %2812 = vbcast.lane.b32.xlu0 %v7991_v13, 304 }
 0x38f   :  { %v2687_v29 = vpop.permute.xlu1 %2686 }
 0x390   :  { %v2719_v16 = vsel %vm9960_vm14, %v2717_v51, %v2687_v29  ;;  %vm9962_vm14 = vcmask 523520  }
 0x391   :  { %2721 = vst.msk [vmem:[#allocation5 + $0x28] sm:$0xff] %vm9961_vm15, %v2719_v16  ;;  %2726 = vrot.lane.b32.xlu1 %v2719_v16, %s7354_s26  ;;  %2824 = vbcast.lane.b32.xlu0 %v8000_v18, 304  ;;  %vm9963_vm15 = vmmov %vm9962_vm14 }
 0x395   :  { %2744 = vbcast.lane.b32.xlu1 %v7899_v23, 312  ;;  %2836 = vbcast.lane.b32.xlu0 %v8008_v40, 304 }
 0x399   :  { %2756 = vbcast.lane.b32.xlu1 %v7905_v21, 312  ;;  %2848 = vbcast.lane.b32.xlu0 %v8016_v59, 304 }
 0x39d   :  { %2768 = vbcast.lane.b32.xlu1 %v7961_v38, 312  ;;  %2860 = vbcast.lane.b32.xlu0 %v8023_v25, 304 }
 0x3a1   :  { %2780 = vbcast.lane.b32.xlu1 %v7968_v55, 312  ;;  %2872 = vbcast.lane.b32.xlu0 %v8030_v37, 304 }
 0x3a5   :  { %2792 = vbcast.lane.b32.xlu1 %v7974_v45, 312  ;;  %2884 = vbcast.lane.b32.xlu0 %v8036_v62, 304 }
 0x3a9   :  { %2804 = vbcast.lane.b32.xlu1 %v7979_v39, 312  ;;  %2896 = vbcast.lane.b32.xlu0 %v8041_v53, 304 }
 0x3ad   :  { %2816 = vbcast.lane.b32.xlu1 %v7991_v13, 312  ;;  %2908 = vbcast.lane.b32.xlu0 %v8046_v52, 304 }
 0x3b1   :  { %2828 = vbcast.lane.b32.xlu1 %v8000_v18, 312  ;;  %2920 = vbcast.lane.b32.xlu0 %v8051_v57, 304 }
 0x3b5   :  { %2840 = vbcast.lane.b32.xlu1 %v8008_v40, 312 }
 0x3b9   :  { %2852 = vbcast.lane.b32.xlu1 %v8016_v59, 312 }
 0x3bd   :  { %2864 = vbcast.lane.b32.xlu1 %v8023_v25, 312 }
 0x3c1   :  { %2876 = vbcast.lane.b32.xlu1 %v8030_v37, 312 }
 0x3c5   :  { %2888 = vbcast.lane.b32.xlu1 %v8036_v62, 312 }
 0x3c9   :  { %2900 = vbcast.lane.b32.xlu1 %v8041_v53, 312 }
 0x3cd   :  { %2912 = vbcast.lane.b32.xlu1 %v8046_v52, 312 }
 0x3d1   :  { %2924 = vbcast.lane.b32.xlu1 %v8051_v57, 312 }
 0x3e3   :  { %v2725_v23 = vpop.permute.xlu0 %2724 }
 0x3e4   :  { %2730 = vst.msk [vmem:[#allocation5 + $0x8] sm:$0xff] %vm9962_vm14, %v2725_v23  ;;  %vm9964_vm14 = vcmask 244736  }
 0x3e7   :  { %v2741_v21 = vpop.permute.xlu0 %2740 }
 0x3eb   :  { %v2753_v38 = vpop.permute.xlu0 %2752 }
 0x3ef   :  { %v2765_v55 = vpop.permute.xlu0 %2764 }
 0x3f0   :  { %v2926_v59 = vcombine.low %v2741_v21, %v2765_v55  ;;  %v2927_v5 = vcombine.high %v2741_v21, %v2765_v55 }
 0x3f2   :  { %v2934_v52 = vrot.slane %v2926_v59, %v7482_v48  ;;  %v2941_v31 = vrot.slane %v2927_v5, %v7482_v48 }
 0x3f3   :  { %v2777_v45 = vpop.permute.xlu0 %2776 }
 0x3f4   :  { %v2942_v18 = vcombine.low %v2753_v38, %v2777_v45  ;;  %v2943_v54 = vcombine.high %v2753_v38, %v2777_v45 }
 0x3f6   :  { %v2950_v25 = vrot.slane %v2942_v18, %v7482_v48  ;;  %v2957_v56 = vrot.slane %v2943_v54, %v7482_v48 }
 0x3f7   :  { %v2789_v39 = vpop.permute.xlu0 %2788 }
 0x3f8   :  { %v2990_v10 = vcombine.low %v2934_v52, %v2950_v25  ;;  %v2991_v60 = vcombine.high %v2934_v52, %v2950_v25  ;;  %v3006_v35 = vcombine.low %v2941_v31, %v2957_v56  ;;  %v3007_v51 = vcombine.high %v2941_v31, %v2957_v56 }
 0x3fa   :  { %v8324_v47 = vrot.slane %v2990_v10, %v7490_v58  ;;  %v3005_v1 = vrot.slane %v2991_v60, %v7490_v58  ;;  %v3014_v33 = vrot.slane %v3006_v35, %v7490_v58  ;;  %v3021_v55 = vrot.slane %v3007_v51, %v7490_v58 }
 0x3fb   :  { %v2801_v13 = vpop.permute.xlu0 %2800 }
 0x3ff   :  { %v2813_v40 = vpop.permute.xlu0 %2812 }
 0x400   :  { %v2958_v37 = vcombine.low %v2789_v39, %v2813_v40  ;;  %v2959_v0 = vcombine.high %v2789_v39, %v2813_v40 }
 0x402   :  { %v2966_v46 = vrot.slane %v2958_v37, %v7482_v48  ;;  %v2973_v4 = vrot.slane %v2959_v0, %v7482_v48 }
 0x403   :  { %v2727_v62 = vpop.permute.xlu1 %2726  ;;  %v2825_v53 = vpop.permute.xlu0 %2824 }
 0x404   :  { %2731 = vst.msk [vmem:[#allocation5 + $0x28] sm:$0xff] %vm9963_vm15, %v2727_v62  ;;  %v2974_v57 = vcombine.low %v2801_v13, %v2825_v53  ;;  %v2975_v15 = vcombine.high %v2801_v13, %v2825_v53  ;;  %vm9967_vm15 = vmmov %vm9964_vm14 }
 0x406   :  { %v2982_v6 = vrot.slane %v2974_v57, %v7482_v48  ;;  %v2989_v28 = vrot.slane %v2975_v15, %v7482_v48 }
 0x407   :  { %v8319_v32 = vpop.permute.xlu1 %2744  ;;  %v8321_v27 = vpop.permute.xlu0 %2836 }
 0x408   :  { %v3022_v61 = vcombine.low %v2966_v46, %v2982_v6  ;;  %v3023_v41 = vcombine.high %v2966_v46, %v2982_v6  ;;  %v3038_v36 = vcombine.low %v2973_v4, %v2989_v28  ;;  %v3039_v14 = vcombine.high %v2973_v4, %v2989_v28 }
 0x40a   :  { %v8327_v30 = vrot.slane %v3022_v61, %v7490_v58  ;;  %v3037_v12 = vrot.slane %v3023_v41, %v7490_v58  ;;  %v3046_v19 = vrot.slane %v3038_v36, %v7490_v58  ;;  %v3053_v21 = vrot.slane %v3039_v14, %v7490_v58 }
 0x40b   :  { %v8329_v17 = vpop.permute.xlu1 %2756  ;;  %v8331_v22 = vpop.permute.xlu0 %2848 }
 0x40c   :  { %v3055_v50 = vcombine.high %v8324_v47, %v8327_v30  ;;  %v3054_v20 = vcombine.low %v8324_v47, %v8327_v30  ;;  %v3056_v34 = vcombine.low %v3005_v1, %v3037_v12  ;;  %v3057_v44 = vcombine.high %v3005_v1, %v3037_v12 }
 0x40d   :  { %v3058_v26 = vcombine.low %v3014_v33, %v3046_v19  ;;  %v3059_v23 = vcombine.high %v3014_v33, %v3046_v19  ;;  %v3060_v40 = vcombine.low %v3021_v55, %v3053_v21  ;;  %v3061_v15 = vcombine.high %v3021_v55, %v3053_v21 }
 0x40e   :  { %3472 = vrot.lane.b32.xlu0 %v3055_v50, %s7340_s0 }
 0x40f   :  { %v8343_v11 = vpop.permute.xlu1 %2768  ;;  %v8345_v8 = vpop.permute.xlu0 %2860 }
 0x410   :  { %v3198_v18 = vcombine.low %v8319_v32, %v8343_v11  ;;  %v3062_v59 = vcombine.low %v8321_v27, %v8345_v8 }
 0x412   :  { %3480 = vrot.lane.b32.xlu0 %v3056_v34, %s7341_s13  ;;  %v3206_v10 = vrot.slane %v3198_v18, %v7482_v48  ;;  %v3070_v61 = vrot.slane %v3062_v59, %v7482_v48 }
 0x413   :  { %v8349_v63 = vpop.permute.xlu1 %2780  ;;  %v8351_v42 = vpop.permute.xlu0 %2872 }
 0x414   :  { %v3214_v38 = vcombine.low %v8329_v17, %v8349_v63  ;;  %v3078_v45 = vcombine.low %v8331_v22, %v8351_v42  ;;  %v3079_v31 = vcombine.high %v8331_v22, %v8351_v42  ;;  %v3063_v22 = vcombine.high %v8321_v27, %v8345_v8 }
 0x415   :  { %v3215_v21 = vcombine.high %v8329_v17, %v8349_v63  ;;  %v3199_v17 = vcombine.high %v8319_v32, %v8343_v11 }
 0x416   :  { %3488 = vrot.lane.b32.xlu0 %v3057_v44, %s7342_s14  ;;  %v3222_v25 = vrot.slane %v3214_v38, %v7482_v48  ;;  %v3086_v62 = vrot.slane %v3078_v45, %v7482_v48  ;;  %v3077_v18 = vrot.slane %v3063_v22, %v7482_v48 }
 0x417   :  { %v8356_v24 = vpop.permute.xlu1 %2792  ;;  %v8358_v43 = vpop.permute.xlu0 %2884  ;;  %v3213_v11 = vrot.slane %v3199_v17, %v7482_v48 }
 0x418   :  { %v3262_v41 = vcombine.low %v3206_v10, %v3222_v25  ;;  %v3126_v5 = vcombine.low %v3070_v61, %v3086_v62  ;;  %v3127_v35 = vcombine.high %v3070_v61, %v3086_v62  ;;  %v3263_v38 = vcombine.high %v3206_v10, %v3222_v25 }
 0x419   :  { %v3229_v25 = vrot.slane %v3215_v21, %v7482_v48 }
 0x41a   :  { %3496 = vrot.lane.b32.xlu0 %v3058_v26, %s7337_s10  ;;  %v3270_v36 = vrot.slane %v3262_v41, %v7490_v58  ;;  %v8400_v33 = vrot.slane %v3126_v5, %v7490_v58  ;;  %v3141_v45 = vrot.slane %v3127_v35, %v7490_v58  ;;  %v3277_v62 = vrot.slane %v3263_v38, %v7490_v58 }
 0x41b   :  { %v8361_v29 = vpop.permute.xlu1 %2804  ;;  %v2897_v16 = vpop.permute.xlu0 %2896 }
 0x41e   :  { %3504 = vrot.lane.b32.xlu0 %v3059_v23, %s7343_s15 }
 0x41f   :  { %v8370_v39 = vpop.permute.xlu1 %2816  ;;  %v2909_v13 = vpop.permute.xlu0 %2908 }
 0x420   :  { %v3230_v37 = vcombine.low %v8356_v24, %v8370_v39  ;;  %v3094_v53 = vcombine.low %v8358_v43, %v2909_v13  ;;  %v3095_v44 = vcombine.high %v8358_v43, %v2909_v13  ;;  %v3231_v55 = vcombine.high %v8356_v24, %v8370_v39 }
 0x422   :  { %3512 = vrot.lane.b32.xlu0 %v3060_v40, %s7344_s16  ;;  %v3238_v54 = vrot.slane %v3230_v37, %v7482_v48  ;;  %v3102_v28 = vrot.slane %v3094_v53, %v7482_v48  ;;  %v3109_v27 = vrot.slane %v3095_v44, %v7482_v48  ;;  %v3245_v37 = vrot.slane %v3231_v55, %v7482_v48 }
 0x423   :  { %v2829_v52 = vpop.permute.xlu1 %2828  ;;  %v2921_v57 = vpop.permute.xlu0 %2920 }
 0x424   :  { %v3246_v46 = vcombine.low %v8361_v29, %v2829_v52  ;;  %v3110_v6 = vcombine.low %v2897_v16, %v2921_v57  ;;  %v3111_v56 = vcombine.high %v2897_v16, %v2921_v57  ;;  %v3247_v26 = vcombine.high %v8361_v29, %v2829_v52 }
 0x425   :  { %v3093_v29 = vrot.slane %v3079_v31, %v7482_v48 }
 0x426   :  { %v3254_v60 = vrot.slane %v3246_v46, %v7482_v48  ;;  %v3118_v0 = vrot.slane %v3110_v6, %v7482_v48  ;;  %3520 = vrot.lane.b32.xlu0 %v3061_v15, %s7345_s17  ;;  %v3125_v42 = vrot.slane %v3111_v56, %v7482_v48  ;;  %v3261_v63 = vrot.slane %v3247_v26, %v7482_v48 }
 0x427   :  { %v8390_v50 = vpop.permute.xlu1 %2840  ;;  %v3142_v53 = vcombine.low %v3077_v18, %v3093_v29  ;;  %v3278_v6 = vcombine.low %v3213_v11, %v3229_v25 }
 0x428   :  { %v3294_v12 = vcombine.low %v3238_v54, %v3254_v60  ;;  %v3158_v4 = vcombine.low %v3102_v28, %v3118_v0  ;;  %v3159_v1 = vcombine.high %v3102_v28, %v3118_v0  ;;  %v3295_v51 = vcombine.high %v3238_v54, %v3254_v60 }
 0x429   :  { %v3174_v40 = vcombine.low %v3109_v27, %v3125_v42  ;;  %v3310_v52 = vcombine.low %v3245_v37, %v3261_v63  ;;  %v3150_v61 = vrot.slane %v3142_v53, %v7490_v58  ;;  %v3175_v60 = vcombine.high %v3109_v27, %v3125_v42 }
 0x42a   :  { %v3302_v34 = vrot.slane %v3294_v12, %v7490_v58  ;;  %v8403_v14 = vrot.slane %v3158_v4, %v7490_v58  ;;  %v3173_v23 = vrot.slane %v3159_v1, %v7490_v58  ;;  %v3309_v39 = vrot.slane %v3295_v51, %v7490_v58 }
 0x42b   :  { %v8397_v19 = vpop.permute.xlu1 %2852  ;;  %v3182_v46 = vrot.slane %v3174_v40, %v7490_v58  ;;  %v3318_v54 = vrot.slane %v3310_v52, %v7490_v58  ;;  %v3286_v5 = vrot.slane %v3278_v6, %v7490_v58  ;;  %v3143_v28 = vcombine.high %v3077_v18, %v3093_v29 }
 0x42c   :  { %v3326_v16 = vcombine.low %v3270_v36, %v3302_v34  ;;  %v3191_v43 = vcombine.high %v8400_v33, %v8403_v14  ;;  %v3190_v13 = vcombine.low %v8400_v33, %v8403_v14  ;;  %v3327_v24 = vcombine.high %v3270_v36, %v3302_v34 }
 0x42d   :  { %v3192_v59 = vcombine.low %v3141_v45, %v3173_v23  ;;  %v3328_v57 = vcombine.low %v3277_v62, %v3309_v39  ;;  %v3193_v10 = vcombine.high %v3141_v45, %v3173_v23  ;;  %v3329_v41 = vcombine.high %v3277_v62, %v3309_v39 }
 0x42e   :  { %3528 = vrot.lane.b32.xlu0 %v3326_v16, %s7346_s18  ;;  %3474 = vrot.lane.b32.xlu1 %v3191_v43, %s7340_s0  ;;  %v3194_v0 = vcombine.low %v3150_v61, %v3182_v46  ;;  %v3311_v56 = vcombine.high %v3245_v37, %v3261_v63  ;;  %v3330_v4 = vcombine.low %v3286_v5, %v3318_v54 }
 0x42f   :  { %v8420_v8 = vpop.permute.xlu1 %2864  ;;  %v3195_v1 = vcombine.high %v3150_v61, %v3182_v46  ;;  %v3189_v31 = vrot.slane %v3175_v60, %v7490_v58  ;;  %v3279_v36 = vcombine.high %v3213_v11, %v3229_v25  ;;  %v3157_v44 = vrot.slane %v3143_v28, %v7490_v58 }
 0x430   :  { %v3334_v26 = vcombine.low %v8390_v50, %v8420_v8  ;;  %v3331_v51 = vcombine.high %v3286_v5, %v3318_v54  ;;  %v3325_v16 = vrot.slane %v3311_v56, %v7490_v58  ;;  %v3335_v52 = vcombine.high %v8390_v50, %v8420_v8 }
 0x431   :  { %v3196_v22 = vcombine.low %v3157_v44, %v3189_v31  ;;  %v3293_v23 = vrot.slane %v3279_v36, %v7490_v58  ;;  %v3197_v27 = vcombine.high %v3157_v44, %v3189_v31 }
 0x432   :  { %3536 = vrot.lane.b32.xlu0 %v3327_v24, %s7347_s19  ;;  %3482 = vrot.lane.b32.xlu1 %v3192_v59, %s7341_s13  ;;  %v3342_v38 = vrot.slane %v3334_v26, %v7482_v48 }
 0x433   :  { %v8435_v32 = vpop.permute.xlu1 %2876  ;;  %v3332_v29 = vcombine.low %v3293_v23, %v3325_v16  ;;  %v3333_v39 = vcombine.high %v3293_v23, %v3325_v16 }
 0x434   :  { %v3350_v34 = vcombine.low %v8397_v19, %v8435_v32  ;;  %v3351_v62 = vcombine.high %v8397_v19, %v8435_v32  ;;  %v3349_v32 = vrot.slane %v3335_v52, %v7482_v48 }
 0x436   :  { %3544 = vrot.lane.b32.xlu0 %v3328_v57, %s7348_s20  ;;  %3490 = vrot.lane.b32.xlu1 %v3193_v10, %s7342_s14  ;;  %v3358_v42 = vrot.slane %v3350_v34, %v7482_v48  ;;  %v3365_v6 = vrot.slane %v3351_v62, %v7482_v48 }
 0x437   :  { %v2889_v15 = vpop.permute.xlu1 %2888 }
 0x438   :  { %v3398_v45 = vcombine.low %v3342_v38, %v3358_v42  ;;  %v3399_v53 = vcombine.high %v3342_v38, %v3358_v42  ;;  %v3414_v54 = vcombine.low %v3349_v32, %v3365_v6  ;;  %v3415_v28 = vcombine.high %v3349_v32, %v3365_v6 }
 0x43a   :  { %3552 = vrot.lane.b32.xlu0 %v3329_v41, %s7349_s21  ;;  %3498 = vrot.lane.b32.xlu1 %v3194_v0, %s7337_s10  ;;  %v3406_v18 = vrot.slane %v3398_v45, %v7490_v58  ;;  %v3413_v19 = vrot.slane %v3399_v53, %v7490_v58  ;;  %v3422_v60 = vrot.slane %v3414_v54, %v7490_v58 }
 0x43b   :  { %v2901_v12 = vpop.permute.xlu1 %2900 }
 0x43e   :  { %3560 = vrot.lane.b32.xlu0 %v3330_v4, %s7350_s22  ;;  %3506 = vrot.lane.b32.xlu1 %v3195_v1, %s7343_s15  ;;  %v3429_v4 = vrot.slane %v3415_v28, %v7490_v58 }
 0x43f   :  { %v2913_v35 = vpop.permute.xlu1 %2912 }
 0x440   :  { %v3366_v43 = vcombine.low %v2889_v15, %v2913_v35  ;;  %v3367_v11 = vcombine.high %v2889_v15, %v2913_v35 }
 0x442   :  { %3568 = vrot.lane.b32.xlu0 %v3331_v51, %s7351_s23  ;;  %3514 = vrot.lane.b32.xlu1 %v3196_v22, %s7344_s16  ;;  %v3374_v17 = vrot.slane %v3366_v43, %v7482_v48  ;;  %v3381_v61 = vrot.slane %v3367_v11, %v7482_v48 }
 0x443   :  { %v2925_v21 = vpop.permute.xlu1 %2924 }
 0x444   :  { %v3382_v55 = vcombine.low %v2901_v12, %v2925_v21  ;;  %v3383_v59 = vcombine.high %v2901_v12, %v2925_v21 }
 0x446   :  { %v3390_v63 = vrot.slane %v3382_v55, %v7482_v48  ;;  %3576 = vrot.lane.b32.xlu0 %v3332_v29, %s7352_s24  ;;  %3522 = vrot.lane.b32.xlu1 %v3197_v27, %s7345_s17  ;;  %v3397_v57 = vrot.slane %v3383_v59, %v7482_v48 }
 0x448   :  { %v3430_v24 = vcombine.low %v3374_v17, %v3390_v63  ;;  %v3431_v25 = vcombine.high %v3374_v17, %v3390_v63  ;;  %v3446_v15 = vcombine.low %v3381_v61, %v3397_v57  ;;  %v3447_v0 = vcombine.high %v3381_v61, %v3397_v57  ;;  %v3638_v61 = vld [vmem:[#allocation2] sm:$0xff] }
 0x449   :  { %v8510_v32 = vrot.slane %v3638_v61, %v7379_v3 }
 0x44a   :  { %3584 = vrot.lane.b32.xlu0 %v3333_v39, %s7353_s25  ;;  %v3438_v40 = vrot.slane %v3430_v24, %v7490_v58  ;;  %v3445_v46 = vrot.slane %v3431_v25, %v7490_v58  ;;  %v3454_v8 = vrot.slane %v3446_v15, %v7490_v58  ;;  %v3461_v56 = vrot.slane %v3447_v0, %v7490_v58 }
 0x44c   :  { %v3462_v37 = vcombine.low %v3406_v18, %v3438_v40  ;;  %v3463_v10 = vcombine.high %v3406_v18, %v3438_v40  ;;  %v3464_v41 = vcombine.low %v3413_v19, %v3445_v46  ;;  %v3465_v50 = vcombine.high %v3413_v19, %v3445_v46 }
 0x44d   :  { %v3466_v5 = vcombine.low %v3422_v60, %v3454_v8  ;;  %v3467_v12 = vcombine.high %v3422_v60, %v3454_v8  ;;  %v3468_v1 = vcombine.low %v3429_v4, %v3461_v56  ;;  %v3469_v31 = vcombine.high %v3429_v4, %v3461_v56 }
 0x44e   :  { %3530 = vrot.lane.b32.xlu1 %v3462_v37, %s7346_s18  ;;  %v8522_v60 = vrot.slane %v3638_v61, %v9954_v9  ;;  %v8533_v4 = vrot.slane %v3638_v61, %v9955_v49 }
 0x452   :  { %3538 = vrot.lane.b32.xlu1 %v3463_v10, %s7347_s19 }
 0x456   :  { %3546 = vrot.lane.b32.xlu1 %v3464_v41, %s7348_s20  ;;  %v8514_v41 = vrot.slane %v3638_v61, %v7376_v2 }
 0x45a   :  { %3554 = vrot.lane.b32.xlu1 %v3465_v50, %s7349_s21  ;;  %v8518_v50 = vrot.slane %v3638_v61, %v7384_v7 }
 0x45e   :  { %3562 = vrot.lane.b32.xlu1 %v3466_v5, %s7350_s22 }
 0x462   :  { %3570 = vrot.lane.b32.xlu1 %v3467_v12, %s7351_s23 }
 0x466   :  { %3578 = vrot.lane.b32.xlu1 %v3468_v1, %s7352_s24 }
 0x46a   :  { %3586 = vrot.lane.b32.xlu1 %v3469_v31, %s7353_s25 }
 0x480   :  { %v3473_v36 = vpop.permute.xlu0 %3472 }
 0x481   :  { %v3590_v27 = vsel %vm865_vm0, %v3054_v20, %v3473_v36 }
 0x484   :  { %v3481_v34 = vpop.permute.xlu0 %3480 }
 0x485   :  { %v3592_v45 = vsel %vm868_vm1, %v3590_v27, %v3481_v34  ;;  %v3639_v27 = vld [vmem:[#allocation2 + $0x8] sm:$0xff] }
 0x488   :  { %v3489_v35 = vpop.permute.xlu0 %3488 }
 0x489   :  { %v3594_v63 = vsel %vm871_vm2, %v3592_v45, %v3489_v35  ;;  %v8562_v45 = vrot.slane %v3639_v27, %v7379_v3 }
 0x48c   :  { %v3497_v44 = vpop.permute.xlu0 %3496 }
 0x48d   :  { %v3596_v39 = vsel %vm874_vm3, %v3594_v63, %v3497_v44  ;;  %v8572_v63 = vrot.slane %v3639_v27, %v7384_v7 }
 0x490   :  { %v3505_v26 = vpop.permute.xlu0 %3504 }
 0x491   :  { %v3598_v18 = vsel %vm877_vm4, %v3596_v39, %v3505_v26  ;;  %v8582_v39 = vrot.slane %v3639_v27, %v9955_v49 }
 0x494   :  { %v3513_v51 = vpop.permute.xlu0 %3512 }
 0x495   :  { %v3600_v40 = vsel %vm880_vm5, %v3598_v18, %v3513_v51 }
 0x498   :  { %v3521_v16 = vpop.permute.xlu0 %3520 }
 0x499   :  { %v3602_v25 = vsel %vm883_vm6, %v3600_v40, %v3521_v16 }
 0x4a0   :  { %v3529_v22 = vpop.permute.xlu0 %3528  ;;  %v3475_v42 = vpop.permute.xlu1 %3474 }
 0x4a1   :  { %v3604_v37 = vsel %vm886_vm7, %v3602_v25, %v3529_v22  ;;  %v3591_v0 = vsel %vm865_vm0, %v3190_v13, %v3475_v42  ;;  %v9965_v13 = vld [vmem:[#allocation10_spill] sm:$0xff]  ;;  %v9966_v22 = vld [vmem:[#allocation11_spill] sm:$0xff] }
 0x4a2   :  { %v8541_v34 = vrot.slane %v3638_v61, %v9965_v13  ;;  %v8549_v42 = vrot.slane %v3638_v61, %v9966_v22  ;;  %v8587_v18 = vrot.slane %v3639_v27, %v9965_v13  ;;  %v8592_v40 = vrot.slane %v3639_v27, %v9966_v22 }
 0x4a4   :  { %v3537_v43 = vpop.permute.xlu0 %3536  ;;  %v3483_v23 = vpop.permute.xlu1 %3482 }
 0x4a5   :  { %v3606_v30 = vsel %vm889_vm8, %v3604_v37, %v3537_v43  ;;  %v3593_v5 = vsel %vm868_vm1, %v3591_v0, %v3483_v23 }
 0x4a8   :  { %v3545_v21 = vpop.permute.xlu0 %3544  ;;  %v3491_v38 = vpop.permute.xlu1 %3490 }
 0x4a9   :  { %v3608_v20 = vsel %vm892_vm9, %v3606_v30, %v3545_v21  ;;  %v3595_v12 = vsel %vm871_vm2, %v3593_v5, %v3491_v38 }
 0x4ac   :  { %v3553_v55 = vpop.permute.xlu0 %3552  ;;  %v3499_v29 = vpop.permute.xlu1 %3498 }
 0x4ad   :  { %v3610_v53 = vsel %vm895_vm10, %v3608_v20, %v3553_v55  ;;  %v3597_v56 = vsel %vm874_vm3, %v3595_v12, %v3499_v29  ;;  %v9968_v55 = vld [vmem:[#allocation12_spill] sm:$0xff] }
 0x4ae   :  { %v8557_v29 = vrot.slane %v3638_v61, %v9968_v55 }
 0x4b0   :  { %v3561_v17 = vpop.permute.xlu0 %3560  ;;  %v3507_v24 = vpop.permute.xlu1 %3506 }
 0x4b1   :  { %v3612_v11 = vsel %vm898_vm11, %v3610_v53, %v3561_v17  ;;  %v3599_v1 = vsel %vm877_vm4, %v3597_v56, %v3507_v24  ;;  %v8567_v17 = vrot.slane %v3639_v27, %v7376_v2  ;;  %v8577_v24 = vrot.slane %v3639_v27, %v9954_v9 }
 0x4b4   :  { %v3569_v59 = vpop.permute.xlu0 %3568  ;;  %v3515_v47 = vpop.permute.xlu1 %3514 }
 0x4b5   :  { %v3614_v52 = vsel %vm901_vm12, %v3612_v11, %v3569_v59  ;;  %v3601_v31 = vsel %vm880_vm5, %v3599_v1, %v3515_v47  ;;  %v8597_v59 = vrot.slane %v3639_v27, %v9968_v55 }
 0x4b8   :  { %v3577_v62 = vpop.permute.xlu0 %3576  ;;  %v3523_v57 = vpop.permute.xlu1 %3522 }
 0x4b9   :  { %v3616_v10 = vsel %vm9932_vm13, %v3614_v52, %v3577_v62  ;;  %v3603_v33 = vsel %vm883_vm6, %v3601_v31, %v3523_v57 }
 0x4bc   :  { %v3585_v46 = vpop.permute.xlu0 %3584 }
 0x4bd   :  { %v3618_v6 = vsel %vm9964_vm14, %v3616_v10, %v3585_v46  ;;  %vm9969_vm14 = vcmask 785920  }
 0x4be   :  { %3622 = vrot.lane.b32.xlu0 %v3618_v6, %s7355_s27 }
 0x4c0   :  { %v3531_v19 = vpop.permute.xlu1 %3530 }
 0x4c1   :  { %v3605_v14 = vsel %vm886_vm7, %v3603_v33, %v3531_v19 }
 0x4c2   :  { %3630 = vrot.lane.b32.xlu0 %v3618_v6, %s7356_s28 }
 0x4c4   :  { %v3539_v15 = vpop.permute.xlu1 %3538 }
 0x4c5   :  { %v3607_v35 = vsel %vm889_vm8, %v3605_v14, %v3539_v15 }
 0x4c6   :  { %3646 = vbcast.lane.b32.xlu0 %v8510_v32, 320 }
 0x4c8   :  { %v3547_v54 = vpop.permute.xlu1 %3546 }
 0x4c9   :  { %v3609_v44 = vsel %vm892_vm9, %v3607_v35, %v3547_v54 }
 0x4ca   :  { %3658 = vbcast.lane.b32.xlu0 %v8514_v41, 320 }
 0x4cc   :  { %v3555_v8 = vpop.permute.xlu1 %3554 }
 0x4cd   :  { %v3611_v51 = vsel %vm895_vm10, %v3609_v44, %v3555_v8 }
 0x4ce   :  { %3670 = vbcast.lane.b32.xlu0 %v8518_v50, 320 }
 0x4d0   :  { %v3563_v28 = vpop.permute.xlu1 %3562 }
 0x4d1   :  { %v3613_v16 = vsel %vm898_vm11, %v3611_v51, %v3563_v28 }
 0x4d2   :  { %3682 = vbcast.lane.b32.xlu0 %v8522_v60, 320 }
 0x4d4   :  { %v3571_v36 = vpop.permute.xlu1 %3570 }
 0x4d5   :  { %v3615_v43 = vsel %vm901_vm12, %v3613_v16, %v3571_v36 }
 0x4d6   :  { %3694 = vbcast.lane.b32.xlu0 %v8533_v4, 320 }
 0x4d8   :  { %v3579_v26 = vpop.permute.xlu1 %3578 }
 0x4d9   :  { %v3617_v23 = vsel %vm9932_vm13, %v3615_v43, %v3579_v26  ;;  %vm9971_vm13 = vmmov %vm9969_vm14 }
 0x4da   :  { %3706 = vbcast.lane.b32.xlu0 %v8541_v34, 320 }
 0x4dc   :  { %v3587_v21 = vpop.permute.xlu1 %3586 }
 0x4dd   :  { %v3619_v38 = vsel %vm9967_vm15, %v3617_v23, %v3587_v21  ;;  %vm9970_vm15 = vcmask 1048320  }
 0x4de   :  { %3624 = vrot.lane.b32.xlu1 %v3619_v38, %s7355_s27  ;;  %3718 = vbcast.lane.b32.xlu0 %v8549_v42, 320 }
 0x4e2   :  { %3632 = vrot.lane.b32.xlu1 %v3619_v38, %s7356_s28  ;;  %3730 = vbcast.lane.b32.xlu0 %v8557_v29, 320 }
 0x4e6   :  { %3650 = vbcast.lane.b32.xlu1 %v8510_v32, 328  ;;  %3742 = vbcast.lane.b32.xlu0 %v8562_v45, 320 }
 0x4ea   :  { %3662 = vbcast.lane.b32.xlu1 %v8514_v41, 328  ;;  %3754 = vbcast.lane.b32.xlu0 %v8567_v17, 320 }
 0x4ee   :  { %3674 = vbcast.lane.b32.xlu1 %v8518_v50, 328  ;;  %3766 = vbcast.lane.b32.xlu0 %v8572_v63, 320 }
 0x4f2   :  { %3686 = vbcast.lane.b32.xlu1 %v8522_v60, 328  ;;  %3778 = vbcast.lane.b32.xlu0 %v8577_v24, 320 }
 0x4f6   :  { %3698 = vbcast.lane.b32.xlu1 %v8533_v4, 328  ;;  %3790 = vbcast.lane.b32.xlu0 %v8582_v39, 320 }
 0x4fa   :  { %3710 = vbcast.lane.b32.xlu1 %v8541_v34, 328  ;;  %3802 = vbcast.lane.b32.xlu0 %v8587_v18, 320 }
 0x4fe   :  { %3722 = vbcast.lane.b32.xlu1 %v8549_v42, 328  ;;  %3814 = vbcast.lane.b32.xlu0 %v8592_v40, 320 }
 0x502   :  { %3734 = vbcast.lane.b32.xlu1 %v8557_v29, 328  ;;  %3826 = vbcast.lane.b32.xlu0 %v8597_v59, 320 }
 0x506   :  { %3746 = vbcast.lane.b32.xlu1 %v8562_v45, 328 }
 0x50a   :  { %3758 = vbcast.lane.b32.xlu1 %v8567_v17, 328 }
 0x50e   :  { %3770 = vbcast.lane.b32.xlu1 %v8572_v63, 328 }
 0x512   :  { %3782 = vbcast.lane.b32.xlu1 %v8577_v24, 328 }
 0x516   :  { %3794 = vbcast.lane.b32.xlu1 %v8582_v39, 328 }
 0x51a   :  { %3806 = vbcast.lane.b32.xlu1 %v8587_v18, 328 }
 0x51e   :  { %3818 = vbcast.lane.b32.xlu1 %v8592_v40, 328 }
 0x522   :  { %3830 = vbcast.lane.b32.xlu1 %v8597_v59, 328 }
 0x530   :  { %v3623_v25 = vpop.permute.xlu0 %3622 }
 0x531   :  { %3628 = vst.msk [vmem:[#allocation5 + $0x8] sm:$0xff] %vm9969_vm14, %v3623_v25  ;;  %vm9972_vm14 = vmmov %vm9970_vm15 }
 0x534   :  { %v3631_v37 = vpop.permute.xlu0 %3630 }
 0x535   :  { %3636 = vst.msk [vmem:[#allocation5 + $0x8] sm:$0xff] %vm9970_vm15, %v3631_v37  ;;  %vm9975_vm15 = vcmask 244736  }
 0x538   :  { %v3647_v47 = vpop.permute.xlu0 %3646 }
 0x53c   :  { %v3659_v30 = vpop.permute.xlu0 %3658 }
 0x540   :  { %v3671_v20 = vpop.permute.xlu0 %3670 }
 0x541   :  { %v3832_v46 = vcombine.low %v3647_v47, %v3671_v20  ;;  %v3833_v43 = vcombine.high %v3647_v47, %v3671_v20 }
 0x543   :  { %v3840_v54 = vrot.slane %v3832_v46, %v7482_v48  ;;  %v3847_v20 = vrot.slane %v3833_v43, %v7482_v48 }
 0x544   :  { %v3683_v62 = vpop.permute.xlu0 %3682 }
 0x545   :  { %v3848_v52 = vcombine.low %v3659_v30, %v3683_v62  ;;  %v3849_v33 = vcombine.high %v3659_v30, %v3683_v62 }
 0x547   :  { %v3856_v6 = vrot.slane %v3848_v52, %v7482_v48  ;;  %v3863_v25 = vrot.slane %v3849_v33, %v7482_v48 }
 0x548   :  { %v3695_v53 = vpop.permute.xlu0 %3694 }
 0x549   :  { %v3896_v0 = vcombine.low %v3840_v54, %v3856_v6  ;;  %v3897_v14 = vcombine.high %v3840_v54, %v3856_v6  ;;  %v3912_v52 = vcombine.low %v3847_v20, %v3863_v25 }
 0x54b   :  { %v8622_v44 = vrot.slane %v3896_v0, %v7490_v58  ;;  %v3911_v30 = vrot.slane %v3897_v14, %v7490_v58  ;;  %v3913_v0 = vcombine.high %v3847_v20, %v3863_v25 }
 0x54c   :  { %v3707_v11 = vpop.permute.xlu0 %3706 }
 0x54d   :  { %v3927_v33 = vrot.slane %v3913_v0, %v7490_v58 }
 0x550   :  { %v3625_v57 = vpop.permute.xlu1 %3624  ;;  %v3719_v10 = vpop.permute.xlu0 %3718 }
 0x551   :  { %3629 = vst.msk [vmem:[#allocation5 + $0x28] sm:$0xff] %vm9971_vm13, %v3625_v57  ;;  %v3864_v61 = vcombine.low %v3695_v53, %v3719_v10  ;;  %v3865_v35 = vcombine.high %v3695_v53, %v3719_v10  ;;  %vm9974_vm13 = vcmask 228352  }
 0x553   :  { %v3872_v5 = vrot.slane %v3864_v61, %v7482_v48  ;;  %v3879_v37 = vrot.slane %v3865_v35, %v7482_v48  ;;  %v3920_v61 = vrot.slane %v3912_v52, %v7490_v58 }
 0x554   :  { %v3633_v19 = vpop.permute.xlu1 %3632  ;;  %v3731_v15 = vpop.permute.xlu0 %3730 }
 0x555   :  { %3637 = vst.msk [vmem:[#allocation5 + $0x28] sm:$0xff] %vm9972_vm14, %v3633_v19  ;;  %v3880_v8 = vcombine.low %v3707_v11, %v3731_v15  ;;  %v3881_v1 = vcombine.high %v3707_v11, %v3731_v15  ;;  %vm9976_vm14 = vcmask 261120  }
 0x557   :  { %v3888_v28 = vrot.slane %v3880_v8, %v7482_v48  ;;  %v3895_v23 = vrot.slane %v3881_v1, %v7482_v48 }
 0x558   :  { %v8617_v12 = vpop.permute.xlu1 %3650  ;;  %v8619_v56 = vpop.permute.xlu0 %3742 }
 0x559   :  { %v3928_v31 = vcombine.low %v3872_v5, %v3888_v28  ;;  %v3929_v36 = vcombine.high %v3872_v5, %v3888_v28  ;;  %v3944_v53 = vcombine.low %v3879_v37, %v3895_v23  ;;  %v3945_v54 = vcombine.high %v3879_v37, %v3895_v23 }
 0x55b   :  { %v8625_v26 = vrot.slane %v3928_v31, %v7490_v58  ;;  %v3943_v38 = vrot.slane %v3929_v36, %v7490_v58  ;;  %v3952_v6 = vrot.slane %v3944_v53, %v7490_v58  ;;  %v3959_v31 = vrot.slane %v3945_v54, %v7490_v58 }
 0x55c   :  { %v8627_v51 = vpop.permute.xlu1 %3662  ;;  %v8629_v16 = vpop.permute.xlu0 %3754 }
 0x55d   :  { %v3961_v21 = vcombine.high %v8622_v44, %v8625_v26  ;;  %v3962_v11 = vcombine.low %v3911_v30, %v3943_v38  ;;  %v3963_v46 = vcombine.high %v3911_v30, %v3943_v38  ;;  %v3964_v8 = vcombine.low %v3920_v61, %v3952_v6 }
 0x55e   :  { %v3965_v1 = vcombine.high %v3920_v61, %v3952_v6  ;;  %v3967_v61 = vcombine.high %v3927_v33, %v3959_v31 }
 0x55f   :  { %4378 = vrot.lane.b32.xlu0 %v3961_v21, %s7340_s0  ;;  %v3966_v21 = vcombine.low %v3927_v33, %v3959_v31 }
 0x560   :  { %v8641_v62 = vpop.permute.xlu1 %3674  ;;  %v8643_v47 = vpop.permute.xlu0 %3766 }
 0x561   :  { %v4104_v23 = vcombine.low %v8617_v12, %v8641_v62  ;;  %v3968_v38 = vcombine.low %v8619_v56, %v8643_v47 }
 0x563   :  { %4386 = vrot.lane.b32.xlu0 %v3962_v11, %s7341_s13  ;;  %v4112_v52 = vrot.slane %v4104_v23, %v7482_v48  ;;  %v3976_v54 = vrot.slane %v3968_v38, %v7482_v48 }
 0x564   :  { %v8647_v57 = vpop.permute.xlu1 %3686  ;;  %v8649_v10 = vpop.permute.xlu0 %3778 }
 0x565   :  { %v4120_v36 = vcombine.low %v8627_v51, %v8647_v57  ;;  %v3984_v14 = vcombine.low %v8629_v16, %v8649_v10  ;;  %v3985_v33 = vcombine.high %v8629_v16, %v8649_v10  ;;  %v3969_v16 = vcombine.high %v8619_v56, %v8643_v47 }
 0x567   :  { %4394 = vrot.lane.b32.xlu0 %v3963_v46, %s7342_s14  ;;  %v4128_v25 = vrot.slane %v4120_v36, %v7482_v48  ;;  %v3992_v30 = vrot.slane %v3984_v14, %v7482_v48 }
 0x568   :  { %v8654_v19 = vpop.permute.xlu1 %3698  ;;  %v8656_v15 = vpop.permute.xlu0 %3790 }
 0x569   :  { %v4032_v14 = vcombine.low %v3976_v54, %v3992_v30 }
 0x56b   :  { %4402 = vrot.lane.b32.xlu0 %v3964_v8, %s7337_s10  ;;  %v4168_v8 = vcombine.low %v4112_v52, %v4128_v25 }
 0x56c   :  { %v8659_v5 = vpop.permute.xlu1 %3710  ;;  %v3803_v28 = vpop.permute.xlu0 %3802 }
 0x56d   :  { %v4176_v38 = vrot.slane %v4168_v8, %v7490_v58 }
 0x56f   :  { %4410 = vrot.lane.b32.xlu0 %v3965_v1, %s7343_s15 }
 0x570   :  { %v8668_v35 = vpop.permute.xlu1 %3722  ;;  %v3815_v43 = vpop.permute.xlu0 %3814 }
 0x571   :  { %v4136_v37 = vcombine.low %v8654_v19, %v8668_v35  ;;  %v4000_v20 = vcombine.low %v8656_v15, %v3815_v43 }
 0x573   :  { %4418 = vrot.lane.b32.xlu0 %v3966_v21, %s7344_s16  ;;  %v4144_v0 = vrot.slane %v4136_v37, %v7482_v48  ;;  %v4008_v21 = vrot.slane %v4000_v20, %v7482_v48  ;;  %v8698_v20 = vrot.slane %v4032_v14, %v7490_v58 }
 0x574   :  { %v3735_v53 = vpop.permute.xlu1 %3734  ;;  %v3827_v11 = vpop.permute.xlu0 %3826 }
 0x575   :  { %v4152_v46 = vcombine.low %v8659_v5, %v3735_v53  ;;  %v4016_v6 = vcombine.low %v3803_v28, %v3827_v11  ;;  %v4017_v55 = vcombine.high %v3803_v28, %v3827_v11  ;;  %v4153_v28 = vcombine.high %v8659_v5, %v3735_v53 }
 0x576   :  { %v3999_v5 = vrot.slane %v3985_v33, %v7482_v48 }
 0x577   :  { %v4160_v1 = vrot.slane %v4152_v46, %v7482_v48  ;;  %v4024_v36 = vrot.slane %v4016_v6, %v7482_v48  ;;  %4426 = vrot.lane.b32.xlu0 %v3967_v61, %s7345_s17  ;;  %v4033_v46 = vcombine.high %v3976_v54, %v3992_v30  ;;  %v4001_v6 = vcombine.high %v8656_v15, %v3815_v43 }
 0x578   :  { %v8688_v27 = vpop.permute.xlu1 %3746  ;;  %v4031_v10 = vrot.slane %v4017_v55, %v7482_v48  ;;  %v4121_v30 = vcombine.high %v8627_v51, %v8647_v57  ;;  %v4169_v54 = vcombine.high %v4112_v52, %v4128_v25  ;;  %v4105_v51 = vcombine.high %v8617_v12, %v8641_v62 }
 0x579   :  { %v4200_v23 = vcombine.low %v4144_v0, %v4160_v1  ;;  %v4064_v22 = vcombine.low %v4008_v21, %v4024_v36  ;;  %v4065_v31 = vcombine.high %v4008_v21, %v4024_v36  ;;  %v4201_v11 = vcombine.high %v4144_v0, %v4160_v1 }
 0x57a   :  { %v4015_v56 = vrot.slane %v4001_v6, %v7482_v48  ;;  %v4047_v47 = vrot.slane %v4033_v46, %v7490_v58  ;;  %v4167_v57 = vrot.slane %v4153_v28, %v7482_v48  ;;  %v3983_v25 = vrot.slane %v3969_v16, %v7482_v48 }
 0x57b   :  { %v4208_v37 = vrot.slane %v4200_v23, %v7490_v58  ;;  %v8701_v13 = vrot.slane %v4064_v22, %v7490_v58  ;;  %v4079_v43 = vrot.slane %v4065_v31, %v7490_v58  ;;  %v4137_v22 = vcombine.high %v8654_v19, %v8668_v35 }
 0x57c   :  { %v8695_v61 = vpop.permute.xlu1 %3758  ;;  %v4215_v35 = vrot.slane %v4201_v11, %v7490_v58  ;;  %v4080_v52 = vcombine.low %v4015_v56, %v4031_v10  ;;  %v4135_v0 = vrot.slane %v4121_v30, %v7482_v48  ;;  %v4183_v14 = vrot.slane %v4169_v54, %v7490_v58 }
 0x57d   :  { %v4232_v36 = vcombine.low %v4176_v38, %v4208_v37  ;;  %v4097_v15 = vcombine.high %v8698_v20, %v8701_v13  ;;  %v4096_v53 = vcombine.low %v8698_v20, %v8701_v13  ;;  %v4233_v19 = vcombine.high %v4176_v38, %v4208_v37 }
 0x57e   :  { %v4098_v8 = vcombine.low %v4047_v47, %v4079_v43  ;;  %v4151_v1 = vrot.slane %v4137_v22, %v7482_v48  ;;  %v4048_v21 = vcombine.low %v3983_v25, %v3999_v5  ;;  %v4119_v62 = vrot.slane %v4105_v51, %v7482_v48 }
 0x57f   :  { %4434 = vrot.lane.b32.xlu0 %v4232_v36, %s7346_s18  ;;  %4380 = vrot.lane.b32.xlu1 %v4097_v15, %s7340_s0  ;;  %v4234_v31 = vcombine.low %v4183_v14, %v4215_v35  ;;  %v4099_v33 = vcombine.high %v4047_v47, %v4079_v43  ;;  %v4088_v38 = vrot.slane %v4080_v52, %v7490_v58 }
 0x580   :  { %v8718_v55 = vpop.permute.xlu1 %3770  ;;  %v4216_v23 = vcombine.low %v4151_v1, %v4167_v57  ;;  %v4184_v37 = vcombine.low %v4119_v62, %v4135_v0  ;;  %v4056_v6 = vrot.slane %v4048_v21, %v7490_v58  ;;  %v4235_v28 = vcombine.high %v4183_v14, %v4215_v35 }
 0x581   :  { %v4081_v36 = vcombine.high %v4015_v56, %v4031_v10  ;;  %v4049_v43 = vcombine.high %v3983_v25, %v3999_v5  ;;  %v4217_v54 = vcombine.high %v4151_v1, %v4167_v57  ;;  %v4240_v5 = vcombine.low %v8688_v27, %v8718_v55 }
 0x582   :  { %v4224_v11 = vrot.slane %v4216_v23, %v7490_v58  ;;  %v4100_v16 = vcombine.low %v4056_v6, %v4088_v38  ;;  %v4192_v15 = vrot.slane %v4184_v37, %v7490_v58  ;;  %v4101_v47 = vcombine.high %v4056_v6, %v4088_v38 }
 0x583   :  { %4442 = vrot.lane.b32.xlu0 %v4233_v19, %s7347_s19  ;;  %4388 = vrot.lane.b32.xlu1 %v4098_v8, %s7341_s13  ;;  %v4095_v51 = vrot.slane %v4081_v36, %v7490_v58  ;;  %v4185_v19 = vcombine.high %v4119_v62, %v4135_v0  ;;  %v4063_v56 = vrot.slane %v4049_v43, %v7490_v58 }
 0x584   :  { %v8733_v12 = vpop.permute.xlu1 %3782  ;;  %v4236_v22 = vcombine.low %v4192_v15, %v4224_v11  ;;  %v4237_v25 = vcombine.high %v4192_v15, %v4224_v11  ;;  %v4231_v57 = vrot.slane %v4217_v54, %v7490_v58  ;;  %v4248_v21 = vrot.slane %v4240_v5, %v7482_v48 }
 0x585   :  { %v4256_v35 = vcombine.low %v8695_v61, %v8733_v12  ;;  %v4102_v52 = vcombine.low %v4063_v56, %v4095_v51  ;;  %v4199_v1 = vrot.slane %v4185_v19, %v7490_v58  ;;  %v4257_v54 = vcombine.high %v8695_v61, %v8733_v12 }
 0x587   :  { %4450 = vrot.lane.b32.xlu0 %v4234_v31, %s7348_s20  ;;  %4396 = vrot.lane.b32.xlu1 %v4099_v33, %s7342_s14  ;;  %v4264_v8 = vrot.slane %v4256_v35, %v7482_v48  ;;  %v4238_v23 = vcombine.low %v4199_v1, %v4231_v57  ;;  %v4103_v31 = vcombine.high %v4063_v56, %v4095_v51 }
 0x588   :  { %v3795_v46 = vpop.permute.xlu1 %3794  ;;  %v4241_v51 = vcombine.high %v8688_v27, %v8718_v55  ;;  %v4271_v5 = vrot.slane %v4257_v54, %v7482_v48 }
 0x589   :  { %v4304_v33 = vcombine.low %v4248_v21, %v4264_v8 }
 0x58a   :  { %v4255_v12 = vrot.slane %v4241_v51, %v7482_v48 }
 0x58b   :  { %4458 = vrot.lane.b32.xlu0 %v4235_v28, %s7349_s21  ;;  %4404 = vrot.lane.b32.xlu1 %v4100_v16, %s7337_s10  ;;  %v4239_v28 = vcombine.high %v4199_v1, %v4231_v57  ;;  %v4312_v11 = vrot.slane %v4304_v33, %v7490_v58 }
 0x58c   :  { %v3807_v30 = vpop.permute.xlu1 %3806 }
 0x58f   :  { %4466 = vrot.lane.b32.xlu0 %v4236_v22, %s7350_s22  ;;  %4412 = vrot.lane.b32.xlu1 %v4101_v47, %s7343_s15  ;;  %v4305_v22 = vcombine.high %v4248_v21, %v4264_v8 }
 0x590   :  { %v3819_v10 = vpop.permute.xlu1 %3818 }
 0x591   :  { %v4272_v0 = vcombine.low %v3795_v46, %v3819_v10  ;;  %v4273_v47 = vcombine.high %v3795_v46, %v3819_v10  ;;  %v4319_v61 = vrot.slane %v4305_v22, %v7490_v58 }
 0x593   :  { %4474 = vrot.lane.b32.xlu0 %v4237_v25, %s7351_s23  ;;  %4420 = vrot.lane.b32.xlu1 %v4102_v52, %s7344_s16  ;;  %v4280_v38 = vrot.slane %v4272_v0, %v7482_v48  ;;  %v4320_v25 = vcombine.low %v4255_v12, %v4271_v5  ;;  %v4321_v0 = vcombine.high %v4255_v12, %v4271_v5 }
 0x594   :  { %v3831_v14 = vpop.permute.xlu1 %3830 }
 0x595   :  { %v4288_v62 = vcombine.low %v3807_v30, %v3831_v14  ;;  %v4289_v16 = vcombine.high %v3807_v30, %v3831_v14  ;;  %v4287_v30 = vrot.slane %v4273_v47, %v7482_v48  ;;  %v4328_v57 = vrot.slane %v4320_v25, %v7490_v58 }
 0x596   :  { %v4335_v21 = vrot.slane %v4321_v0, %v7490_v58 }
 0x597   :  { %v4296_v37 = vrot.slane %v4288_v62, %v7482_v48  ;;  %4482 = vrot.lane.b32.xlu0 %v4238_v23, %s7352_s24  ;;  %4428 = vrot.lane.b32.xlu1 %v4103_v31, %s7345_s17  ;;  %v4303_v19 = vrot.slane %v4289_v16, %v7482_v48 }
 0x599   :  { %v4336_v6 = vcombine.low %v4280_v38, %v4296_v37  ;;  %v4337_v15 = vcombine.high %v4280_v38, %v4296_v37  ;;  %v4352_v46 = vcombine.low %v4287_v30, %v4303_v19  ;;  %v4353_v52 = vcombine.high %v4287_v30, %v4303_v19 }
 0x59a   :  { %v9973_v19 = vcombine.low %v8622_v44, %v8625_v26 }
 0x59b   :  { %4490 = vrot.lane.b32.xlu0 %v4239_v28, %s7353_s25  ;;  %v4344_v36 = vrot.slane %v4336_v6, %v7490_v58  ;;  %v4351_v56 = vrot.slane %v4337_v15, %v7490_v58  ;;  %v4360_v55 = vrot.slane %v4352_v46, %v7490_v58  ;;  %v4367_v14 = vrot.slane %v4353_v52, %v7490_v58 }
 0x59d   :  { %v4368_v43 = vcombine.low %v4312_v11, %v4344_v36  ;;  %v4369_v35 = vcombine.high %v4312_v11, %v4344_v36  ;;  %v4370_v10 = vcombine.low %v4319_v61, %v4351_v56  ;;  %v4371_v27 = vcombine.high %v4319_v61, %v4351_v56 }
 0x59e   :  { %v4372_v8 = vcombine.low %v4328_v57, %v4360_v55  ;;  %v4373_v1 = vcombine.high %v4328_v57, %v4360_v55  ;;  %v4374_v62 = vcombine.low %v4335_v21, %v4367_v14  ;;  %v4375_v23 = vcombine.high %v4335_v21, %v4367_v14 }
 0x59f   :  { %4436 = vrot.lane.b32.xlu1 %v4368_v43, %s7346_s18 }
 0x5a3   :  { %4444 = vrot.lane.b32.xlu1 %v4369_v35, %s7347_s19 }
 0x5a7   :  { %4452 = vrot.lane.b32.xlu1 %v4370_v10, %s7348_s20 }
 0x5ab   :  { %4460 = vrot.lane.b32.xlu1 %v4371_v27, %s7349_s21 }
 0x5af   :  { %4468 = vrot.lane.b32.xlu1 %v4372_v8, %s7350_s22 }
 0x5b3   :  { %4476 = vrot.lane.b32.xlu1 %v4373_v1, %s7351_s23 }
 0x5b7   :  { %4484 = vrot.lane.b32.xlu1 %v4374_v62, %s7352_s24 }
 0x5bb   :  { %4492 = vrot.lane.b32.xlu1 %v4375_v23, %s7353_s25 }
 0x5d1   :  { %v4379_v31 = vpop.permute.xlu0 %4378 }
 0x5d2   :  { %v4496_v35 = vsel %vm865_vm0, %v9973_v19, %v4379_v31 }
 0x5d5   :  { %v4387_v33 = vpop.permute.xlu0 %4386 }
 0x5d6   :  { %v4498_v56 = vsel %vm868_vm1, %v4496_v35, %v4387_v33 }
 0x5d9   :  { %v4395_v38 = vpop.permute.xlu0 %4394 }
 0x5da   :  { %v4500_v30 = vsel %vm871_vm2, %v4498_v56, %v4395_v38 }
 0x5dd   :  { %v4403_v37 = vpop.permute.xlu0 %4402 }
 0x5de   :  { %v4502_v12 = vsel %vm874_vm3, %v4500_v30, %v4403_v37 }
 0x5e1   :  { %v4411_v6 = vpop.permute.xlu0 %4410 }
 0x5e2   :  { %v4504_v46 = vsel %vm877_vm4, %v4502_v12, %v4411_v6 }
 0x5e5   :  { %v4419_v28 = vpop.permute.xlu0 %4418 }
 0x5e6   :  { %v4506_v10 = vsel %vm880_vm5, %v4504_v46, %v4419_v28 }
 0x5e9   :  { %v4427_v11 = vpop.permute.xlu0 %4426 }
 0x5ea   :  { %v4508_v27 = vsel %vm883_vm6, %v4506_v10, %v4427_v11 }
 0x5f1   :  { %v4435_v36 = vpop.permute.xlu0 %4434  ;;  %v4381_v16 = vpop.permute.xlu1 %4380 }
 0x5f2   :  { %v4510_v55 = vsel %vm886_vm7, %v4508_v27, %v4435_v36  ;;  %v4497_v6 = vsel %vm865_vm0, %v4096_v53, %v4381_v16 }
 0x5f5   :  { %v4443_v15 = vpop.permute.xlu0 %4442  ;;  %v4389_v43 = vpop.permute.xlu1 %4388 }
 0x5f6   :  { %v4512_v26 = vsel %vm889_vm8, %v4510_v55, %v4443_v15  ;;  %v4499_v28 = vsel %vm868_vm1, %v4497_v6, %v4389_v43 }
 0x5f9   :  { %v4451_v54 = vpop.permute.xlu0 %4450  ;;  %v4397_v22 = vpop.permute.xlu1 %4396 }
 0x5fa   :  { %v4514_v57 = vsel %vm892_vm9, %v4512_v26, %v4451_v54  ;;  %v4501_v36 = vsel %vm871_vm2, %v4499_v28, %v4397_v22 }
 0x5fd   :  { %v4459_v47 = vpop.permute.xlu0 %4458  ;;  %v4405_v51 = vpop.permute.xlu1 %4404 }
 0x5fe   :  { %v4516_v8 = vsel %vm895_vm10, %v4514_v57, %v4459_v47  ;;  %v4503_v15 = vsel %vm874_vm3, %v4501_v36, %v4405_v51 }
 0x601   :  { %v4467_v5 = vpop.permute.xlu0 %4466  ;;  %v4413_v61 = vpop.permute.xlu1 %4412 }
 0x602   :  { %v4518_v0 = vsel %vm898_vm11, %v4516_v8, %v4467_v5  ;;  %v4505_v54 = vsel %vm877_vm4, %v4503_v15, %v4413_v61 }
 0x605   :  { %v4475_v25 = vpop.permute.xlu0 %4474  ;;  %v4421_v44 = vpop.permute.xlu1 %4420 }
 0x606   :  { %v4520_v1 = vsel %vm901_vm12, %v4518_v0, %v4475_v25  ;;  %v4507_v47 = vsel %vm880_vm5, %v4505_v54, %v4421_v44 }
 0x609   :  { %v4483_v52 = vpop.permute.xlu0 %4482  ;;  %v4429_v14 = vpop.permute.xlu1 %4428 }
 0x60a   :  { %v4522_v21 = vsel %vm9974_vm13, %v4520_v1, %v4483_v52  ;;  %v4509_v35 = vsel %vm883_vm6, %v4507_v47, %v4429_v14 }
 0x60d   :  { %v4491_v62 = vpop.permute.xlu0 %4490 }
 0x60e   :  { %v4524_v23 = vsel %vm9975_vm15, %v4522_v21, %v4491_v62 }
 0x60f   :  { %4526 = vst.msk [vmem:[#allocation5 + $0x10] sm:$0xff] %vm9976_vm14, %v4524_v23  ;;  %4530 = vrot.lane.b32.xlu0 %v4524_v23, %s7354_s26 }
 0x611   :  { %v4437_v31 = vpop.permute.xlu1 %4436 }
 0x612   :  { %v4511_v13 = vsel %vm886_vm7, %v4509_v35, %v4437_v31 }
 0x613   :  { %4546 = vbcast.lane.b32.xlu0 %v8510_v32, 336 }
 0x615   :  { %v4445_v33 = vpop.permute.xlu1 %4444 }
 0x616   :  { %v4513_v20 = vsel %vm889_vm8, %v4511_v13, %v4445_v33 }
 0x617   :  { %4558 = vbcast.lane.b32.xlu0 %v8514_v41, 336 }
 0x619   :  { %v4453_v38 = vpop.permute.xlu1 %4452 }
 0x61a   :  { %v4515_v53 = vsel %vm892_vm9, %v4513_v20, %v4453_v38 }
 0x61b   :  { %4570 = vbcast.lane.b32.xlu0 %v8518_v50, 336 }
 0x61d   :  { %v4461_v37 = vpop.permute.xlu1 %4460 }
 0x61e   :  { %v4517_v43 = vsel %vm895_vm10, %v4515_v53, %v4461_v37 }
 0x61f   :  { %4582 = vbcast.lane.b32.xlu0 %v8522_v60, 336 }
 0x621   :  { %v4469_v11 = vpop.permute.xlu1 %4468 }
 0x622   :  { %v4519_v22 = vsel %vm898_vm11, %v4517_v43, %v4469_v11 }
 0x623   :  { %4594 = vbcast.lane.b32.xlu0 %v8533_v4, 336 }
 0x625   :  { %v4477_v19 = vpop.permute.xlu1 %4476 }
 0x626   :  { %v4521_v51 = vsel %vm901_vm12, %v4519_v22, %v4477_v19 }
 0x627   :  { %4606 = vbcast.lane.b32.xlu0 %v8541_v34, 336 }
 0x629   :  { %v4485_v16 = vpop.permute.xlu1 %4484 }
 0x62a   :  { %v4523_v56 = vsel %vm9974_vm13, %v4521_v51, %v4485_v16  ;;  %vm9977_vm13 = vcmask 523520  }
 0x62b   :  { %4618 = vbcast.lane.b32.xlu0 %v8549_v42, 336 }
 0x62d   :  { %v4493_v5 = vpop.permute.xlu1 %4492 }
 0x62e   :  { %v4525_v30 = vsel %vm9975_vm15, %v4523_v56, %v4493_v5  ;;  %vm9978_vm15 = vmmov %vm9977_vm13 }
 0x62f   :  { %4527 = vst.msk [vmem:[#allocation5 + $0x30] sm:$0xff] %vm9976_vm14, %v4525_v30  ;;  %4532 = vrot.lane.b32.xlu1 %v4525_v30, %s7354_s26  ;;  %4630 = vbcast.lane.b32.xlu0 %v8557_v29, 336  ;;  %vm9979_vm14 = vcmask 228352  }
 0x633   :  { %4550 = vbcast.lane.b32.xlu1 %v8510_v32, 344  ;;  %4642 = vbcast.lane.b32.xlu0 %v8562_v45, 336 }
 0x637   :  { %4562 = vbcast.lane.b32.xlu1 %v8514_v41, 344  ;;  %4654 = vbcast.lane.b32.xlu0 %v8567_v17, 336 }
 0x63b   :  { %4574 = vbcast.lane.b32.xlu1 %v8518_v50, 344  ;;  %4666 = vbcast.lane.b32.xlu0 %v8572_v63, 336 }
 0x63f   :  { %4586 = vbcast.lane.b32.xlu1 %v8522_v60, 344  ;;  %4678 = vbcast.lane.b32.xlu0 %v8577_v24, 336 }
 0x643   :  { %4598 = vbcast.lane.b32.xlu1 %v8533_v4, 344  ;;  %4690 = vbcast.lane.b32.xlu0 %v8582_v39, 336 }
 0x647   :  { %4610 = vbcast.lane.b32.xlu1 %v8541_v34, 344  ;;  %4702 = vbcast.lane.b32.xlu0 %v8587_v18, 336 }
 0x64b   :  { %4622 = vbcast.lane.b32.xlu1 %v8549_v42, 344  ;;  %4714 = vbcast.lane.b32.xlu0 %v8592_v40, 336 }
 0x64f   :  { %4634 = vbcast.lane.b32.xlu1 %v8557_v29, 344  ;;  %4726 = vbcast.lane.b32.xlu0 %v8597_v59, 336 }
 0x653   :  { %4646 = vbcast.lane.b32.xlu1 %v8562_v45, 344 }
 0x657   :  { %4658 = vbcast.lane.b32.xlu1 %v8567_v17, 344 }
 0x65b   :  { %4670 = vbcast.lane.b32.xlu1 %v8572_v63, 344 }
 0x65f   :  { %4682 = vbcast.lane.b32.xlu1 %v8577_v24, 344 }
 0x663   :  { %4694 = vbcast.lane.b32.xlu1 %v8582_v39, 344 }
 0x667   :  { %4706 = vbcast.lane.b32.xlu1 %v8587_v18, 344 }
 0x66b   :  { %4718 = vbcast.lane.b32.xlu1 %v8592_v40, 344 }
 0x66f   :  { %4730 = vbcast.lane.b32.xlu1 %v8597_v59, 344 }
 0x681   :  { %v4531_v32 = vpop.permute.xlu0 %4530 }
 0x682   :  { %4536 = vst.msk [vmem:[#allocation5 + $0x10] sm:$0xff] %vm9977_vm13, %v4531_v32  ;;  %vm9980_vm13 = vcmask 244736  }
 0x685   :  { %v4547_v41 = vpop.permute.xlu0 %4546 }
 0x689   :  { %v4559_v50 = vpop.permute.xlu0 %4558 }
 0x68d   :  { %v4571_v60 = vpop.permute.xlu0 %4570 }
 0x68e   :  { %v4732_v17 = vcombine.low %v4547_v41, %v4571_v60  ;;  %v4733_v21 = vcombine.high %v4547_v41, %v4571_v60 }
 0x690   :  { %v4740_v40 = vrot.slane %v4732_v17, %v7482_v48  ;;  %v4747_v36 = vrot.slane %v4733_v21, %v7482_v48 }
 0x691   :  { %v4583_v4 = vpop.permute.xlu0 %4582 }
 0x692   :  { %v4748_v29 = vcombine.low %v4559_v50, %v4583_v4  ;;  %v4749_v26 = vcombine.high %v4559_v50, %v4583_v4 }
 0x694   :  { %v4756_v63 = vrot.slane %v4748_v29, %v7482_v48  ;;  %v4763_v38 = vrot.slane %v4749_v26, %v7482_v48 }
 0x695   :  { %v4595_v34 = vpop.permute.xlu0 %4594 }
 0x696   :  { %v4796_v61 = vcombine.low %v4740_v40, %v4756_v63  ;;  %v4797_v57 = vcombine.high %v4740_v40, %v4756_v63  ;;  %v4812_v47 = vcombine.low %v4747_v36, %v4763_v38  ;;  %v4813_v56 = vcombine.high %v4747_v36, %v4763_v38 }
 0x698   :  { %v8870_v8 = vrot.slane %v4796_v61, %v7490_v58  ;;  %v4811_v6 = vrot.slane %v4797_v57, %v7490_v58  ;;  %v4820_v53 = vrot.slane %v4812_v47, %v7490_v58  ;;  %v4827_v60 = vrot.slane %v4813_v56, %v7490_v58 }
 0x699   :  { %v4607_v42 = vpop.permute.xlu0 %4606 }
 0x69d   :  { %v4619_v45 = vpop.permute.xlu0 %4618 }
 0x69e   :  { %v4764_v24 = vcombine.low %v4595_v34, %v4619_v45  ;;  %v4765_v52 = vcombine.high %v4595_v34, %v4619_v45 }
 0x6a0   :  { %v4772_v12 = vrot.slane %v4764_v24, %v7482_v48  ;;  %v4779_v37 = vrot.slane %v4765_v52, %v7482_v48 }
 0x6a1   :  { %v4533_v39 = vpop.permute.xlu1 %4532  ;;  %v4631_v18 = vpop.permute.xlu0 %4630 }
 0x6a2   :  { %4537 = vst.msk [vmem:[#allocation5 + $0x30] sm:$0xff] %vm9978_vm15, %v4533_v39  ;;  %v4780_v59 = vcombine.low %v4607_v42, %v4631_v18  ;;  %v4781_v27 = vcombine.high %v4607_v42, %v4631_v18  ;;  %vm9983_vm15 = vmmov %vm9979_vm14 }
 0x6a4   :  { %v4788_v46 = vrot.slane %v4780_v59, %v7482_v48  ;;  %v4795_v62 = vrot.slane %v4781_v27, %v7482_v48 }
 0x6a5   :  { %v8865_v10 = vpop.permute.xlu1 %4550  ;;  %v8867_v25 = vpop.permute.xlu0 %4642 }
 0x6a6   :  { %v4828_v55 = vcombine.low %v4772_v12, %v4788_v46  ;;  %v4829_v44 = vcombine.high %v4772_v12, %v4788_v46  ;;  %v4844_v15 = vcombine.low %v4779_v37, %v4795_v62  ;;  %v4845_v22 = vcombine.high %v4779_v37, %v4795_v62 }
 0x6a8   :  { %v8873_v0 = vrot.slane %v4828_v55, %v7490_v58  ;;  %v4843_v31 = vrot.slane %v4829_v44, %v7490_v58  ;;  %v4852_v20 = vrot.slane %v4844_v15, %v7490_v58  ;;  %v4859_v41 = vrot.slane %v4845_v22, %v7490_v58 }
 0x6a9   :  { %v8875_v1 = vpop.permute.xlu1 %4562  ;;  %v8877_v14 = vpop.permute.xlu0 %4654 }
 0x6aa   :  { %v4861_v23 = vcombine.high %v8870_v8, %v8873_v0  ;;  %v4860_v33 = vcombine.low %v8870_v8, %v8873_v0  ;;  %v4862_v54 = vcombine.low %v4811_v6, %v4843_v31  ;;  %v4863_v13 = vcombine.high %v4811_v6, %v4843_v31 }
 0x6ab   :  { %v4864_v51 = vcombine.low %v4820_v53, %v4852_v20  ;;  %v4865_v32 = vcombine.high %v4820_v53, %v4852_v20  ;;  %v4866_v45 = vcombine.low %v4827_v60, %v4859_v41  ;;  %v4867_v27 = vcombine.high %v4827_v60, %v4859_v41 }
 0x6ac   :  { %5278 = vrot.lane.b32.xlu0 %v4861_v23, %s7340_s0 }
 0x6ad   :  { %v8889_v28 = vpop.permute.xlu1 %4574  ;;  %v8891_v11 = vpop.permute.xlu0 %4666 }
 0x6ae   :  { %v5004_v29 = vcombine.low %v8865_v10, %v8889_v28  ;;  %v4868_v17 = vcombine.low %v8867_v25, %v8891_v11 }
 0x6b0   :  { %5286 = vrot.lane.b32.xlu0 %v4862_v54, %s7341_s13  ;;  %v5012_v61 = vrot.slane %v5004_v29, %v7482_v48  ;;  %v4876_v55 = vrot.slane %v4868_v17, %v7482_v48 }
 0x6b1   :  { %v8895_v19 = vpop.permute.xlu1 %4586  ;;  %v8897_v35 = vpop.permute.xlu0 %4678 }
 0x6b2   :  { %v5020_v50 = vcombine.low %v8875_v1, %v8895_v19  ;;  %v4884_v4 = vcombine.low %v8877_v14, %v8897_v35  ;;  %v4885_v36 = vcombine.high %v8877_v14, %v8897_v35  ;;  %v4869_v14 = vcombine.high %v8867_v25, %v8891_v11 }
 0x6b3   :  { %v5021_v41 = vcombine.high %v8875_v1, %v8895_v19  ;;  %v5005_v1 = vcombine.high %v8865_v10, %v8889_v28 }
 0x6b4   :  { %5294 = vrot.lane.b32.xlu0 %v4863_v13, %s7342_s14  ;;  %v5028_v63 = vrot.slane %v5020_v50, %v7482_v48  ;;  %v4892_v39 = vrot.slane %v4884_v4, %v7482_v48  ;;  %v4883_v29 = vrot.slane %v4869_v14, %v7482_v48 }
 0x6b5   :  { %v8902_v16 = vpop.permute.xlu1 %4598  ;;  %v8904_v43 = vpop.permute.xlu0 %4690  ;;  %v5019_v28 = vrot.slane %v5005_v1, %v7482_v48 }
 0x6b6   :  { %v5068_v44 = vcombine.low %v5012_v61, %v5028_v63  ;;  %v4932_v21 = vcombine.low %v4876_v55, %v4892_v39  ;;  %v4933_v47 = vcombine.high %v4876_v55, %v4892_v39  ;;  %v5069_v50 = vcombine.high %v5012_v61, %v5028_v63 }
 0x6b7   :  { %v5035_v63 = vrot.slane %v5021_v41, %v7482_v48 }
 0x6b8   :  { %5302 = vrot.lane.b32.xlu0 %v4864_v51, %s7337_s10  ;;  %v5076_v15 = vrot.slane %v5068_v44, %v7490_v58  ;;  %v8946_v53 = vrot.slane %v4932_v21, %v7490_v58  ;;  %v4947_v4 = vrot.slane %v4933_v47, %v7490_v58  ;;  %v5083_v39 = vrot.slane %v5069_v50, %v7490_v58 }
 0x6b9   :  { %v8907_v5 = vpop.permute.xlu1 %4610  ;;  %v4703_v30 = vpop.permute.xlu0 %4702 }
 0x6bc   :  { %5310 = vrot.lane.b32.xlu0 %v4865_v32, %s7343_s15 }
 0x6bd   :  { %v8916_v34 = vpop.permute.xlu1 %4622  ;;  %v4715_v42 = vpop.permute.xlu0 %4714 }
 0x6be   :  { %v5036_v24 = vcombine.low %v8902_v16, %v8916_v34  ;;  %v4900_v18 = vcombine.low %v8904_v43, %v4715_v42  ;;  %v4901_v13 = vcombine.high %v8904_v43, %v4715_v42  ;;  %v5037_v60 = vcombine.high %v8902_v16, %v8916_v34 }
 0x6c0   :  { %5318 = vrot.lane.b32.xlu0 %v4866_v45, %s7344_s16  ;;  %v5044_v26 = vrot.slane %v5036_v24, %v7482_v48  ;;  %v4908_v62 = vrot.slane %v4900_v18, %v7482_v48  ;;  %v4915_v25 = vrot.slane %v4901_v13, %v7482_v48  ;;  %v5051_v24 = vrot.slane %v5037_v60, %v7482_v48 }
 0x6c1   :  { %v4635_v40 = vpop.permute.xlu1 %4634  ;;  %v4727_v59 = vpop.permute.xlu0 %4726 }
 0x6c2   :  { %v5052_v12 = vcombine.low %v8907_v5, %v4635_v40  ;;  %v4916_v46 = vcombine.low %v4703_v30, %v4727_v59  ;;  %v4917_v38 = vcombine.high %v4703_v30, %v4727_v59  ;;  %v5053_v51 = vcombine.high %v8907_v5, %v4635_v40 }
 0x6c3   :  { %v4899_v5 = vrot.slane %v4885_v36, %v7482_v48 }
 0x6c4   :  { %v5060_v57 = vrot.slane %v5052_v12, %v7482_v48  ;;  %v4924_v52 = vrot.slane %v4916_v46, %v7482_v48  ;;  %5326 = vrot.lane.b32.xlu0 %v4867_v27, %s7345_s17  ;;  %v4931_v35 = vrot.slane %v4917_v38, %v7482_v48  ;;  %v5067_v19 = vrot.slane %v5053_v51, %v7482_v48 }
 0x6c5   :  { %v8936_v23 = vpop.permute.xlu1 %4646  ;;  %v4948_v18 = vcombine.low %v4883_v29, %v4899_v5  ;;  %v5084_v46 = vcombine.low %v5019_v28, %v5035_v63 }
 0x6c6   :  { %v5100_v31 = vcombine.low %v5044_v26, %v5060_v57  ;;  %v4964_v37 = vcombine.low %v4908_v62, %v4924_v52  ;;  %v4965_v6 = vcombine.high %v4908_v62, %v4924_v52  ;;  %v5101_v56 = vcombine.high %v5044_v26, %v5060_v57 }
 0x6c7   :  { %v4980_v45 = vcombine.low %v4915_v25, %v4931_v35  ;;  %v5116_v40 = vcombine.low %v5051_v24, %v5067_v19  ;;  %v4956_v55 = vrot.slane %v4948_v18, %v7490_v58  ;;  %v4981_v57 = vcombine.high %v4915_v25, %v4931_v35 }
 0x6c8   :  { %v5108_v54 = vrot.slane %v5100_v31, %v7490_v58  ;;  %v8949_v22 = vrot.slane %v4964_v37, %v7490_v58  ;;  %v4979_v32 = vrot.slane %v4965_v6, %v7490_v58  ;;  %v5115_v34 = vrot.slane %v5101_v56, %v7490_v58 }
 0x6c9   :  { %v8943_v20 = vpop.permute.xlu1 %4658  ;;  %v4988_v12 = vrot.slane %v4980_v45, %v7490_v58  ;;  %v5124_v26 = vrot.slane %v5116_v40, %v7490_v58  ;;  %v5092_v21 = vrot.slane %v5084_v46, %v7490_v58  ;;  %v4949_v62 = vcombine.high %v4883_v29, %v4899_v5 }
 0x6ca   :  { %v5132_v30 = vcombine.low %v5076_v15, %v5108_v54  ;;  %v4997_v43 = vcombine.high %v8946_v53, %v8949_v22  ;;  %v4996_v42 = vcombine.low %v8946_v53, %v8949_v22  ;;  %v5133_v16 = vcombine.high %v5076_v15, %v5108_v54 }
 0x6cb   :  { %v4998_v17 = vcombine.low %v4947_v4, %v4979_v32  ;;  %v5134_v59 = vcombine.low %v5083_v39, %v5115_v34  ;;  %v4999_v61 = vcombine.high %v4947_v4, %v4979_v32  ;;  %v5135_v44 = vcombine.high %v5083_v39, %v5115_v34 }
 0x6cc   :  { %5334 = vrot.lane.b32.xlu0 %v5132_v30, %s7346_s18  ;;  %5280 = vrot.lane.b32.xlu1 %v4997_v43, %s7340_s0  ;;  %v5000_v52 = vcombine.low %v4956_v55, %v4988_v12  ;;  %v5117_v38 = vcombine.high %v5051_v24, %v5067_v19  ;;  %v5136_v37 = vcombine.low %v5092_v21, %v5124_v26 }
 0x6cd   :  { %v8966_v11 = vpop.permute.xlu1 %4670  ;;  %v5001_v6 = vcombine.high %v4956_v55, %v4988_v12  ;;  %v4995_v36 = vrot.slane %v4981_v57, %v7490_v58  ;;  %v5085_v15 = vcombine.high %v5019_v28, %v5035_v63  ;;  %v4963_v13 = vrot.slane %v4949_v62, %v7490_v58 }
 0x6ce   :  { %v5140_v51 = vcombine.low %v8936_v23, %v8966_v11  ;;  %v5137_v56 = vcombine.high %v5092_v21, %v5124_v26  ;;  %v5131_v30 = vrot.slane %v5117_v38, %v7490_v58  ;;  %v5141_v40 = vcombine.high %v8936_v23, %v8966_v11 }
 0x6cf   :  { %v5002_v14 = vcombine.low %v4963_v13, %v4995_v36  ;;  %v5099_v32 = vrot.slane %v5085_v15, %v7490_v58  ;;  %v5003_v25 = vcombine.high %v4963_v13, %v4995_v36 }
 0x6d0   :  { %5342 = vrot.lane.b32.xlu0 %v5133_v16, %s7347_s19  ;;  %5288 = vrot.lane.b32.xlu1 %v4998_v17, %s7341_s13  ;;  %v5148_v50 = vrot.slane %v5140_v51, %v7482_v48 }
 0x6d1   :  { %v8981_v10 = vpop.permute.xlu1 %4682  ;;  %v5138_v5 = vcombine.low %v5099_v32, %v5131_v30  ;;  %v5139_v34 = vcombine.high %v5099_v32, %v5131_v30 }
 0x6d2   :  { %v5156_v54 = vcombine.low %v8943_v20, %v8981_v10  ;;  %v5157_v39 = vcombine.high %v8943_v20, %v8981_v10  ;;  %v5155_v10 = vrot.slane %v5141_v40, %v7482_v48 }
 0x6d4   :  { %5350 = vrot.lane.b32.xlu0 %v5134_v59, %s7348_s20  ;;  %5296 = vrot.lane.b32.xlu1 %v4999_v61, %s7342_s14  ;;  %v5164_v35 = vrot.slane %v5156_v54, %v7482_v48  ;;  %v5171_v46 = vrot.slane %v5157_v39, %v7482_v48 }
 0x6d5   :  { %v4695_v27 = vpop.permute.xlu1 %4694 }
 0x6d6   :  { %v5204_v4 = vcombine.low %v5148_v50, %v5164_v35  ;;  %v5205_v18 = vcombine.high %v5148_v50, %v5164_v35  ;;  %v5220_v26 = vcombine.low %v5155_v10, %v5171_v46  ;;  %v5221_v62 = vcombine.high %v5155_v10, %v5171_v46 }
 0x6d8   :  { %5358 = vrot.lane.b32.xlu0 %v5135_v44, %s7349_s21  ;;  %5304 = vrot.lane.b32.xlu1 %v5000_v52, %s7337_s10  ;;  %v5212_v29 = vrot.slane %v5204_v4, %v7490_v58  ;;  %v5219_v20 = vrot.slane %v5205_v18, %v7490_v58  ;;  %v5228_v57 = vrot.slane %v5220_v26, %v7490_v58 }
 0x6d9   :  { %v4707_v31 = vpop.permute.xlu1 %4706 }
 0x6dc   :  { %5366 = vrot.lane.b32.xlu0 %v5136_v37, %s7350_s22  ;;  %5312 = vrot.lane.b32.xlu1 %v5001_v6, %s7343_s15  ;;  %v5235_v37 = vrot.slane %v5221_v62, %v7490_v58 }
 0x6dd   :  { %v4719_v47 = vpop.permute.xlu1 %4718 }
 0x6de   :  { %v5172_v43 = vcombine.low %v4695_v27, %v4719_v47  ;;  %v5173_v28 = vcombine.high %v4695_v27, %v4719_v47 }
 0x6e0   :  { %5374 = vrot.lane.b32.xlu0 %v5137_v56, %s7351_s23  ;;  %5320 = vrot.lane.b32.xlu1 %v5002_v14, %s7344_s16  ;;  %v5180_v1 = vrot.slane %v5172_v43, %v7482_v48  ;;  %v5187_v55 = vrot.slane %v5173_v28, %v7482_v48 }
 0x6e1   :  { %v4731_v41 = vpop.permute.xlu1 %4730 }
 0x6e2   :  { %v5188_v60 = vcombine.low %v4707_v31, %v4731_v41  ;;  %v5189_v17 = vcombine.high %v4707_v31, %v4731_v41 }
 0x6e4   :  { %v5196_v19 = vrot.slane %v5188_v60, %v7482_v48  ;;  %5382 = vrot.lane.b32.xlu0 %v5138_v5, %s7352_s24  ;;  %5328 = vrot.lane.b32.xlu1 %v5003_v25, %s7345_s17  ;;  %v5203_v59 = vrot.slane %v5189_v17, %v7482_v48 }
 0x6e6   :  { %v5236_v16 = vcombine.low %v5180_v1, %v5196_v19  ;;  %v5237_v63 = vcombine.high %v5180_v1, %v5196_v19  ;;  %v5252_v27 = vcombine.low %v5187_v55, %v5203_v59  ;;  %v5253_v52 = vcombine.high %v5187_v55, %v5203_v59  ;;  %v5444_v55 = vld [vmem:[#allocation2] sm:$0xff] }
 0x6e7   :  { %v9056_v10 = vrot.slane %v5444_v55, %v7379_v3 }
 0x6e8   :  { %5390 = vrot.lane.b32.xlu0 %v5139_v34, %s7353_s25  ;;  %v5244_v45 = vrot.slane %v5236_v16, %v7490_v58  ;;  %v5251_v12 = vrot.slane %v5237_v63, %v7490_v58  ;;  %v5260_v11 = vrot.slane %v5252_v27, %v7490_v58  ;;  %v5267_v38 = vrot.slane %v5253_v52, %v7490_v58 }
 0x6ea   :  { %v5268_v24 = vcombine.low %v5212_v29, %v5244_v45  ;;  %v5269_v61 = vcombine.high %v5212_v29, %v5244_v45  ;;  %v5270_v44 = vcombine.low %v5219_v20, %v5251_v12  ;;  %v5271_v23 = vcombine.high %v5219_v20, %v5251_v12 }
 0x6eb   :  { %v5272_v21 = vcombine.low %v5228_v57, %v5260_v11  ;;  %v5273_v31 = vcombine.high %v5228_v57, %v5260_v11  ;;  %v5274_v6 = vcombine.low %v5235_v37, %v5267_v38  ;;  %v5275_v36 = vcombine.high %v5235_v37, %v5267_v38 }
 0x6ec   :  { %5336 = vrot.lane.b32.xlu1 %v5268_v24, %s7346_s18  ;;  %v9068_v57 = vrot.slane %v5444_v55, %v9954_v9  ;;  %v9079_v37 = vrot.slane %v5444_v55, %v9955_v49 }
 0x6f0   :  { %5344 = vrot.lane.b32.xlu1 %v5269_v61, %s7347_s19 }
 0x6f4   :  { %5352 = vrot.lane.b32.xlu1 %v5270_v44, %s7348_s20  ;;  %v9060_v44 = vrot.slane %v5444_v55, %v7376_v2 }
 0x6f8   :  { %5360 = vrot.lane.b32.xlu1 %v5271_v23, %s7349_s21  ;;  %v9064_v23 = vrot.slane %v5444_v55, %v7384_v7 }
 0x6fc   :  { %5368 = vrot.lane.b32.xlu1 %v5272_v21, %s7350_s22 }
 0x700   :  { %5376 = vrot.lane.b32.xlu1 %v5273_v31, %s7351_s23 }
 0x704   :  { %5384 = vrot.lane.b32.xlu1 %v5274_v6, %s7352_s24 }
 0x708   :  { %5392 = vrot.lane.b32.xlu1 %v5275_v36, %s7353_s25 }
 0x71e   :  { %v5279_v15 = vpop.permute.xlu0 %5278 }
 0x71f   :  { %v5396_v25 = vsel %vm865_vm0, %v4860_v33, %v5279_v15 }
 0x722   :  { %v5287_v54 = vpop.permute.xlu0 %5286 }
 0x723   :  { %v5398_v4 = vsel %vm868_vm1, %v5396_v25, %v5287_v54  ;;  %v5445_v25 = vld [vmem:[#allocation2 + $0x8] sm:$0xff] }
 0x726   :  { %v5295_v47 = vpop.permute.xlu0 %5294 }
 0x727   :  { %v5400_v19 = vsel %vm871_vm2, %v5398_v4, %v5295_v47  ;;  %v5545_v4 = vrot.slane %v5445_v25, %v7379_v3  ;;  %v5593_v3 = vrot.slane %v5445_v25, %v9955_v49 }
 0x72a   :  { %v5303_v13 = vpop.permute.xlu0 %5302 }
 0x72b   :  { %v5402_v34 = vsel %vm874_vm3, %v5400_v19, %v5303_v13  ;;  %v5569_v19 = vrot.slane %v5445_v25, %v7384_v7 }
 0x72e   :  { %v5311_v51 = vpop.permute.xlu0 %5310 }
 0x72f   :  { %v5404_v29 = vsel %vm877_vm4, %v5402_v34, %v5311_v51 }
 0x732   :  { %v5319_v56 = vpop.permute.xlu0 %5318 }
 0x733   :  { %v5406_v45 = vsel %vm880_vm5, %v5404_v29, %v5319_v56 }
 0x736   :  { %v5327_v30 = vpop.permute.xlu0 %5326 }
 0x737   :  { %v5408_v63 = vsel %vm883_vm6, %v5406_v45, %v5327_v30 }
 0x73e   :  { %v5335_v14 = vpop.permute.xlu0 %5334  ;;  %v5281_v35 = vpop.permute.xlu1 %5280 }
 0x73f   :  { %v5410_v24 = vsel %vm886_vm7, %v5408_v63, %v5335_v14  ;;  %v5397_v52 = vsel %vm865_vm0, %v4996_v42, %v5281_v35  ;;  %v9981_v42 = vld [vmem:[#allocation10_spill] sm:$0xff]  ;;  %v9982_v14 = vld [vmem:[#allocation11_spill] sm:$0xff] }
 0x740   :  { %v9087_v54 = vrot.slane %v5444_v55, %v9981_v42  ;;  %v5521_v35 = vrot.slane %v5444_v55, %v9982_v14  ;;  %v5617_v7 = vrot.slane %v5445_v25, %v9982_v14 }
 0x742   :  { %v5343_v43 = vpop.permute.xlu0 %5342  ;;  %v5289_v32 = vpop.permute.xlu1 %5288 }
 0x743   :  { %v5412_v0 = vsel %vm889_vm8, %v5410_v24, %v5343_v43  ;;  %v5399_v21 = vsel %vm868_vm1, %v5397_v52, %v5289_v32 }
 0x746   :  { %v5351_v41 = vpop.permute.xlu0 %5350  ;;  %v5297_v50 = vpop.permute.xlu1 %5296 }
 0x747   :  { %v5414_v33 = vsel %vm892_vm9, %v5412_v0, %v5351_v41  ;;  %v5401_v31 = vsel %vm871_vm2, %v5399_v21, %v5297_v50 }
 0x74a   :  { %v5359_v60 = vpop.permute.xlu0 %5358  ;;  %v5305_v5 = vpop.permute.xlu1 %5304 }
 0x74b   :  { %v5416_v18 = vsel %vm895_vm10, %v5414_v33, %v5359_v60  ;;  %v5403_v38 = vsel %vm874_vm3, %v5401_v31, %v5305_v5  ;;  %v9985_v60 = vld [vmem:[#allocation12_spill] sm:$0xff] }
 0x74c   :  { %v9100_v5 = vrot.slane %v5444_v55, %v9985_v60 }
 0x74e   :  { %v5367_v1 = vpop.permute.xlu0 %5366  ;;  %v5313_v16 = vpop.permute.xlu1 %5312 }
 0x74f   :  { %v5418_v28 = vsel %vm898_vm11, %v5416_v18, %v5367_v1  ;;  %v5405_v6 = vsel %vm877_vm4, %v5403_v38, %v5313_v16  ;;  %v9107_v1 = vrot.slane %v5445_v25, %v7376_v2  ;;  %v9114_v16 = vrot.slane %v5445_v25, %v9954_v9 }
 0x750   :  { %v9121_v2 = vrot.slane %v5445_v25, %v9981_v42  ;;  %v9134_v9 = vrot.slane %v5445_v25, %v9985_v60 }
 0x752   :  { %v5375_v17 = vpop.permute.xlu0 %5374  ;;  %v5321_v8 = vpop.permute.xlu1 %5320 }
 0x753   :  { %v5420_v40 = vsel %vm901_vm12, %v5418_v28, %v5375_v17  ;;  %v5407_v36 = vsel %vm880_vm5, %v5405_v6, %v5321_v8 }
 0x756   :  { %v5383_v39 = vpop.permute.xlu0 %5382  ;;  %v5329_v59 = vpop.permute.xlu1 %5328 }
 0x757   :  { %v5422_v61 = vsel %vm9979_vm14, %v5420_v40, %v5383_v39  ;;  %v5409_v53 = vsel %vm883_vm6, %v5407_v36, %v5329_v59  ;;  %vm9984_vm14 = vmmov %vm9980_vm13 }
 0x75a   :  { %v5391_v12 = vpop.permute.xlu0 %5390 }
 0x75b   :  { %v5424_v46 = vsel %vm9980_vm13, %v5422_v61, %v5391_v12  ;;  %vm9986_vm13 = vcmask 785920  }
 0x75c   :  { %5428 = vrot.lane.b32.xlu0 %v5424_v46, %s7355_s27 }
 0x75e   :  { %v5337_v20 = vpop.permute.xlu1 %5336 }
 0x75f   :  { %v5411_v22 = vsel %vm886_vm7, %v5409_v53, %v5337_v20 }
 0x760   :  { %5436 = vrot.lane.b32.xlu0 %v5424_v46, %s7356_s28 }
 0x762   :  { %v5345_v27 = vpop.permute.xlu1 %5344 }
 0x763   :  { %v5413_v47 = vsel %vm889_vm8, %v5411_v22, %v5345_v27 }
 0x764   :  { %5452 = vbcast.lane.b32.xlu0 %v9056_v10, 352 }
 0x766   :  { %v5353_v26 = vpop.permute.xlu1 %5352 }
 0x767   :  { %v5415_v13 = vsel %vm892_vm9, %v5413_v47, %v5353_v26 }
 0x768   :  { %5464 = vbcast.lane.b32.xlu0 %v9060_v44, 352 }
 0x76a   :  { %v5361_v11 = vpop.permute.xlu1 %5360 }
 0x76b   :  { %v5417_v56 = vsel %vm895_vm10, %v5415_v13, %v5361_v11 }
 0x76c   :  { %5476 = vbcast.lane.b32.xlu0 %v9064_v23, 352 }
 0x76e   :  { %v5369_v62 = vpop.permute.xlu1 %5368 }
 0x76f   :  { %v5419_v30 = vsel %vm898_vm11, %v5417_v56, %v5369_v62 }
 0x770   :  { %5488 = vbcast.lane.b32.xlu0 %v9068_v57, 352 }
 0x772   :  { %v5377_v15 = vpop.permute.xlu1 %5376 }
 0x773   :  { %v5421_v43 = vsel %vm901_vm12, %v5419_v30, %v5377_v15 }
 0x774   :  { %5500 = vbcast.lane.b32.xlu0 %v9079_v37, 352 }
 0x776   :  { %v5385_v51 = vpop.permute.xlu1 %5384 }
 0x777   :  { %v5423_v32 = vsel %vm9983_vm15, %v5421_v43, %v5385_v51  ;;  %vm9987_vm15 = vcmask 1048320  }
 0x778   :  { %5512 = vbcast.lane.b32.xlu0 %v9087_v54, 352 }
 0x77a   :  { %v5393_v41 = vpop.permute.xlu1 %5392 }
 0x77b   :  { %v5425_v50 = vsel %vm9984_vm14, %v5423_v32, %v5393_v41  ;;  %vm9988_vm14 = vmmov %vm9986_vm13 }
 0x77c   :  { %5430 = vrot.lane.b32.xlu1 %v5425_v50, %s7355_s27  ;;  %5524 = vbcast.lane.b32.xlu0 %v5521_v35, 352 }
 0x780   :  { %5438 = vrot.lane.b32.xlu1 %v5425_v50, %s7356_s28  ;;  %5536 = vbcast.lane.b32.xlu0 %v9100_v5, 352 }
 0x784   :  { %5456 = vbcast.lane.b32.xlu1 %v9056_v10, 360  ;;  %5548 = vbcast.lane.b32.xlu0 %v5545_v4, 352 }
 0x788   :  { %5468 = vbcast.lane.b32.xlu1 %v9060_v44, 360  ;;  %5560 = vbcast.lane.b32.xlu0 %v9107_v1, 352 }
 0x78c   :  { %5480 = vbcast.lane.b32.xlu1 %v9064_v23, 360  ;;  %5572 = vbcast.lane.b32.xlu0 %v5569_v19, 352 }
 0x790   :  { %5492 = vbcast.lane.b32.xlu1 %v9068_v57, 360  ;;  %5584 = vbcast.lane.b32.xlu0 %v9114_v16, 352 }
 0x794   :  { %5504 = vbcast.lane.b32.xlu1 %v9079_v37, 360  ;;  %5596 = vbcast.lane.b32.xlu0 %v5593_v3, 352 }
 0x798   :  { %5516 = vbcast.lane.b32.xlu1 %v9087_v54, 360  ;;  %5608 = vbcast.lane.b32.xlu0 %v9121_v2, 352 }
 0x79c   :  { %5528 = vbcast.lane.b32.xlu1 %v5521_v35, 360  ;;  %5620 = vbcast.lane.b32.xlu0 %v5617_v7, 352 }
 0x7a0   :  { %5540 = vbcast.lane.b32.xlu1 %v9100_v5, 360  ;;  %6352 = vbcast.lane.b32.xlu0 %v9056_v10, 368 }
 0x7a4   :  { %5552 = vbcast.lane.b32.xlu1 %v5545_v4, 360  ;;  %6376 = vbcast.lane.b32.xlu0 %v9064_v23, 368 }
 0x7a8   :  { %5564 = vbcast.lane.b32.xlu1 %v9107_v1, 360  ;;  %6400 = vbcast.lane.b32.xlu0 %v9079_v37, 368 }
 0x7ac   :  { %5576 = vbcast.lane.b32.xlu1 %v5569_v19, 360  ;;  %6424 = vbcast.lane.b32.xlu0 %v5521_v35, 368 }
 0x7b0   :  { %5588 = vbcast.lane.b32.xlu1 %v9114_v16, 360  ;;  %6448 = vbcast.lane.b32.xlu0 %v5545_v4, 368 }
 0x7b4   :  { %5600 = vbcast.lane.b32.xlu1 %v5593_v3, 360  ;;  %6472 = vbcast.lane.b32.xlu0 %v5569_v19, 368 }
 0x7b8   :  { %5612 = vbcast.lane.b32.xlu1 %v9121_v2, 360  ;;  %6496 = vbcast.lane.b32.xlu0 %v5593_v3, 368 }
 0x7bc   :  { %5632 = vbcast.lane.b32.xlu1 %v9134_v9, 352  ;;  %6520 = vbcast.lane.b32.xlu0 %v5617_v7, 368 }
 0x7c0   :  { %6364 = vbcast.lane.b32.xlu1 %v9060_v44, 368  ;;  %5624 = vbcast.lane.b32.xlu0 %v5617_v7, 360 }
 0x7c4   :  { %6388 = vbcast.lane.b32.xlu1 %v9068_v57, 368  ;;  %6356 = vbcast.lane.b32.xlu0 %v9056_v10, 376 }
 0x7c8   :  { %6412 = vbcast.lane.b32.xlu1 %v9087_v54, 368  ;;  %6380 = vbcast.lane.b32.xlu0 %v9064_v23, 376 }
 0x7cc   :  { %6436 = vbcast.lane.b32.xlu1 %v9100_v5, 368  ;;  %6404 = vbcast.lane.b32.xlu0 %v9079_v37, 376 }
 0x7ce   :  { %v5429_v49 = vpop.permute.xlu0 %5428 }
 0x7cf   :  { %5434 = vst.msk [vmem:[#allocation5 + $0x10] sm:$0xff] %vm9986_vm13, %v5429_v49  ;;  %vm9989_vm13 = vmmov %vm9987_vm15 }
 0x7d0   :  { %6460 = vbcast.lane.b32.xlu1 %v9107_v1, 368  ;;  %6428 = vbcast.lane.b32.xlu0 %v5521_v35, 376 }
 0x7d2   :  { %v5437_v34 = vpop.permute.xlu0 %5436 }
 0x7d3   :  { %5442 = vst.msk [vmem:[#allocation5 + $0x10] sm:$0xff] %vm9987_vm15, %v5437_v34 }
 0x7d4   :  { %6484 = vbcast.lane.b32.xlu1 %v9114_v16, 368  ;;  %6452 = vbcast.lane.b32.xlu0 %v5545_v4, 376 }
 0x7d6   :  { %v9148_v29 = vpop.permute.xlu0 %5452 }
 0x7d8   :  { %6508 = vbcast.lane.b32.xlu1 %v9121_v2, 368  ;;  %6476 = vbcast.lane.b32.xlu0 %v5569_v19, 376 }
 0x7da   :  { %v9151_v45 = vpop.permute.xlu0 %5464 }
 0x7dc   :  { %6532 = vbcast.lane.b32.xlu1 %v9134_v9, 368  ;;  %6500 = vbcast.lane.b32.xlu0 %v5593_v3, 376 }
 0x7de   :  { %v9154_v17 = vpop.permute.xlu0 %5476 }
 0x7df   :  { %v5638_v0 = vcombine.low %v9148_v29, %v9154_v17 }
 0x7e0   :  { %5636 = vbcast.lane.b32.xlu1 %v9134_v9, 360  ;;  %6524 = vbcast.lane.b32.xlu0 %v5617_v7, 376 }
 0x7e1   :  { %v5646_v28 = vrot.slane %v5638_v0, %v7482_v48 }
 0x7e2   :  { %v9157_v63 = vpop.permute.xlu0 %5488 }
 0x7e3   :  { %v5654_v33 = vcombine.low %v9151_v45, %v9157_v63 }
 0x7e4   :  { %6368 = vbcast.lane.b32.xlu1 %v9060_v44, 376 }
 0x7e5   :  { %v5662_v40 = vrot.slane %v5654_v33, %v7482_v48 }
 0x7e6   :  { %v9160_v24 = vpop.permute.xlu0 %5500 }
 0x7e7   :  { %v5702_v46 = vcombine.low %v5646_v28, %v5662_v40  ;;  %v5703_v55 = vcombine.high %v5646_v28, %v5662_v40 }
 0x7e8   :  { %6392 = vbcast.lane.b32.xlu1 %v9068_v57, 376 }
 0x7e9   :  { %v9191_v57 = vrot.slane %v5702_v46, %v7490_v58  ;;  %v9194_v52 = vrot.slane %v5703_v55, %v7490_v58 }
 0x7ea   :  { %v9163_v8 = vpop.permute.xlu0 %5512 }
 0x7ec   :  { %6416 = vbcast.lane.b32.xlu1 %v9087_v54, 376 }
 0x7ee   :  { %v5431_v39 = vpop.permute.xlu1 %5430  ;;  %v9170_v18 = vpop.permute.xlu0 %5524 }
 0x7ef   :  { %5435 = vst.msk [vmem:[#allocation5 + $0x30] sm:$0xff] %vm9988_vm14, %v5431_v39  ;;  %v5670_v59 = vcombine.low %v9160_v24, %v9170_v18 }
 0x7f0   :  { %6440 = vbcast.lane.b32.xlu1 %v9100_v5, 376 }
 0x7f1   :  { %v5678_v20 = vrot.slane %v5670_v59, %v7482_v48 }
 0x7f2   :  { %v5439_v61 = vpop.permute.xlu1 %5438  ;;  %v9178_v12 = vpop.permute.xlu0 %5536 }
 0x7f3   :  { %5443 = vst.msk [vmem:[#allocation5 + $0x30] sm:$0xff] %vm9989_vm13, %v5439_v61  ;;  %v5686_v10 = vcombine.low %v9163_v8, %v9178_v12 }
 0x7f4   :  { %6464 = vbcast.lane.b32.xlu1 %v9107_v1, 376 }
 0x7f5   :  { %v5694_v27 = vrot.slane %v5686_v10, %v7482_v48 }
 0x7f6   :  { %v9186_v44 = vpop.permute.xlu1 %5456  ;;  %v9188_v26 = vpop.permute.xlu0 %5548 }
 0x7f7   :  { %v5734_v23 = vcombine.low %v5678_v20, %v5694_v27  ;;  %v5735_v11 = vcombine.high %v5678_v20, %v5694_v27 }
 0x7f8   :  { %6488 = vbcast.lane.b32.xlu1 %v9114_v16, 376 }
 0x7f9   :  { %v9198_v21 = vrot.slane %v5734_v23, %v7490_v58  ;;  %v9201_v62 = vrot.slane %v5735_v11, %v7490_v58 }
 0x7fa   :  { %v9203_v31 = vpop.permute.xlu1 %5468  ;;  %v9205_v38 = vpop.permute.xlu0 %5560 }
 0x7fb   :  { %v5767_v37 = vcombine.high %v9191_v57, %v9198_v21  ;;  %v5768_v15 = vcombine.low %v9194_v52, %v9201_v62 }
 0x7fc   :  { %6512 = vbcast.lane.b32.xlu1 %v9121_v2, 376 }
 0x7fd   :  { %6184 = vrot.lane.b32.xlu0 %v5767_v37, %s7340_s0 }
 0x7fe   :  { %v9217_v53 = vpop.permute.xlu1 %5480  ;;  %v9219_v22 = vpop.permute.xlu0 %5572 }
 0x7ff   :  { %v5774_v16 = vcombine.low %v9188_v26, %v9219_v22 }
 0x800   :  { %6536 = vbcast.lane.b32.xlu1 %v9134_v9, 376 }
 0x801   :  { %6192 = vrot.lane.b32.xlu0 %v5768_v15, %s7341_s13  ;;  %v5782_v9 = vrot.slane %v5774_v16, %v7482_v48 }
 0x802   :  { %v9223_v42 = vpop.permute.xlu1 %5492  ;;  %v9225_v54 = vpop.permute.xlu0 %5584 }
 0x803   :  { %v5790_v3 = vcombine.low %v9205_v38, %v9225_v54 }
 0x805   :  { %v5798_v49 = vrot.slane %v5790_v3, %v7482_v48 }
 0x806   :  { %v9227_v47 = vpop.permute.xlu1 %5504  ;;  %v9229_v13 = vpop.permute.xlu0 %5596 }
 0x807   :  { %v5838_v28 = vcombine.low %v5782_v9, %v5798_v49  ;;  %v5839_v20 = vcombine.high %v5782_v9, %v5798_v49 }
 0x809   :  { %v9286_v27 = vrot.slane %v5838_v28, %v7490_v58  ;;  %v9302_v3 = vrot.slane %v5839_v20, %v7490_v58 }
 0x80a   :  { %v9231_v51 = vpop.permute.xlu1 %5516  ;;  %v9233_v56 = vpop.permute.xlu0 %5608 }
 0x80b   :  { %9995 = vst [vmem:[#allocation13_spill] sm:$0xff] %v9286_v27 }
 0x80e   :  { %v9235_v30 = vpop.permute.xlu1 %5528  ;;  %v9237_v14 = vpop.permute.xlu0 %5620 }
 0x80f   :  { %v5806_v34 = vcombine.low %v9229_v13, %v9237_v14 }
 0x811   :  { %v5814_v40 = vrot.slane %v5806_v34, %v7482_v48 }
 0x812   :  { %v9239_v35 = vpop.permute.xlu1 %5540  ;;  %v9241_v43 = vpop.permute.xlu0 %6352 }
 0x816   :  { %v9243_v32 = vpop.permute.xlu1 %5552  ;;  %v9245_v41 = vpop.permute.xlu0 %6376 }
 0x817   :  { %9990 = vst [vmem:[#allocation8_spill] sm:$0xff] %v9243_v32  ;;  %v6538_v34 = vcombine.low %v9241_v43, %v9245_v41 }
 0x81a   :  { %v9247_v50 = vpop.permute.xlu1 %5564  ;;  %v9249_v60 = vpop.permute.xlu0 %6400 }
 0x81b   :  { %9991 = vst [vmem:[#allocation9_spill] sm:$0xff] %v9247_v50 }
 0x81e   :  { %v9251_v5 = vpop.permute.xlu1 %5576  ;;  %v9253_v25 = vpop.permute.xlu0 %6424 }
 0x81f   :  { %9992 = vst [vmem:[#allocation10_spill] sm:$0xff] %v9251_v5 }
 0x822   :  { %v9255_v4 = vpop.permute.xlu1 %5588  ;;  %v9257_v1 = vpop.permute.xlu0 %6448 }
 0x823   :  { %9993 = vst [vmem:[#allocation11_spill] sm:$0xff] %v9255_v4 }
 0x826   :  { %v9259_v19 = vpop.permute.xlu1 %5600  ;;  %v9265_v2 = vpop.permute.xlu0 %6472 }
 0x827   :  { %9994 = vst [vmem:[#allocation12_spill] sm:$0xff] %v9259_v19 }
 0x82a   :  { %v9267_v7 = vpop.permute.xlu1 %5612  ;;  %v9275_v33 = vpop.permute.xlu0 %6496 }
 0x82e   :  { %v9273_v0 = vpop.permute.xlu1 %5632  ;;  %v9283_v10 = vpop.permute.xlu0 %6520 }
 0x82f   :  { %v5822_v39 = vcombine.low %v9233_v56, %v9273_v0 }
 0x831   :  { %v5830_v59 = vrot.slane %v5822_v39, %v7482_v48 }
 0x832   :  { %v9281_v61 = vpop.permute.xlu1 %6364  ;;  %v9308_v39 = vpop.permute.xlu0 %5624 }
 0x833   :  { %v5870_v46 = vcombine.low %v5814_v40, %v5830_v59  ;;  %v5871_v55 = vcombine.high %v5814_v40, %v5830_v59  ;;  %9997 = vst [vmem:[#allocation15_spill] sm:$0xff] %v9308_v39  ;;  %v6570_v40 = vcombine.low %v9249_v60, %v9253_v25 }
 0x835   :  { %v9289_v23 = vrot.slane %v5870_v46, %v7490_v58  ;;  %v9296_v15 = vrot.slane %v5871_v55, %v7490_v58  ;;  %v6546_v55 = vrot.slane %v6538_v34, %v7482_v48  ;;  %v6578_v9 = vrot.slane %v6570_v40, %v7482_v48 }
 0x836   :  { %v9291_v11 = vpop.permute.xlu1 %6388  ;;  %v5687_v34 = vcombine.high %v9163_v8, %v9178_v12 }
 0x837   :  { %9996 = vst [vmem:[#allocation14_spill] sm:$0xff] %v9289_v23  ;;  %v5903_v37 = vcombine.high %v9286_v27, %v9289_v23  ;;  %v6554_v16 = vcombine.low %v9281_v61, %v9291_v11  ;;  %v5904_v28 = vcombine.low %v9302_v3, %v9296_v15  ;;  %v5639_v23 = vcombine.high %v9148_v29, %v9154_v17 }
 0x838   :  { %v5655_v27 = vcombine.high %v9151_v45, %v9157_v63  ;;  %v9349_v63 = vrot.slane %v5687_v34, %v7482_v48 }
 0x839   :  { %6186 = vrot.lane.b32.xlu1 %v5903_v37, %s7340_s0  ;;  %v6562_v59 = vrot.slane %v6554_v16, %v7482_v48  ;;  %v9317_v37 = vpop.permute.xlu0 %6356  ;;  %v5671_v16 = vcombine.high %v9160_v24, %v9170_v18  ;;  %v9340_v29 = vrot.slane %v5639_v23, %v7482_v48 }
 0x83a   :  { %v6413_v49 = vpop.permute.xlu1 %6412  ;;  %v9343_v45 = vrot.slane %v5655_v27, %v7482_v48 }
 0x83b   :  { %v6602_v36 = vcombine.low %v6546_v55, %v6562_v59  ;;  %v9346_v17 = vrot.slane %v5671_v16, %v7482_v48  ;;  %v6603_v12 = vcombine.high %v6546_v55, %v6562_v59  ;;  %v6706_v55 = vcombine.low %v9275_v33, %v9283_v10 }
 0x83c   :  { %v5718_v27 = vcombine.low %v9340_v29, %v9343_v45 }
 0x83d   :  { %6194 = vrot.lane.b32.xlu1 %v5904_v28, %s7341_s13  ;;  %v9332_v40 = vrot.slane %v6602_v36, %v7490_v58  ;;  %v9337_v5 = vpop.permute.xlu0 %6380  ;;  %v5750_v23 = vcombine.low %v9346_v17, %v9349_v63  ;;  %v6617_v34 = vrot.slane %v6603_v12, %v7490_v58  ;;  %v6714_v4 = vrot.slane %v6706_v55, %v7482_v48 }
 0x83e   :  { %v6437_v46 = vpop.permute.xlu1 %6436 }
 0x83f   :  { %v6586_v20 = vcombine.low %v6413_v49, %v6437_v46  ;;  %9998 = vst [vmem:[#allocation16_spill] sm:$0xff] %v9332_v40  ;;  %v6587_v39 = vcombine.high %v6413_v49, %v6437_v46  ;;  %v6539_v49 = vcombine.high %v9241_v43, %v9245_v41  ;;  %v5823_v46 = vcombine.high %v9233_v56, %v9273_v0 }
 0x841   :  { %v6594_v6 = vrot.slane %v6586_v20, %v7482_v48  ;;  %v9369_v59 = vpop.permute.xlu0 %6404 }
 0x842   :  { %v9329_v28 = vpop.permute.xlu1 %6460 }
 0x843   :  { %v6634_v32 = vcombine.low %v6578_v9, %v6594_v6  ;;  %v6635_v8 = vcombine.high %v6578_v9, %v6594_v6  ;;  %v6674_v6 = vcombine.low %v9257_v1, %v9265_v2 }
 0x845   :  { %v9335_v20 = vrot.slane %v6634_v32, %v7490_v58  ;;  %v6649_v9 = vrot.slane %v6635_v8, %v7490_v58  ;;  %v10000_v32 = vcombine.high %v9194_v52, %v9201_v62  ;;  %v5758_v8 = vrot.slane %v5750_v23, %v7490_v58 }
 0x846   :  { %v9351_v24 = vpop.permute.xlu1 %6484  ;;  %v6682_v19 = vrot.slane %v6674_v6, %v7482_v48  ;;  %v6555_v52 = vcombine.high %v9281_v61, %v9291_v11  ;;  %v5791_v11 = vcombine.high %v9205_v38, %v9225_v54  ;;  %v5807_v6 = vcombine.high %v9229_v13, %v9237_v14 }
 0x847   :  { %9999 = vst [vmem:[#allocation17_spill] sm:$0xff] %v9335_v20  ;;  %v6667_v18 = vcombine.high %v9332_v40, %v9335_v20  ;;  %v6690_v36 = vcombine.low %v9329_v28, %v9351_v24  ;;  %v5726_v40 = vrot.slane %v5718_v27, %v7490_v58  ;;  %v6668_v12 = vcombine.low %v6617_v34, %v6649_v9  ;;  %v9393_v27 = vpop.permute.xlu0 %6428 }
 0x848   :  { %v9414_v56 = vrot.slane %v6555_v52, %v7482_v48  ;;  %v9427_v38 = vrot.slane %v5823_v46, %v7482_v48  ;;  %v6669_v14 = vcombine.high %v6617_v34, %v6649_v9  ;;  %v9444_v52 = vrot.slane %v5791_v11, %v7482_v48 }
 0x849   :  { %7084 = vrot.lane.b32.xlu0 %v6667_v18, %s7340_s0  ;;  %v6698_v18 = vrot.slane %v6690_v36, %v7482_v48  ;;  %v6571_v36 = vcombine.high %v9249_v60, %v9253_v25  ;;  %v9402_v60 = vrot.slane %v6587_v39, %v7482_v48  ;;  %v5770_v61 = vcombine.low %v5726_v40, %v5758_v8 }
 0x84a   :  { %v9364_v16 = vpop.permute.xlu1 %6508  ;;  %v5751_v9 = vcombine.high %v9346_v17, %v9349_v63 }
 0x84b   :  { %v6738_v62 = vcombine.low %v6682_v19, %v6698_v18  ;;  %v9411_v43 = vrot.slane %v6571_v36, %v7482_v48  ;;  %v9435_v55 = vpop.permute.xlu0 %6452  ;;  %v9441_v36 = vrot.slane %v5807_v6, %v7482_v48 }
 0x84d   :  { %6200 = vrot.lane.b32.xlu0 %v10000_v32, %s7342_s14  ;;  %v9417_v41 = vrot.slane %v6738_v62, %v7490_v58  ;;  %v6650_v54 = vcombine.low %v9411_v43, %v9402_v60  ;;  %v5886_v34 = vcombine.low %v9441_v36, %v9427_v38 }
 0x84e   :  { %v9379_v20 = vpop.permute.xlu1 %6532 }
 0x84f   :  { %v6722_v50 = vcombine.low %v9364_v16, %v9379_v20  ;;  %10001 = vst [vmem:[#allocation18_spill] sm:$0xff] %v9417_v41  ;;  %v9470_v17 = vpop.permute.xlu0 %6476  ;;  %v5894_v6 = vrot.slane %v5886_v34, %v7490_v58 }
 0x851   :  { %v6730_v32 = vrot.slane %v6722_v50, %v7482_v48  ;;  %7092 = vrot.lane.b32.xlu0 %v6668_v12, %s7341_s13  ;;  %v5775_v50 = vcombine.high %v9188_v26, %v9219_v22  ;;  %v9424_v26 = vrot.slane %v6539_v49, %v7482_v48  ;;  %v6739_v49 = vcombine.high %v6682_v19, %v6698_v18 }
 0x852   :  { %v9399_v23 = vpop.permute.xlu1 %5636  ;;  %v5905_v19 = vcombine.high %v9302_v3, %v9296_v15  ;;  %v6658_v18 = vrot.slane %v6650_v54, %v7490_v58  ;;  %v5765_v3 = vrot.slane %v5751_v9, %v7490_v58  ;;  %v6707_v54 = vcombine.high %v9275_v33, %v9283_v10 }
 0x853   :  { %v6770_v25 = vcombine.low %v6714_v4, %v6730_v32  ;;  %v6771_v13 = vcombine.high %v6714_v4, %v6730_v32  ;;  %v9438_v12 = vrot.slane %v5775_v50, %v7482_v48  ;;  %v6618_v62 = vcombine.low %v9424_v26, %v9414_v56  ;;  %v9493_v10 = vpop.permute.xlu0 %6500 }
 0x854   :  { %v5719_v4 = vcombine.high %v9340_v29, %v9343_v45  ;;  %v5771_v32 = vcombine.high %v5726_v40, %v5758_v8  ;;  %v6753_v45 = vrot.slane %v6739_v49, %v7490_v58  ;;  %v6723_v8 = vcombine.high %v9364_v16, %v9379_v20 }
 0x855   :  { %v9420_v0 = vrot.slane %v6770_v25, %v7490_v58  ;;  %6208 = vrot.lane.b32.xlu0 %v5770_v61, %s7337_s10  ;;  %v6785_v25 = vrot.slane %v6771_v13, %v7490_v58  ;;  %v5854_v29 = vcombine.low %v9438_v12, %v9444_v52  ;;  %v6626_v40 = vrot.slane %v6618_v62, %v7490_v58 }
 0x856   :  { %v9429_v22 = vpop.permute.xlu1 %6368  ;;  %v5733_v15 = vrot.slane %v5719_v4, %v7490_v58  ;;  %v6691_v13 = vcombine.high %v9329_v28, %v9351_v24  ;;  %v6675_v20 = vcombine.high %v9257_v1, %v9265_v2  ;;  %v9491_v16 = vrot.slane %v6723_v8, %v7482_v48 }
 0x857   :  { %10002 = vst [vmem:[#allocation19_spill] sm:$0xff] %v9420_v0  ;;  %v6803_v39 = vcombine.high %v9417_v41, %v9420_v0  ;;  %v6670_v50 = vcombine.low %v6626_v40, %v6658_v18  ;;  %v6804_v11 = vcombine.low %v6753_v45, %v6785_v25  ;;  %v5926_v28 = vcombine.low %v9203_v31, %v9223_v42 }
 0x858   :  { %v5772_v62 = vcombine.low %v5733_v15, %v5765_v3  ;;  %v5942_v24 = vcombine.low %v9227_v47, %v9235_v30  ;;  %v9502_v4 = vrot.slane %v6707_v54, %v7482_v48  ;;  %v9505_v1 = vrot.slane %v6691_v13, %v7482_v48 }
 0x859   :  { %7100 = vrot.lane.b32.xlu0 %v6669_v14, %s7342_s14  ;;  %7086 = vrot.lane.b32.xlu1 %v6803_v39, %s7340_s0  ;;  %v5862_v14 = vrot.slane %v5854_v29, %v7490_v58  ;;  %v5958_v39 = vcombine.low %v9231_v51, %v9239_v35  ;;  %v5910_v2 = vcombine.low %v9186_v44, %v9217_v53 }
 0x85a   :  { %v9456_v46 = vpop.permute.xlu1 %6392  ;;  %v9515_v34 = vrot.slane %v6675_v20, %v7482_v48  ;;  %v6671_v29 = vcombine.high %v6626_v40, %v6658_v18  ;;  %v6805_v8 = vcombine.high %v6753_v45, %v6785_v25  ;;  %v6619_v54 = vcombine.high %v9424_v26, %v9414_v56 }
 0x85b   :  { %v5906_v33 = vcombine.low %v5862_v14, %v5894_v6  ;;  %v9512_v9 = vrot.slane %v5958_v39, %v7482_v48  ;;  %v5887_v18 = vcombine.high %v9441_v36, %v9427_v38  ;;  %v5773_v26 = vcombine.high %v5733_v15, %v5765_v3 }
 0x85c   :  { %v6754_v13 = vcombine.low %v9515_v34, %v9505_v1  ;;  %v5907_v40 = vcombine.high %v5862_v14, %v5894_v6  ;;  %v6810_v36 = vcombine.low %v9317_v37, %v9337_v5  ;;  %v6842_v15 = vcombine.low %v9369_v59, %v9393_v27 }
 0x85d   :  { %6216 = vrot.lane.b32.xlu0 %v5771_v32, %s7343_s15  ;;  %6202 = vrot.lane.b32.xlu1 %v5905_v19, %s7342_s14  ;;  %v6651_v32 = vcombine.high %v9411_v43, %v9402_v60  ;;  %v6786_v19 = vcombine.low %v9502_v4, %v9491_v16  ;;  %v9533_v60 = vpop.permute.xlu0 %6524  ;;  %v9536_v43 = vrot.slane %v5910_v2, %v7482_v48 }
 0x85e   :  { %v9474_v63 = vpop.permute.xlu1 %6416  ;;  %v6762_v38 = vrot.slane %v6754_v13, %v7490_v58  ;;  %v5901_v6 = vrot.slane %v5887_v18, %v7490_v58  ;;  %v10003_v2 = vcombine.low %v9191_v57, %v9198_v21  ;;  %v6094_v57 = vcombine.low %v9267_v7, %v9399_v23 }
 0x85f   :  { %v6665_v56 = vrot.slane %v6651_v32, %v7490_v58  ;;  %v6794_v39 = vrot.slane %v6786_v19, %v7490_v58  ;;  %v9582_v21 = vrot.slane %v6842_v15, %v7482_v48 }
 0x860   :  { %v9603_v0 = vrot.slane %v6094_v57, %v7482_v48 }
 0x861   :  { %7108 = vrot.lane.b32.xlu0 %v6670_v50, %s7337_s10  ;;  %7094 = vrot.lane.b32.xlu1 %v6804_v11, %s7341_s13  ;;  %v9522_v50 = vrot.slane %v5926_v28, %v7482_v48  ;;  %v9525_v11 = vrot.slane %v5942_v24, %v7482_v48  ;;  %v6806_v24 = vcombine.low %v6762_v38, %v6794_v39 }
 0x862   :  { %v9499_v49 = vpop.permute.xlu1 %6440 }
 0x863   :  { %v6006_v25 = vcombine.low %v9525_v11, %v9512_v9  ;;  %v5974_v20 = vcombine.low %v9536_v43, %v9522_v50 }
 0x865   :  { %6224 = vrot.lane.b32.xlu0 %v5772_v62, %s7344_s16  ;;  %6210 = vrot.lane.b32.xlu1 %v5906_v33, %s7337_s10  ;;  %v5855_v62 = vcombine.high %v9438_v12, %v9444_v52  ;;  %v6633_v33 = vrot.slane %v6619_v54, %v7490_v58  ;;  %v6014_v3 = vrot.slane %v6006_v25, %v7490_v58 }
 0x866   :  { %v9542_v45 = vpop.permute.xlu1 %6464  ;;  %v6826_v12 = vcombine.low %v9429_v22, %v9456_v46  ;;  %v6858_v52 = vcombine.low %v9474_v63, %v9499_v49  ;;  %v9577_v54 = vrot.slane %v6810_v36, %v7482_v48  ;;  %v10008_v36 = vld [vmem:[#allocation12_spill] sm:$0xff] }
 0x867   :  { %v6672_v28 = vcombine.low %v6633_v33, %v6665_v56 }
 0x868   :  { %v9585_v18 = vrot.slane %v6826_v12, %v7482_v48  ;;  %v6787_v12 = vcombine.high %v9502_v4, %v9491_v16  ;;  %v6007_v4 = vcombine.high %v9525_v11, %v9512_v9 }
 0x869   :  { %7116 = vrot.lane.b32.xlu0 %v6671_v29, %s7343_s15  ;;  %7102 = vrot.lane.b32.xlu1 %v6805_v8, %s7342_s14  ;;  %v5982_v29 = vrot.slane %v5974_v20, %v7490_v58  ;;  %v5869_v8 = vrot.slane %v5855_v62, %v7490_v58  ;;  %v10006_v20 = vld [vmem:[#allocation9_spill] sm:$0xff] }
 0x86a   :  { %v9570_v19 = vpop.permute.xlu1 %6488  ;;  %v6874_v41 = vcombine.low %v9577_v54, %v9585_v18 }
 0x86b   :  { %v6038_v13 = vcombine.low %v5982_v29, %v6014_v3  ;;  %v5908_v25 = vcombine.low %v5869_v8, %v5901_v6  ;;  %v5909_v57 = vcombine.high %v5869_v8, %v5901_v6 }
 0x86d   :  { %6232 = vrot.lane.b32.xlu0 %v5773_v26, %s7345_s17  ;;  %6218 = vrot.lane.b32.xlu1 %v5907_v40, %s7343_s15  ;;  %v9588_v26 = vrot.slane %v6858_v52, %v7482_v48  ;;  %v10005_v40 = vld [vmem:[#allocation11_spill] sm:$0xff]  ;;  %v6673_v52 = vcombine.high %v6633_v33, %v6665_v56  ;;  %v6039_v33 = vcombine.high %v5982_v29, %v6014_v3 }
 0x86e   :  { %v6062_v62 = vcombine.low %v10006_v20, %v10005_v40  ;;  %v9600_v61 = vpop.permute.xlu1 %6512  ;;  %v6978_v3 = vcombine.low %v9493_v10, %v9533_v60  ;;  %v6962_v29 = vcombine.low %v9542_v45, %v9570_v19 }
 0x86f   :  { %v6185_v14 = vpop.permute.xlu0 %6184 }
 0x870   :  { %v9568_v32 = vsel %vm865_vm0, %v10003_v2, %v6185_v14  ;;  %v10007_v14 = vld [vmem:[#allocation15_spill] sm:$0xff]  ;;  %v10010_v2 = vld [vmem:[#allocation8_spill] sm:$0xff] }
 0x871   :  { %10004 = vst [vmem:[#allocation20_spill] sm:$0xff] %v9568_v32  ;;  %7124 = vrot.lane.b32.xlu0 %v6672_v28, %s7344_s16  ;;  %7110 = vrot.lane.b32.xlu1 %v6806_v24, %s7337_s10  ;;  %v6078_v28 = vcombine.low %v10008_v36, %v10007_v14  ;;  %v10009_v24 = vld [vmem:[#allocation10_spill] sm:$0xff]  ;;  %v6807_v32 = vcombine.high %v6762_v38, %v6794_v39 }
 0x872   :  { %v6046_v15 = vcombine.low %v10010_v2, %v10009_v24  ;;  %v9612_v2 = vrot.slane %v6062_v62, %v7482_v48  ;;  %v6801_v39 = vrot.slane %v6787_v12, %v7490_v58  ;;  %v9632_v9 = vpop.permute.xlu1 %6536 }
 0x873   :  { %v9615_v16 = vrot.slane %v6078_v28, %v7482_v48  ;;  %v6994_v8 = vcombine.low %v9600_v61, %v9632_v9 }
 0x874   :  { %v9622_v56 = vrot.slane %v6046_v15, %v7482_v48 }
 0x875   :  { %6240 = vrot.lane.b32.xlu0 %v6038_v13, %s7346_s18  ;;  %6226 = vrot.lane.b32.xlu1 %v5908_v25, %s7344_s16  ;;  %v6906_v13 = vcombine.low %v9582_v21, %v9588_v26  ;;  %v6755_v25 = vcombine.high %v9515_v34, %v9505_v1  ;;  %v6142_v1 = vcombine.low %v9615_v16, %v9603_v0 }
 0x876   :  { %v6882_v34 = vrot.slane %v6874_v41, %v7490_v58  ;;  %v6110_v11 = vcombine.low %v9622_v56, %v9612_v2  ;;  %v6946_v41 = vcombine.low %v9435_v55, %v9470_v17 }
 0x877   :  { %v6914_v38 = vrot.slane %v6906_v13, %v7490_v58  ;;  %v6769_v62 = vrot.slane %v6755_v25, %v7490_v58 }
 0x878   :  { %v6118_v12 = vrot.slane %v6110_v11, %v7490_v58  ;;  %v9655_v13 = vrot.slane %v6946_v41, %v7482_v48  ;;  %v6875_v41 = vcombine.high %v9577_v54, %v9585_v18 }
 0x879   :  { %7132 = vrot.lane.b32.xlu0 %v6673_v52, %s7345_s17  ;;  %7118 = vrot.lane.b32.xlu1 %v6807_v32, %s7343_s15  ;;  %v5975_v32 = vcombine.high %v9536_v43, %v9522_v50  ;;  %v6808_v6 = vcombine.low %v6769_v62, %v6801_v39  ;;  %v6021_v50 = vrot.slane %v6007_v4, %v7490_v58 }
 0x87a   :  { %v6150_v43 = vrot.slane %v6142_v1, %v7490_v58  ;;  %v6938_v28 = vcombine.low %v6882_v34, %v6914_v38  ;;  %v5959_v52 = vcombine.high %v9231_v51, %v9239_v35  ;;  %v9658_v4 = vrot.slane %v6978_v3, %v7482_v48 }
 0x87b   :  { %v5989_v15 = vrot.slane %v5975_v32, %v7490_v58  ;;  %v9664_v1 = vrot.slane %v6994_v8, %v7482_v48  ;;  %v5943_v32 = vcombine.high %v9227_v47, %v9235_v30  ;;  %v5911_v51 = vcombine.high %v9186_v44, %v9217_v53 }
 0x87c   :  { %v5927_v35 = vcombine.high %v9203_v31, %v9223_v42  ;;  %v9675_v11 = vrot.slane %v5959_v52, %v7482_v48  ;;  %v6809_v3 = vcombine.high %v6769_v62, %v6801_v39  ;;  %v6907_v47 = vcombine.high %v9582_v21, %v9588_v26 }
 0x87d   :  { %6248 = vrot.lane.b32.xlu0 %v6039_v33, %s7347_s19  ;;  %6234 = vrot.lane.b32.xlu1 %v5909_v57, %s7345_s17  ;;  %v6040_v25 = vcombine.low %v5989_v15, %v6021_v50  ;;  %v9661_v33 = vrot.slane %v6962_v29, %v7482_v48  ;;  %v6174_v57 = vcombine.low %v6118_v12, %v6150_v43 }
 0x87e   :  { %v7042_v31 = vcombine.low %v9658_v4, %v9664_v1  ;;  %v6939_v53 = vcombine.high %v6882_v34, %v6914_v38  ;;  %v9686_v42 = vrot.slane %v5943_v32, %v7482_v48  ;;  %v9689_v30 = vrot.slane %v5911_v51, %v7482_v48 }
 0x87f   :  { %v7010_v44 = vcombine.low %v9655_v13, %v9661_v33  ;;  %v6143_v21 = vcombine.high %v9615_v16, %v9603_v0  ;;  %v6175_v18 = vcombine.high %v6118_v12, %v6150_v43  ;;  %v6041_v26 = vcombine.high %v5989_v15, %v6021_v50 }
 0x880   :  { %v6022_v54 = vcombine.low %v9686_v42, %v9675_v11  ;;  %v6889_v39 = vrot.slane %v6875_v41, %v7490_v58  ;;  %v6921_v34 = vrot.slane %v6907_v47, %v7490_v58  ;;  %v7050_v62 = vrot.slane %v7042_v31, %v7490_v58 }
 0x881   :  { %7126 = vrot.lane.b32.xlu1 %v6808_v6, %s7344_s16  ;;  %7140 = vrot.lane.b32.xlu0 %v6938_v28, %s7346_s18  ;;  %v9692_v6 = vrot.slane %v5927_v35, %v7482_v48  ;;  %v7018_v38 = vrot.slane %v7010_v44, %v7490_v58  ;;  %v6111_v8 = vcombine.high %v9622_v56, %v9612_v2 }
 0x882   :  { %v6811_v28 = vcombine.high %v9317_v37, %v9337_v5  ;;  %v6843_v0 = vcombine.high %v9369_v59, %v9393_v27  ;;  %v6827_v16 = vcombine.high %v9429_v22, %v9456_v46  ;;  %v6859_v50 = vcombine.high %v9474_v63, %v9499_v49 }
 0x883   :  { %v5990_v29 = vcombine.low %v9689_v30, %v9692_v6  ;;  %v6157_v43 = vrot.slane %v6143_v21, %v7490_v58  ;;  %v6940_v15 = vcombine.low %v6889_v39, %v6921_v34  ;;  %v7074_v2 = vcombine.low %v7018_v38, %v7050_v62 }
 0x884   :  { %v6030_v56 = vrot.slane %v6022_v54, %v7490_v58  ;;  %v9721_v5 = vrot.slane %v6811_v28, %v7482_v48  ;;  %v6125_v59 = vrot.slane %v6111_v8, %v7490_v58  ;;  %v6095_v27 = vcombine.high %v9267_v7, %v9399_v23  ;;  %v10011_v7 = vld [vmem:[#allocation8_spill] sm:$0xff] }
 0x885   :  { %6242 = vrot.lane.b32.xlu1 %v6174_v57, %s7346_s18  ;;  %6256 = vrot.lane.b32.xlu0 %v6040_v25, %s7348_s20  ;;  %v5998_v37 = vrot.slane %v5990_v29, %v7490_v58  ;;  %v9730_v22 = vrot.slane %v6843_v0, %v7482_v48  ;;  %v9733_v46 = vrot.slane %v6827_v16, %v7482_v48 }
 0x886   :  { %v9736_v63 = vrot.slane %v6859_v50, %v7482_v48  ;;  %v6176_v12 = vcombine.low %v6125_v59, %v6157_v43  ;;  %v6079_v52 = vcombine.high %v10008_v36, %v10007_v14  ;;  %v6063_v25 = vcombine.high %v10006_v20, %v10005_v40 }
 0x887   :  { %v6042_v49 = vcombine.low %v5998_v37, %v6030_v56  ;;  %v6047_v23 = vcombine.high %v10011_v7, %v10009_v24  ;;  %v9747_v57 = vrot.slane %v6095_v27, %v7482_v48  ;;  %v6890_v32 = vcombine.low %v9721_v5, %v9733_v46 }
 0x888   :  { %v6922_v51 = vcombine.low %v9730_v22, %v9736_v63  ;;  %v7011_v14 = vcombine.high %v9655_v13, %v9661_v33  ;;  %v7043_v40 = vcombine.high %v9658_v4, %v9664_v1  ;;  %v6941_v20 = vcombine.high %v6889_v39, %v6921_v34 }
 0x889   :  { %7134 = vrot.lane.b32.xlu1 %v6809_v3, %s7345_s17  ;;  %7148 = vrot.lane.b32.xlu0 %v6939_v53, %s7347_s19  ;;  %v7075_v36 = vcombine.high %v7018_v38, %v7050_v62  ;;  %v6093_v35 = vrot.slane %v6079_v52, %v7482_v48  ;;  %v6023_v24 = vcombine.high %v9686_v42, %v9675_v11 }
 0x88a   :  { %v9761_v41 = vrot.slane %v6063_v25, %v7482_v48  ;;  %v6061_v3 = vrot.slane %v6047_v23, %v7482_v48  ;;  %v6043_v33 = vcombine.high %v5998_v37, %v6030_v56  ;;  %v6177_v4 = vcombine.high %v6125_v59, %v6157_v43  ;;  %v10013_v37 = vld [vmem:[#allocation14_spill] sm:$0xff] }
 0x88b   :  { %v6158_v13 = vcombine.low %v6093_v35, %v9747_v57  ;;  %v6898_v1 = vrot.slane %v6890_v32, %v7490_v58  ;;  %v6930_v47 = vrot.slane %v6922_v51, %v7490_v58  ;;  %v7025_v44 = vrot.slane %v7011_v14, %v7490_v58  ;;  %v6193_v32 = vpop.permute.xlu0 %6192 }
 0x88c   :  { %v7057_v11 = vrot.slane %v7043_v40, %v7490_v58  ;;  %v5991_v31 = vcombine.high %v9689_v30, %v9692_v6  ;;  %v6126_v53 = vcombine.low %v6061_v3, %v9761_v41  ;;  %v6947_v54 = vcombine.high %v9435_v55, %v9470_v17 }
 0x88d   :  { %6250 = vrot.lane.b32.xlu1 %v6175_v18, %s7347_s19  ;;  %6264 = vrot.lane.b32.xlu0 %v6041_v26, %s7349_s21  ;;  %v6166_v42 = vrot.slane %v6158_v13, %v7490_v58  ;;  %v6979_v21 = vcombine.high %v9493_v10, %v9533_v60  ;;  %v6037_v18 = vrot.slane %v6023_v24, %v7490_v58  ;;  %v10015_v24 = vld [vmem:[#allocation16_spill] sm:$0xff] }
 0x88e   :  { %v6963_v26 = vcombine.high %v9542_v45, %v9570_v19  ;;  %v6995_v30 = vcombine.high %v9600_v61, %v9632_v9  ;;  %v6942_v6 = vcombine.low %v6898_v1, %v6930_v47  ;;  %v7076_v39 = vcombine.low %v7025_v44, %v7057_v11 }
 0x88f   :  { %v6005_v34 = vrot.slane %v5991_v31, %v7490_v58  ;;  %v6134_v55 = vrot.slane %v6126_v53, %v7490_v58  ;;  %v6961_v17 = vrot.slane %v6947_v54, %v7482_v48  ;;  %v6993_v60 = vrot.slane %v6979_v21, %v7482_v48 }
 0x890   :  { %v6977_v45 = vrot.slane %v6963_v26, %v7482_v48  ;;  %v7009_v19 = vrot.slane %v6995_v30, %v7482_v48  ;;  %v6891_v9 = vcombine.high %v9721_v5, %v9733_v46  ;;  %v6923_v38 = vcombine.high %v9730_v22, %v9736_v63  ;;  %v10012_v5 = vld [vmem:[#allocation13_spill] sm:$0xff]  ;;  %v10020_v26 = vld [vmem:[#allocation19_spill] sm:$0xff] }
 0x891   :  { %7156 = vrot.lane.b32.xlu0 %v6940_v15, %s7348_s20  ;;  %7142 = vrot.lane.b32.xlu1 %v7074_v2, %s7346_s18  ;;  %v6044_v10 = vcombine.low %v6005_v34, %v6037_v18  ;;  %v6178_v61 = vcombine.low %v6134_v55, %v6166_v42  ;;  %v6943_v8 = vcombine.high %v6898_v1, %v6930_v47 }
 0x892   :  { %v7026_v62 = vcombine.low %v6961_v17, %v6977_v45  ;;  %v7058_v29 = vcombine.low %v6993_v60, %v7009_v19  ;;  %v7077_v28 = vcombine.high %v7025_v44, %v7057_v11  ;;  %v6159_v48 = vcombine.high %v6093_v35, %v9747_v57 }
 0x893   :  { %v6045_v0 = vcombine.high %v6005_v34, %v6037_v18  ;;  %v6179_v16 = vcombine.high %v6134_v55, %v6166_v42  ;;  %v6905_v50 = vrot.slane %v6891_v9, %v7490_v58  ;;  %v6937_v43 = vrot.slane %v6923_v38, %v7490_v58  ;;  %v10019_v18 = vld [vmem:[#allocation18_spill] sm:$0xff] }
 0x894   :  { %v7034_v15 = vrot.slane %v7026_v62, %v7490_v58  ;;  %v7066_v2 = vrot.slane %v7058_v29, %v7490_v58  ;;  %v10014_v59 = vcombine.low %v10012_v5, %v10013_v37  ;;  %v6127_v22 = vcombine.high %v6061_v3, %v9761_v41  ;;  %v10016_v41 = vld [vmem:[#allocation17_spill] sm:$0xff] }
 0x895   :  { %6272 = vrot.lane.b32.xlu0 %v6042_v49, %s7350_s22  ;;  %6258 = vrot.lane.b32.xlu1 %v6176_v12, %s7348_s20  ;;  %v6173_v46 = vrot.slane %v6159_v48, %v7490_v58  ;;  %v6944_v49 = vcombine.low %v6905_v50, %v6937_v43  ;;  %v6945_v7 = vcombine.high %v6905_v50, %v6937_v43 }
 0x896   :  { %v7078_v12 = vcombine.low %v7034_v15, %v7066_v2  ;;  %v6141_v25 = vrot.slane %v6127_v22, %v7490_v58  ;;  %v7027_v57 = vcombine.high %v6961_v17, %v6977_v45  ;;  %v7059_v51 = vcombine.high %v6993_v60, %v7009_v19 }
 0x897   :  { %v7079_v14 = vcombine.high %v7034_v15, %v7066_v2  ;;  %v10017_v3 = vcombine.low %v10015_v24, %v10016_v41  ;;  %v10021_v30 = vcombine.low %v10019_v18, %v10020_v26 }
 0x898   :  { %v6180_v23 = vcombine.low %v6141_v25, %v6173_v46  ;;  %v7041_v40 = vrot.slane %v7027_v57, %v7490_v58  ;;  %v6181_v35 = vcombine.high %v6141_v25, %v6173_v46 }
 0x899   :  { %7164 = vrot.lane.b32.xlu0 %v6941_v20, %s7349_s21  ;;  %7150 = vrot.lane.b32.xlu1 %v7075_v36, %s7347_s19  ;;  %v7073_v20 = vrot.slane %v7059_v51, %v7490_v58 }
 0x89b   :  { %v7080_v47 = vcombine.low %v7041_v40, %v7073_v20  ;;  %v7081_v58 = vcombine.high %v7041_v40, %v7073_v20 }
 0x89d   :  { %6280 = vrot.lane.b32.xlu0 %v6043_v33, %s7351_s23  ;;  %6266 = vrot.lane.b32.xlu1 %v6177_v4, %s7349_s21  ;;  %v10018_v33 = vld [vmem:[#allocation20_spill] sm:$0xff] }
 0x89e   :  { %v6304_v4 = vsel %vm868_vm1, %v10018_v33, %v6193_v32 }
 0x8a1   :  { %7172 = vrot.lane.b32.xlu0 %v6942_v6, %s7350_s22  ;;  %7158 = vrot.lane.b32.xlu1 %v7076_v39, %s7348_s20 }
 0x8a5   :  { %6288 = vrot.lane.b32.xlu0 %v6044_v10, %s7352_s24  ;;  %6274 = vrot.lane.b32.xlu1 %v6178_v61, %s7350_s22 }
 0x8a9   :  { %7180 = vrot.lane.b32.xlu0 %v6943_v8, %s7351_s23  ;;  %7166 = vrot.lane.b32.xlu1 %v7077_v28, %s7349_s21 }
 0x8ab   :  { %v6187_v56 = vpop.permute.xlu1 %6186 }
 0x8ac   :  { %v6303_v27 = vsel %vm865_vm0, %v10014_v59, %v6187_v56 }
 0x8ad   :  { %6296 = vrot.lane.b32.xlu0 %v6045_v0, %s7353_s25  ;;  %6282 = vrot.lane.b32.xlu1 %v6179_v16, %s7351_s23 }
 0x8af   :  { %v6195_v63 = vpop.permute.xlu1 %6194 }
 0x8b0   :  { %v6305_v52 = vsel %vm868_vm1, %v6303_v27, %v6195_v63 }
 0x8b1   :  { %7188 = vrot.lane.b32.xlu0 %v6944_v49, %s7352_s24  ;;  %7174 = vrot.lane.b32.xlu1 %v7078_v12, %s7350_s22 }
 0x8b5   :  { %7196 = vrot.lane.b32.xlu0 %v6945_v7, %s7353_s25  ;;  %6290 = vrot.lane.b32.xlu1 %v6180_v23, %s7352_s24 }
 0x8b9   :  { %7182 = vrot.lane.b32.xlu1 %v7079_v14, %s7351_s23 }
 0x8bb   :  { %v7085_v36 = vpop.permute.xlu0 %7084 }
 0x8bc   :  { %v7202_v13 = vsel %vm865_vm0, %v10017_v3, %v7085_v36 }
 0x8bd   :  { %6298 = vrot.lane.b32.xlu1 %v6181_v35, %s7353_s25 }
 0x8bf   :  { %v6201_v1 = vpop.permute.xlu0 %6200 }
 0x8c0   :  { %v6306_v44 = vsel %vm871_vm2, %v6304_v4, %v6201_v1 }
 0x8c1   :  { %7190 = vrot.lane.b32.xlu1 %v7080_v47, %s7352_s24 }
 0x8c3   :  { %v7093_v11 = vpop.permute.xlu0 %7092 }
 0x8c4   :  { %v7204_v31 = vsel %vm868_vm1, %v7202_v13, %v7093_v11 }
 0x8c5   :  { %7198 = vrot.lane.b32.xlu1 %v7081_v58, %s7353_s25 }
 0x8c7   :  { %v6209_v53 = vpop.permute.xlu0 %6208 }
 0x8c8   :  { %v6308_v42 = vsel %vm874_vm3, %v6306_v44, %v6209_v53 }
 0x8cb   :  { %v7087_v54 = vpop.permute.xlu1 %7086  ;;  %v7101_v21 = vpop.permute.xlu0 %7100 }
 0x8cc   :  { %v7203_v6 = vsel %vm865_vm0, %v10021_v30, %v7087_v54  ;;  %v7206_v39 = vsel %vm871_vm2, %v7204_v31, %v7101_v21  ;;  %vm10022_vm0 = vcmask 228352  }
 0x8cd   :  { %vm10027_vm15 = vmmov %vm10022_vm0 }
 0x8cf   :  { %v6203_v34 = vpop.permute.xlu1 %6202  ;;  %v6217_v55 = vpop.permute.xlu0 %6216 }
 0x8d0   :  { %v6307_v17 = vsel %vm871_vm2, %v6305_v52, %v6203_v34  ;;  %v6310_v10 = vsel %vm877_vm4, %v6308_v42, %v6217_v55 }
 0x8d3   :  { %v7095_v60 = vpop.permute.xlu1 %7094  ;;  %v7109_v45 = vpop.permute.xlu0 %7108 }
 0x8d4   :  { %v7205_v19 = vsel %vm868_vm1, %v7203_v6, %v7095_v60  ;;  %v7208_v61 = vsel %vm874_vm3, %v7206_v39, %v7109_v45  ;;  %vm10023_vm1 = vcmask 244736  }
 0x8d5   :  { %vm10028_vm14 = vmmov %vm10023_vm1 }
 0x8d7   :  { %v6211_v9 = vpop.permute.xlu1 %6210  ;;  %v6225_v38 = vpop.permute.xlu0 %6224 }
 0x8d8   :  { %v6309_v62 = vsel %vm874_vm3, %v6307_v17, %v6211_v9  ;;  %v6312_v13 = vsel %vm880_vm5, %v6310_v10, %v6225_v38 }
 0x8db   :  { %v7103_v29 = vpop.permute.xlu1 %7102  ;;  %v7117_v8 = vpop.permute.xlu0 %7116 }
 0x8dc   :  { %v7207_v28 = vsel %vm871_vm2, %v7205_v19, %v7103_v29  ;;  %v7210_v48 = vsel %vm877_vm4, %v7208_v61, %v7117_v8  ;;  %vm10024_vm2 = vcmask 261120  }
 0x8dd   :  { %vm10029_vm13 = vmmov %vm10024_vm2 }
 0x8df   :  { %v6219_v0 = vpop.permute.xlu1 %6218  ;;  %v6233_v16 = vpop.permute.xlu0 %6232 }
 0x8e0   :  { %v6311_v50 = vsel %vm877_vm4, %v6309_v62, %v6219_v0  ;;  %v6314_v1 = vsel %vm883_vm6, %v6312_v13, %v6233_v16 }
 0x8e3   :  { %v7111_v43 = vpop.permute.xlu1 %7110  ;;  %v7125_v15 = vpop.permute.xlu0 %7124 }
 0x8e4   :  { %v7209_v2 = vsel %vm874_vm3, %v7207_v28, %v7111_v43  ;;  %v7212_v21 = vsel %vm880_vm5, %v7210_v48, %v7125_v15  ;;  %vm10025_vm3 = vmmov %vm10022_vm0 }
 0x8e7   :  { %v6227_v56 = vpop.permute.xlu1 %6226  ;;  %v6241_v5 = vpop.permute.xlu0 %6240 }
 0x8e8   :  { %v6316_v47 = vsel %vm886_vm7, %v6314_v1, %v6241_v5  ;;  %v6313_v9 = vsel %vm880_vm5, %v6311_v50, %v6227_v56 }
 0x8eb   :  { %v7119_v37 = vpop.permute.xlu1 %7118  ;;  %v7133_v59 = vpop.permute.xlu0 %7132 }
 0x8ec   :  { %v9851_v27 = vsel %vm877_vm4, %v7209_v2, %v7119_v37  ;;  %v7214_v6 = vsel %vm883_vm6, %v7212_v21, %v7133_v59  ;;  %vm10026_vm4 = vmmov %vm10023_vm1 }
 0x8ef   :  { %v6235_v22 = vpop.permute.xlu1 %6234  ;;  %v6249_v46 = vpop.permute.xlu0 %6248 }
 0x8f0   :  { %v6318_v44 = vsel %vm889_vm8, %v6316_v47, %v6249_v46  ;;  %v6315_v8 = vsel %vm883_vm6, %v6313_v9, %v6235_v22 }
 0x8f3   :  { %v7127_v63 = vpop.permute.xlu1 %7126  ;;  %v7141_v49 = vpop.permute.xlu0 %7140 }
 0x8f4   :  { %v7216_v34 = vsel %vm886_vm7, %v7214_v6, %v7141_v49  ;;  %v7213_v56 = vsel %vm880_vm5, %v9851_v27, %v7127_v63  ;;  %vm10030_vm5 = vmmov %vm10022_vm0 }
 0x8f7   :  { %v6243_v12 = vpop.permute.xlu1 %6242  ;;  %v6257_v52 = vpop.permute.xlu0 %6256 }
 0x8f8   :  { %v6320_v11 = vsel %vm892_vm9, %v6318_v44, %v6257_v52  ;;  %v6317_v48 = vsel %vm886_vm7, %v6315_v8, %v6243_v12 }
 0x8fb   :  { %v7135_v25 = vpop.permute.xlu1 %7134  ;;  %v7149_v7 = vpop.permute.xlu0 %7148 }
 0x8fc   :  { %v7218_v55 = vsel %vm889_vm8, %v7216_v34, %v7149_v7  ;;  %v7215_v59 = vsel %vm883_vm6, %v7213_v56, %v7135_v25  ;;  %vm10031_vm6 = vmmov %vm10023_vm1 }
 0x8ff   :  { %v6251_v23 = vpop.permute.xlu1 %6250  ;;  %v6265_v57 = vpop.permute.xlu0 %6264 }
 0x900   :  { %v6322_v53 = vsel %vm895_vm10, %v6320_v11, %v6265_v57  ;;  %v6319_v0 = vsel %vm889_vm8, %v6317_v48, %v6251_v23 }
 0x903   :  { %v7143_v32 = vpop.permute.xlu1 %7142  ;;  %v7157_v51 = vpop.permute.xlu0 %7156 }
 0x904   :  { %v7220_v17 = vsel %vm892_vm9, %v7218_v55, %v7157_v51  ;;  %v7217_v46 = vsel %vm886_vm7, %v7215_v59, %v7143_v32  ;;  %vm10032_vm7 = vcmask 523520  }
 0x907   :  { %v6259_v14 = vpop.permute.xlu1 %6258  ;;  %v6273_v40 = vpop.permute.xlu0 %6272 }
 0x908   :  { %v6324_v42 = vsel %vm898_vm11, %v6322_v53, %v6273_v40  ;;  %v6321_v16 = vsel %vm892_vm9, %v6319_v0, %v6259_v14 }
 0x90b   :  { %v7151_v20 = vpop.permute.xlu1 %7150  ;;  %v7165_v36 = vpop.permute.xlu0 %7164 }
 0x90c   :  { %v7222_v45 = vsel %vm895_vm10, %v7220_v17, %v7165_v36  ;;  %v7219_v49 = vsel %vm889_vm8, %v7217_v46, %v7151_v20  ;;  %vm10033_vm8 = vcmask 785920  }
 0x90f   :  { %v6267_v35 = vpop.permute.xlu1 %6266  ;;  %v6281_v24 = vpop.permute.xlu0 %6280 }
 0x910   :  { %v6326_v54 = vsel %vm901_vm12, %v6324_v42, %v6281_v24  ;;  %v6323_v15 = vsel %vm895_vm10, %v6321_v16, %v6267_v35 }
 0x913   :  { %v7159_v41 = vpop.permute.xlu1 %7158  ;;  %v7173_v3 = vpop.permute.xlu0 %7172 }
 0x914   :  { %v7224_v19 = vsel %vm898_vm11, %v7222_v45, %v7173_v3  ;;  %v7221_v12 = vsel %vm892_vm9, %v7219_v49, %v7159_v41  ;;  %vm10034_vm9 = vcmask 1048320  }
 0x917   :  { %v6275_v33 = vpop.permute.xlu1 %6274  ;;  %v6289_v4 = vpop.permute.xlu0 %6288 }
 0x918   :  { %v6328_v18 = vsel %vm10022_vm0, %v6326_v54, %v6289_v4  ;;  %v6325_v50 = vsel %vm898_vm11, %v6323_v15, %v6275_v33 }
 0x91b   :  { %v7167_v58 = vpop.permute.xlu1 %7166  ;;  %v7181_v31 = vpop.permute.xlu0 %7180 }
 0x91c   :  { %v7226_v61 = vsel %vm901_vm12, %v7224_v19, %v7181_v31  ;;  %v7223_v27 = vsel %vm895_vm10, %v7221_v12, %v7167_v58  ;;  %vm10035_vm10 = vmmov %vm10032_vm7 }
 0x91f   :  { %v6283_v26 = vpop.permute.xlu1 %6282  ;;  %v6297_v30 = vpop.permute.xlu0 %6296 }
 0x920   :  { %v6330_v39 = vsel %vm10023_vm1, %v6328_v18, %v6297_v30  ;;  %v6327_v2 = vsel %vm901_vm12, %v6325_v50, %v6283_v26 }
 0x921   :  { %6332 = vst.msk [vmem:[#allocation5 + $0x18] sm:$0xff] %vm10024_vm2, %v6330_v39  ;;  %6336 = vrot.lane.b32.xlu0 %v6330_v39, %s7354_s26 }
 0x923   :  { %v7175_v10 = vpop.permute.xlu1 %7174  ;;  %v7189_v60 = vpop.permute.xlu0 %7188 }
 0x924   :  { %v7228_v38 = vsel %vm10025_vm3, %v7226_v61, %v7189_v60  ;;  %v7225_v63 = vsel %vm898_vm11, %v7223_v27, %v7175_v10  ;;  %vm10036_vm11 = vmmov %vm10033_vm8 }
 0x927   :  { %v6291_v62 = vpop.permute.xlu1 %6290  ;;  %v7197_v29 = vpop.permute.xlu0 %7196 }
 0x928   :  { %v7230_v28 = vsel %vm10026_vm4, %v7228_v38, %v7197_v29  ;;  %v6329_v5 = vsel %vm10027_vm15, %v6327_v2, %v6291_v62 }
 0x929   :  { %7234 = vrot.lane.b32.xlu0 %v7230_v28, %s7355_s27 }
 0x92b   :  { %v7183_v43 = vpop.permute.xlu1 %7182 }
 0x92c   :  { %v7227_v7 = vsel %vm901_vm12, %v7225_v63, %v7183_v43  ;;  %vm10037_vm12 = vmmov %vm10034_vm9 }
 0x92d   :  { %7242 = vrot.lane.b32.xlu0 %v7230_v28, %s7356_s28 }
 0x92f   :  { %v6299_v37 = vpop.permute.xlu1 %6298 }
 0x930   :  { %v6331_v22 = vsel %vm10028_vm14, %v6329_v5, %v6299_v37 }
 0x931   :  { %6333 = vst.msk [vmem:[#allocation5 + $0x38] sm:$0xff] %vm10029_vm13, %v6331_v22  ;;  %6338 = vrot.lane.b32.xlu1 %v6331_v22, %s7354_s26 }
 0x933   :  { %v7191_v52 = vpop.permute.xlu1 %7190 }
 0x934   :  { %v7229_v25 = vsel %vm10030_vm5, %v7227_v7, %v7191_v52 }
 0x937   :  { %v7199_v23 = vpop.permute.xlu1 %7198 }
 0x938   :  { %v7231_v57 = vsel %vm10031_vm6, %v7229_v25, %v7199_v23 }
 0x939   :  { %7236 = vrot.lane.b32.xlu1 %v7231_v57, %s7355_s27 }
 0x93d   :  { %7244 = vrot.lane.b32.xlu1 %v7231_v57, %s7356_s28 }
 0x993   :  { %v6337_v32 = vpop.permute.xlu0 %6336 }
 0x994   :  { %6342 = vst.msk [vmem:[#allocation5 + $0x18] sm:$0xff] %vm10032_vm7, %v6337_v32 }
 0x99b   :  { %v7235_v51 = vpop.permute.xlu0 %7234 }
 0x99c   :  { %7240 = vst.msk [vmem:[#allocation5 + $0x18] sm:$0xff] %vm10033_vm8, %v7235_v51 }
 0x99f   :  { %v7243_v14 = vpop.permute.xlu0 %7242 }
 0x9a0   :  { %7248 = vst.msk [vmem:[#allocation5 + $0x18] sm:$0xff] %vm10034_vm9, %v7243_v14 }
 0x9a3   :  { %v6339_v40 = vpop.permute.xlu1 %6338 }
 0x9a4   :  { %6343 = vst.msk [vmem:[#allocation5 + $0x38] sm:$0xff] %vm10035_vm10, %v6339_v40 }
 0x9ab   :  { %v7237_v20 = vpop.permute.xlu1 %7236 }
 0x9ac   :  { %7241 = vst.msk [vmem:[#allocation5 + $0x38] sm:$0xff] %vm10036_vm11, %v7237_v20 }
 0x9af   :  { %v7245_v36 = vpop.permute.xlu1 %7244 }
 0x9b0   :  { %7249 = vst.msk [vmem:[#allocation5 + $0x38] sm:$0xff] %vm10037_vm12, %v7245_v36 }
 0x9b1   :  { %7322 = shalt.err (!%p7319_p9)
}
 0x9b2   :  { %s7358_s3 = smov 512  }
 0x9b3   :  { %7261 = dma.vmem_to_hbm [thread:$0]  %s7256_s30, 1024, %s9913_s1, [#allocation4], %s7358_s3, %s7358_s3, %s7354_s26  }
 0x9b4   :  { %7333 = dma.done.wait [#allocation4], 1024  }
 0x9b5   :  { %7334 = vsyncadd [#allocation4], 4294966272 }
 0x9b6   :  { %7265 = vsyncpa [#allocation3], 1 }
 0x9b7   :  { %7266 = vsyncpa [#allocation4], 1 }

</bundles_post_ra>
